<compile_context>
chip_gen: v7x
topology: tpu7x:2x2x1
jax: 0.10.0
libtpu: 0.0.40
codegen_flags: <defaults>
</compile_context>

<pallas_src>
import functools

import jax
import jax.numpy as jnp
from jax.experimental import pallas as pl
from jax.experimental.pallas import tpu as pltpu


# ---------------------------------------------------------------------------
# Fused Decoder kernel: the whole forward pass in one pallas_call
# ---------------------------------------------------------------------------

def _decoder_kernel(x_ref, pos_ref, lng_ref, lnb_ref, w1_ref, b1_ref,
                    w2_ref, b2_ref, wa_ref, ba_ref, wo_ref, bo_ref, out_ref,
                    *, num_slots, num_blocks):
    N, C = x_ref.shape                 # N = num_slots * batch
    HW = pos_ref.shape[0]              # tile_h * tile_w
    B = N // num_slots                 # batch
    inv_hwc = 1.0 / float(HW * C)      # LayerNorm normalization constant

    # ---- TileSlots: broadcast each slot vector over the tile + pos. encoding
    #   torch: x.view(s*b, c, 1) + pos(1, c, hw)  ->  here channel-last (N,HW,C)
    x = x_ref[...][:, None, :] + pos_ref[...][None, :, :]          # (N, HW, C)

    # ---- DecoderBlocks: x = x + Conv1x1(ReLU(Conv1x1(LayerNorm(x))))
    for blk in range(num_blocks):
        g = lng_ref[blk]                                            # (HW, C)
        bt = lnb_ref[blk]                                           # (HW, C)
        # LayerNorm over (C, H, W) per sample == over (HW, C) per row of x
        mean = jnp.sum(jnp.sum(x, axis=2, keepdims=True),
                       axis=1, keepdims=True) * inv_hwc             # (N,1,1)
        d = x - mean
        var = jnp.sum(jnp.sum(d * d, axis=2, keepdims=True),
                      axis=1, keepdims=True) * inv_hwc              # (N,1,1)
        h = d * jax.lax.rsqrt(var + 1e-5)                           # torch eps=1e-5
        h = h * g[None, :, :] + bt[None, :, :]
        # 1x1 convs == matmuls over the channel (lane) dim, rows = N*HW (MXU)
        h2 = h.reshape(N * HW, C)
        h2 = jnp.dot(h2, w1_ref[blk], preferred_element_type=jnp.float32) + b1_ref[blk]
        h2 = jnp.maximum(h2, 0.0)
        h2 = jnp.dot(h2, w2_ref[blk], preferred_element_type=jnp.float32) + b2_ref[blk]
        # TODO(synk): Dropout(decoder_dropout) is identity in eval mode.
        x = x + h2.reshape(N, HW, C)

    # ---- TileCompositor: 1-channel 1x1 conv -> softmax over slots -> weighted sum
    wa = wa_ref[...]                                                # (1, C)
    logits_all = jnp.sum(x * wa[None, :, :], axis=-1) + ba_ref[...]  # (N, HW)

    # softmax over the slot axis, statically unrolled (num_slots is tiny)
    logits = [logits_all[s * B:(s + 1) * B] for s in range(num_slots)]  # (B, HW)
    m = logits[0]
    for s in range(1, num_slots):
        m = jnp.maximum(m, logits[s])
    exps = [jnp.exp(l - m) for l in logits]
    denom = exps[0]
    for s in range(1, num_slots):
        denom = denom + exps[s]
    inv = pl.reciprocal(denom, approx=True)                         # EUP slot (free)

    comp = (exps[0] * inv)[:, :, None] * x[0:B]                     # (B, HW, C)
    for s in range(1, num_slots):
        w = (exps[s] * inv)[:, :, None]
        comp = comp + w * x[s * B:(s + 1) * B]

    # ---- output 1x1 conv: one rectangular (B*HW, OC) store
    out = jnp.dot(comp.reshape(B * HW, C), wo_ref[...],
                  preferred_element_type=jnp.float32) + bo_ref[...]
    out_ref[...] = out


# ---------------------------------------------------------------------------
# Wrapper
# ---------------------------------------------------------------------------

def decoder_forward(x_slots, params, cfg):
    """x_slots: (num_slots, batch, channels) -> (batch, output_channels, th, tw)."""
    S, B, C = x_slots.shape
    TH, TW = cfg['tile_shape']
    HW = TH * TW
    OC = cfg['output_channels']
    NB = cfg['num_decoder_blocks']

    vmem = lambda: pl.BlockSpec(memory_space=pltpu.MemorySpace.VMEM)
    out = pl.pallas_call(
        functools.partial(_decoder_kernel, num_slots=S, num_blocks=NB),
        out_shape=jax.ShapeDtypeStruct((B * HW, OC), jnp.float32),
        in_specs=[vmem() for _ in range(12)],
        out_specs=vmem(),
        compiler_params=pltpu.CompilerParams(vmem_limit_bytes=32 << 20),
    )(
        x_slots.reshape(S * B, C),      # (N, C)
        params['pos'],                  # (HW, C)
        params['ln_g'],                 # (NB, HW, C)
        params['ln_b'],                 # (NB, HW, C)
        params['w1'],                   # (NB, C, R)
        params['b1'],                   # (NB, 1, R)
        params['w2'],                   # (NB, R, C)
        params['b2'],                   # (NB, 1, C)
        params['wa'],                   # (1, C)   attention_channel weight
        params['ba'],                   # (1, 1)   attention_channel bias
        params['wo'],                   # (C, OC)  output_conv weight
        params['bo'],                   # (1, OC)  output_conv bias
    )
    # (B*HW, OC) -> (B, OC, TH, TW): match PyTorch NCHW output (tiny transpose)
    return out.reshape(B, HW, OC).transpose(0, 2, 1).reshape(B, OC, TH, TW)


# ---------------------------------------------------------------------------
# Pure-JAX reference (for in-script validation)
# ---------------------------------------------------------------------------

def decoder_reference(x_slots, params, cfg):
    S, B, C = x_slots.shape
    TH, TW = cfg['tile_shape']
    HW = TH * TW
    OC = cfg['output_channels']
    NB = cfg['num_decoder_blocks']

    x = x_slots.reshape(S * B, C)[:, None, :] + params['pos'][None, :, :]
    for blk in range(NB):
        mean = jnp.mean(x, axis=(1, 2), keepdims=True)
        var = jnp.mean((x - mean) ** 2, axis=(1, 2), keepdims=True)
        h = (x - mean) * jax.lax.rsqrt(var + 1e-5)
        h = h * params['ln_g'][blk][None] + params['ln_b'][blk][None]
        h2 = jnp.maximum(h.reshape(S * B * HW, C) @ params['w1'][blk]
                         + params['b1'][blk], 0.0)
        h2 = h2 @ params['w2'][blk] + params['b2'][blk]
        x = x + h2.reshape(S * B, HW, C)
    a = jnp.sum(x * params['wa'][None], axis=-1) + params['ba']      # (N, HW)
    p = jax.nn.softmax(a.reshape(S, B, HW), axis=0)
    comp = jnp.sum(p[..., None] * x.reshape(S, B, HW, C), axis=0)    # (B, HW, C)
    out = comp.reshape(B * HW, C) @ params['wo'] + params['bo']
    return out.reshape(B, HW, OC).transpose(0, 2, 1).reshape(B, OC, TH, TW)


# ---------------------------------------------------------------------------
# Deterministic synthetic parameters (no checkpoint)
# ---------------------------------------------------------------------------

def init_params(key, cfg):
    C = cfg['channels']
    R = cfg['residual_channels']
    OC = cfg['output_channels']
    NB = cfg['num_decoder_blocks']
    TH, TW = cfg['tile_shape']
    HW = TH * TW
    ws = cfg['weight_scalar']
    keys = iter(jax.random.split(key, 32))

    def nrm(shape, scale=0.02):
        return scale * jax.random.normal(next(keys), shape, dtype=jnp.float32)

    return dict(
        pos=nrm((HW, C), ws),            # torch shape (1, C, HW), stored transposed
        ln_g=jnp.ones((NB, HW, C), jnp.float32),
        ln_b=jnp.zeros((NB, HW, C), jnp.float32),
        w1=nrm((NB, C, R)), b1=nrm((NB, 1, R)),
        w2=nrm((NB, R, C)), b2=nrm((NB, 1, C)),
        wa=nrm((1, C)), ba=nrm((1, 1)),
        wo=nrm((C, OC)), bo=nrm((1, OC)),
    )


# ---------------------------------------------------------------------------
# Main
# ---------------------------------------------------------------------------

if __name__ == "__main__":
    cfg = dict(
        num_slots=8,
        channels=32,
        tile_shape=(4, 4),
        residual_channels=64,
        num_decoder_blocks=2,
        output_channels=8,
        weight_scalar=0.02,
        decoder_dropout=0.1,             # identity in eval mode
    )
    batch = 2

    key = jax.random.PRNGKey(0)
    pkey, xkey = jax.random.split(key)
    params = init_params(pkey, cfg)
    x = jax.random.normal(
        xkey, (cfg['num_slots'], batch, cfg['channels']), dtype=jnp.float32)

    fwd = jax.jit(functools.partial(decoder_forward, cfg=cfg))
    out = jax.block_until_ready(fwd(x, params))

    TH, TW = cfg['tile_shape']
    expected = (batch, cfg['output_channels'], TH, TW)
    assert out.shape == expected, (out.shape, expected)
    assert out.dtype == jnp.float32
    assert bool(jnp.all(jnp.isfinite(out)))

    ref = decoder_reference(x, params, cfg)
    max_err = float(jnp.max(jnp.abs(out - ref)))
    assert bool(jnp.allclose(out, ref, rtol=5e-2, atol=5e-3)), max_err

    print("KERNEL_OK")
</pallas_src>

<mosaic_0001>
module attributes {stable_mosaic.version = 11 : i64} {
  func.func @_decoder_kernel(%arg0: memref<16x32xf32, #tpu.memory_space<vmem>>, %arg1: memref<16x32xf32, #tpu.memory_space<vmem>>, %arg2: memref<2x16x32xf32, #tpu.memory_space<vmem>>, %arg3: memref<2x16x32xf32, #tpu.memory_space<vmem>>, %arg4: memref<2x32x64xf32, #tpu.memory_space<vmem>>, %arg5: memref<2x1x64xf32, #tpu.memory_space<vmem>>, %arg6: memref<2x64x32xf32, #tpu.memory_space<vmem>>, %arg7: memref<2x1x32xf32, #tpu.memory_space<vmem>>, %arg8: memref<1x32xf32, #tpu.memory_space<vmem>>, %arg9: memref<1x1xf32, #tpu.memory_space<vmem>>, %arg10: memref<32x8xf32, #tpu.memory_space<vmem>>, %arg11: memref<1x8xf32, #tpu.memory_space<vmem>>, %arg12: memref<32x8xf32, #tpu.memory_space<vmem>>) attributes {dimension_semantics = [], scalar_prefetch = 0 : i64, scratch_operands = 0 : i64, tpu.core_type = #tpu.core_type<tc>} {
    %c0 = arith.constant 0 : index
    %c0_0 = arith.constant 0 : index
    %0 = vector.load %arg0[%c0, %c0_0] : memref<16x32xf32, #tpu.memory_space<vmem>>, vector<16x32xf32>
    %1 = vector.shape_cast %0 : vector<16x32xf32> to vector<16x1x32xf32>
    %c0_1 = arith.constant 0 : index
    %c0_2 = arith.constant 0 : index
    %2 = vector.load %arg1[%c0_1, %c0_2] : memref<16x32xf32, #tpu.memory_space<vmem>>, vector<16x32xf32>
    %3 = vector.shape_cast %2 : vector<16x32xf32> to vector<1x16x32xf32>
    %4 = vector.broadcast %1 : vector<16x1x32xf32> to vector<16x16x32xf32>
    %5 = vector.broadcast %3 : vector<1x16x32xf32> to vector<16x16x32xf32>
    %6 = arith.addf %4, %5 : vector<16x16x32xf32>
    %c0_3 = arith.constant 0 : index
    %c0_4 = arith.constant 0 : index
    %c0_5 = arith.constant 0 : index
    %7 = vector.load %arg2[%c0_3, %c0_4, %c0_5] : memref<2x16x32xf32, #tpu.memory_space<vmem>>, vector<1x16x32xf32>
    %8 = vector.shape_cast %7 : vector<1x16x32xf32> to vector<16x32xf32>
    %c0_6 = arith.constant 0 : index
    %c0_7 = arith.constant 0 : index
    %c0_8 = arith.constant 0 : index
    %9 = vector.load %arg3[%c0_6, %c0_7, %c0_8] : memref<2x16x32xf32, #tpu.memory_space<vmem>>, vector<1x16x32xf32>
    %10 = vector.shape_cast %9 : vector<1x16x32xf32> to vector<16x32xf32>
    %cst = arith.constant dense<0.000000e+00> : vector<16x16xf32>
    %11 = vector.multi_reduction <add>, %6, %cst [2] : vector<16x16x32xf32> to vector<16x16xf32>
    %12 = vector.shape_cast %11 : vector<16x16xf32> to vector<16x16x1xf32>
    %cst_9 = arith.constant dense<0.000000e+00> : vector<16x1xf32>
    %13 = vector.multi_reduction <add>, %12, %cst_9 [1] : vector<16x16x1xf32> to vector<16x1xf32>
    %14 = vector.shape_cast %13 : vector<16x1xf32> to vector<16x1x1xf32>
    %cst_10 = arith.constant 0.001953125 : f32
    %15 = vector.broadcast %cst_10 : f32 to vector<16x1x1xf32>
    %16 = arith.mulf %14, %15 : vector<16x1x1xf32>
    %17 = vector.broadcast %16 : vector<16x1x1xf32> to vector<16x16x32xf32>
    %18 = arith.subf %6, %17 : vector<16x16x32xf32>
    %19 = arith.mulf %18, %18 : vector<16x16x32xf32>
    %cst_11 = arith.constant dense<0.000000e+00> : vector<16x16xf32>
    %20 = vector.multi_reduction <add>, %19, %cst_11 [2] : vector<16x16x32xf32> to vector<16x16xf32>
    %21 = vector.shape_cast %20 : vector<16x16xf32> to vector<16x16x1xf32>
    %cst_12 = arith.constant dense<0.000000e+00> : vector<16x1xf32>
    %22 = vector.multi_reduction <add>, %21, %cst_12 [1] : vector<16x16x1xf32> to vector<16x1xf32>
    %23 = vector.shape_cast %22 : vector<16x1xf32> to vector<16x1x1xf32>
    %cst_13 = arith.constant 0.001953125 : f32
    %24 = vector.broadcast %cst_13 : f32 to vector<16x1x1xf32>
    %25 = arith.mulf %23, %24 : vector<16x1x1xf32>
    %cst_14 = arith.constant 9.99999974E-6 : f32
    %26 = vector.broadcast %cst_14 : f32 to vector<16x1x1xf32>
    %27 = arith.addf %25, %26 : vector<16x1x1xf32>
    %28 = math.rsqrt %27 : vector<16x1x1xf32>
    %29 = vector.broadcast %28 : vector<16x1x1xf32> to vector<16x16x32xf32>
    %30 = arith.mulf %18, %29 : vector<16x16x32xf32>
    %31 = vector.shape_cast %8 : vector<16x32xf32> to vector<1x16x32xf32>
    %32 = vector.broadcast %31 : vector<1x16x32xf32> to vector<16x16x32xf32>
    %33 = arith.mulf %30, %32 : vector<16x16x32xf32>
    %34 = vector.shape_cast %10 : vector<16x32xf32> to vector<1x16x32xf32>
    %35 = vector.broadcast %34 : vector<1x16x32xf32> to vector<16x16x32xf32>
    %36 = arith.addf %33, %35 : vector<16x16x32xf32>
    %37 = vector.shape_cast %36 : vector<16x16x32xf32> to vector<256x32xf32>
    %c0_15 = arith.constant 0 : index
    %c0_16 = arith.constant 0 : index
    %c0_17 = arith.constant 0 : index
    %38 = vector.load %arg4[%c0_15, %c0_16, %c0_17] : memref<2x32x64xf32, #tpu.memory_space<vmem>>, vector<1x32x64xf32>
    %39 = vector.shape_cast %38 : vector<1x32x64xf32> to vector<32x64xf32>
    %cst_18 = arith.constant dense<0.000000e+00> : vector<256x64xf32>
    %40 = tpu.matmul %37, %39, %cst_18 {dimension_numbers = #tpu.dot_dimension_numbers<[1], [0], [0], [1], [0, 0, 1, 1], [], []>} : vector<256x32xf32>, vector<32x64xf32>, vector<256x64xf32> -> vector<256x64xf32>
    %c0_19 = arith.constant 0 : index
    %c0_20 = arith.constant 0 : index
    %c0_21 = arith.constant 0 : index
    %41 = vector.load %arg5[%c0_19, %c0_20, %c0_21] : memref<2x1x64xf32, #tpu.memory_space<vmem>>, vector<1x1x64xf32>
    %42 = vector.shape_cast %41 : vector<1x1x64xf32> to vector<1x64xf32>
    %43 = vector.broadcast %42 : vector<1x64xf32> to vector<256x64xf32>
    %44 = arith.addf %40, %43 : vector<256x64xf32>
    %cst_22 = arith.constant 0.000000e+00 : f32
    %45 = vector.broadcast %cst_22 : f32 to vector<256x64xf32>
    %46 = arith.maximumf %44, %45 : vector<256x64xf32>
    %c0_23 = arith.constant 0 : index
    %c0_24 = arith.constant 0 : index
    %c0_25 = arith.constant 0 : index
    %47 = vector.load %arg6[%c0_23, %c0_24, %c0_25] : memref<2x64x32xf32, #tpu.memory_space<vmem>>, vector<1x64x32xf32>
    %48 = vector.shape_cast %47 : vector<1x64x32xf32> to vector<64x32xf32>
    %cst_26 = arith.constant dense<0.000000e+00> : vector<256x32xf32>
    %49 = tpu.matmul %46, %48, %cst_26 {dimension_numbers = #tpu.dot_dimension_numbers<[1], [0], [0], [1], [0, 0, 1, 1], [], []>} : vector<256x64xf32>, vector<64x32xf32>, vector<256x32xf32> -> vector<256x32xf32>
    %c0_27 = arith.constant 0 : index
    %c0_28 = arith.constant 0 : index
    %c0_29 = arith.constant 0 : index
    %50 = vector.load %arg7[%c0_27, %c0_28, %c0_29] : memref<2x1x32xf32, #tpu.memory_space<vmem>>, vector<1x1x32xf32>
    %51 = vector.shape_cast %50 : vector<1x1x32xf32> to vector<1x32xf32>
    %52 = vector.broadcast %51 : vector<1x32xf32> to vector<256x32xf32>
    %53 = arith.addf %49, %52 : vector<256x32xf32>
    %54 = vector.shape_cast %53 : vector<256x32xf32> to vector<16x16x32xf32>
    %55 = arith.addf %6, %54 : vector<16x16x32xf32>
    %c1 = arith.constant 1 : index
    %c0_30 = arith.constant 0 : index
    %c0_31 = arith.constant 0 : index
    %56 = vector.load %arg2[%c1, %c0_30, %c0_31] : memref<2x16x32xf32, #tpu.memory_space<vmem>>, vector<1x16x32xf32>
    %57 = vector.shape_cast %56 : vector<1x16x32xf32> to vector<16x32xf32>
    %c1_32 = arith.constant 1 : index
    %c0_33 = arith.constant 0 : index
    %c0_34 = arith.constant 0 : index
    %58 = vector.load %arg3[%c1_32, %c0_33, %c0_34] : memref<2x16x32xf32, #tpu.memory_space<vmem>>, vector<1x16x32xf32>
    %59 = vector.shape_cast %58 : vector<1x16x32xf32> to vector<16x32xf32>
    %cst_35 = arith.constant dense<0.000000e+00> : vector<16x16xf32>
    %60 = vector.multi_reduction <add>, %55, %cst_35 [2] : vector<16x16x32xf32> to vector<16x16xf32>
    %61 = vector.shape_cast %60 : vector<16x16xf32> to vector<16x16x1xf32>
    %cst_36 = arith.constant dense<0.000000e+00> : vector<16x1xf32>
    %62 = vector.multi_reduction <add>, %61, %cst_36 [1] : vector<16x16x1xf32> to vector<16x1xf32>
    %63 = vector.shape_cast %62 : vector<16x1xf32> to vector<16x1x1xf32>
    %cst_37 = arith.constant 0.001953125 : f32
    %64 = vector.broadcast %cst_37 : f32 to vector<16x1x1xf32>
    %65 = arith.mulf %63, %64 : vector<16x1x1xf32>
    %66 = vector.broadcast %65 : vector<16x1x1xf32> to vector<16x16x32xf32>
    %67 = arith.subf %55, %66 : vector<16x16x32xf32>
    %68 = arith.mulf %67, %67 : vector<16x16x32xf32>
    %cst_38 = arith.constant dense<0.000000e+00> : vector<16x16xf32>
    %69 = vector.multi_reduction <add>, %68, %cst_38 [2] : vector<16x16x32xf32> to vector<16x16xf32>
    %70 = vector.shape_cast %69 : vector<16x16xf32> to vector<16x16x1xf32>
    %cst_39 = arith.constant dense<0.000000e+00> : vector<16x1xf32>
    %71 = vector.multi_reduction <add>, %70, %cst_39 [1] : vector<16x16x1xf32> to vector<16x1xf32>
    %72 = vector.shape_cast %71 : vector<16x1xf32> to vector<16x1x1xf32>
    %cst_40 = arith.constant 0.001953125 : f32
    %73 = vector.broadcast %cst_40 : f32 to vector<16x1x1xf32>
    %74 = arith.mulf %72, %73 : vector<16x1x1xf32>
    %cst_41 = arith.constant 9.99999974E-6 : f32
    %75 = vector.broadcast %cst_41 : f32 to vector<16x1x1xf32>
    %76 = arith.addf %74, %75 : vector<16x1x1xf32>
    %77 = math.rsqrt %76 : vector<16x1x1xf32>
    %78 = vector.broadcast %77 : vector<16x1x1xf32> to vector<16x16x32xf32>
    %79 = arith.mulf %67, %78 : vector<16x16x32xf32>
    %80 = vector.shape_cast %57 : vector<16x32xf32> to vector<1x16x32xf32>
    %81 = vector.broadcast %80 : vector<1x16x32xf32> to vector<16x16x32xf32>
    %82 = arith.mulf %79, %81 : vector<16x16x32xf32>
    %83 = vector.shape_cast %59 : vector<16x32xf32> to vector<1x16x32xf32>
    %84 = vector.broadcast %83 : vector<1x16x32xf32> to vector<16x16x32xf32>
    %85 = arith.addf %82, %84 : vector<16x16x32xf32>
    %86 = vector.shape_cast %85 : vector<16x16x32xf32> to vector<256x32xf32>
    %c1_42 = arith.constant 1 : index
    %c0_43 = arith.constant 0 : index
    %c0_44 = arith.constant 0 : index
    %87 = vector.load %arg4[%c1_42, %c0_43, %c0_44] : memref<2x32x64xf32, #tpu.memory_space<vmem>>, vector<1x32x64xf32>
    %88 = vector.shape_cast %87 : vector<1x32x64xf32> to vector<32x64xf32>
    %cst_45 = arith.constant dense<0.000000e+00> : vector<256x64xf32>
    %89 = tpu.matmul %86, %88, %cst_45 {dimension_numbers = #tpu.dot_dimension_numbers<[1], [0], [0], [1], [0, 0, 1, 1], [], []>} : vector<256x32xf32>, vector<32x64xf32>, vector<256x64xf32> -> vector<256x64xf32>
    %c1_46 = arith.constant 1 : index
    %c0_47 = arith.constant 0 : index
    %c0_48 = arith.constant 0 : index
    %90 = vector.load %arg5[%c1_46, %c0_47, %c0_48] : memref<2x1x64xf32, #tpu.memory_space<vmem>>, vector<1x1x64xf32>
    %91 = vector.shape_cast %90 : vector<1x1x64xf32> to vector<1x64xf32>
    %92 = vector.broadcast %91 : vector<1x64xf32> to vector<256x64xf32>
    %93 = arith.addf %89, %92 : vector<256x64xf32>
    %cst_49 = arith.constant 0.000000e+00 : f32
    %94 = vector.broadcast %cst_49 : f32 to vector<256x64xf32>
    %95 = arith.maximumf %93, %94 : vector<256x64xf32>
    %c1_50 = arith.constant 1 : index
    %c0_51 = arith.constant 0 : index
    %c0_52 = arith.constant 0 : index
    %96 = vector.load %arg6[%c1_50, %c0_51, %c0_52] : memref<2x64x32xf32, #tpu.memory_space<vmem>>, vector<1x64x32xf32>
    %97 = vector.shape_cast %96 : vector<1x64x32xf32> to vector<64x32xf32>
    %cst_53 = arith.constant dense<0.000000e+00> : vector<256x32xf32>
    %98 = tpu.matmul %95, %97, %cst_53 {dimension_numbers = #tpu.dot_dimension_numbers<[1], [0], [0], [1], [0, 0, 1, 1], [], []>} : vector<256x64xf32>, vector<64x32xf32>, vector<256x32xf32> -> vector<256x32xf32>
    %c1_54 = arith.constant 1 : index
    %c0_55 = arith.constant 0 : index
    %c0_56 = arith.constant 0 : index
    %99 = vector.load %arg7[%c1_54, %c0_55, %c0_56] : memref<2x1x32xf32, #tpu.memory_space<vmem>>, vector<1x1x32xf32>
    %100 = vector.shape_cast %99 : vector<1x1x32xf32> to vector<1x32xf32>
    %101 = vector.broadcast %100 : vector<1x32xf32> to vector<256x32xf32>
    %102 = arith.addf %98, %101 : vector<256x32xf32>
    %103 = vector.shape_cast %102 : vector<256x32xf32> to vector<16x16x32xf32>
    %104 = arith.addf %55, %103 : vector<16x16x32xf32>
    %c0_57 = arith.constant 0 : index
    %c0_58 = arith.constant 0 : index
    %105 = vector.load %arg8[%c0_57, %c0_58] : memref<1x32xf32, #tpu.memory_space<vmem>>, vector<1x32xf32>
    %106 = vector.shape_cast %105 : vector<1x32xf32> to vector<1x1x32xf32>
    %107 = vector.broadcast %106 : vector<1x1x32xf32> to vector<16x16x32xf32>
    %108 = arith.mulf %104, %107 : vector<16x16x32xf32>
    %cst_59 = arith.constant dense<0.000000e+00> : vector<16x16xf32>
    %109 = vector.multi_reduction <add>, %108, %cst_59 [2] : vector<16x16x32xf32> to vector<16x16xf32>
    %c0_60 = arith.constant 0 : index
    %c0_61 = arith.constant 0 : index
    %110 = vector.load %arg9[%c0_60, %c0_61] : memref<1x1xf32, #tpu.memory_space<vmem>>, vector<1x1xf32>
    %111 = vector.broadcast %110 : vector<1x1xf32> to vector<16x16xf32>
    %112 = arith.addf %109, %111 : vector<16x16xf32>
    %113 = vector.extract_strided_slice %112 {offsets = [0, 0], sizes = [2, 16], strides = [1, 1]} : vector<16x16xf32> to vector<2x16xf32>
    %114 = vector.extract_strided_slice %112 {offsets = [2, 0], sizes = [2, 16], strides = [1, 1]} : vector<16x16xf32> to vector<2x16xf32>
    %115 = vector.extract_strided_slice %112 {offsets = [4, 0], sizes = [2, 16], strides = [1, 1]} : vector<16x16xf32> to vector<2x16xf32>
    %116 = vector.extract_strided_slice %112 {offsets = [6, 0], sizes = [2, 16], strides = [1, 1]} : vector<16x16xf32> to vector<2x16xf32>
    %117 = vector.extract_strided_slice %112 {offsets = [8, 0], sizes = [2, 16], strides = [1, 1]} : vector<16x16xf32> to vector<2x16xf32>
    %118 = vector.extract_strided_slice %112 {offsets = [10, 0], sizes = [2, 16], strides = [1, 1]} : vector<16x16xf32> to vector<2x16xf32>
    %119 = vector.extract_strided_slice %112 {offsets = [12, 0], sizes = [2, 16], strides = [1, 1]} : vector<16x16xf32> to vector<2x16xf32>
    %120 = vector.extract_strided_slice %112 {offsets = [14, 0], sizes = [2, 16], strides = [1, 1]} : vector<16x16xf32> to vector<2x16xf32>
    %121 = arith.maximumf %113, %114 : vector<2x16xf32>
    %122 = arith.maximumf %121, %115 : vector<2x16xf32>
    %123 = arith.maximumf %122, %116 : vector<2x16xf32>
    %124 = arith.maximumf %123, %117 : vector<2x16xf32>
    %125 = arith.maximumf %124, %118 : vector<2x16xf32>
    %126 = arith.maximumf %125, %119 : vector<2x16xf32>
    %127 = arith.maximumf %126, %120 : vector<2x16xf32>
    %128 = arith.subf %113, %127 : vector<2x16xf32>
    %129 = math.exp %128 : vector<2x16xf32>
    %130 = arith.subf %114, %127 : vector<2x16xf32>
    %131 = math.exp %130 : vector<2x16xf32>
    %132 = arith.subf %115, %127 : vector<2x16xf32>
    %133 = math.exp %132 : vector<2x16xf32>
    %134 = arith.subf %116, %127 : vector<2x16xf32>
    %135 = math.exp %134 : vector<2x16xf32>
    %136 = arith.subf %117, %127 : vector<2x16xf32>
    %137 = math.exp %136 : vector<2x16xf32>
    %138 = arith.subf %118, %127 : vector<2x16xf32>
    %139 = math.exp %138 : vector<2x16xf32>
    %140 = arith.subf %119, %127 : vector<2x16xf32>
    %141 = math.exp %140 : vector<2x16xf32>
    %142 = arith.subf %120, %127 : vector<2x16xf32>
    %143 = math.exp %142 : vector<2x16xf32>
    %144 = arith.addf %129, %131 : vector<2x16xf32>
    %145 = arith.addf %144, %133 : vector<2x16xf32>
    %146 = arith.addf %145, %135 : vector<2x16xf32>
    %147 = arith.addf %146, %137 : vector<2x16xf32>
    %148 = arith.addf %147, %139 : vector<2x16xf32>
    %149 = arith.addf %148, %141 : vector<2x16xf32>
    %150 = arith.addf %149, %143 : vector<2x16xf32>
    %151 = tpu.reciprocal %150 {approx = true} : vector<2x16xf32> -> vector<2x16xf32>
    %152 = arith.mulf %129, %151 : vector<2x16xf32>
    %153 = vector.shape_cast %152 : vector<2x16xf32> to vector<2x16x1xf32>
    %154 = vector.extract_strided_slice %104 {offsets = [0, 0, 0], sizes = [2, 16, 32], strides = [1, 1, 1]} : vector<16x16x32xf32> to vector<2x16x32xf32>
    %155 = vector.broadcast %153 : vector<2x16x1xf32> to vector<2x16x32xf32>
    %156 = arith.mulf %155, %154 : vector<2x16x32xf32>
    %157 = arith.mulf %131, %151 : vector<2x16xf32>
    %158 = vector.shape_cast %157 : vector<2x16xf32> to vector<2x16x1xf32>
    %159 = vector.extract_strided_slice %104 {offsets = [2, 0, 0], sizes = [2, 16, 32], strides = [1, 1, 1]} : vector<16x16x32xf32> to vector<2x16x32xf32>
    %160 = vector.broadcast %158 : vector<2x16x1xf32> to vector<2x16x32xf32>
    %161 = arith.mulf %160, %159 : vector<2x16x32xf32>
    %162 = arith.addf %156, %161 : vector<2x16x32xf32>
    %163 = arith.mulf %133, %151 : vector<2x16xf32>
    %164 = vector.shape_cast %163 : vector<2x16xf32> to vector<2x16x1xf32>
    %165 = vector.extract_strided_slice %104 {offsets = [4, 0, 0], sizes = [2, 16, 32], strides = [1, 1, 1]} : vector<16x16x32xf32> to vector<2x16x32xf32>
    %166 = vector.broadcast %164 : vector<2x16x1xf32> to vector<2x16x32xf32>
    %167 = arith.mulf %166, %165 : vector<2x16x32xf32>
    %168 = arith.addf %162, %167 : vector<2x16x32xf32>
    %169 = arith.mulf %135, %151 : vector<2x16xf32>
    %170 = vector.shape_cast %169 : vector<2x16xf32> to vector<2x16x1xf32>
    %171 = vector.extract_strided_slice %104 {offsets = [6, 0, 0], sizes = [2, 16, 32], strides = [1, 1, 1]} : vector<16x16x32xf32> to vector<2x16x32xf32>
    %172 = vector.broadcast %170 : vector<2x16x1xf32> to vector<2x16x32xf32>
    %173 = arith.mulf %172, %171 : vector<2x16x32xf32>
    %174 = arith.addf %168, %173 : vector<2x16x32xf32>
    %175 = arith.mulf %137, %151 : vector<2x16xf32>
    %176 = vector.shape_cast %175 : vector<2x16xf32> to vector<2x16x1xf32>
    %177 = vector.extract_strided_slice %104 {offsets = [8, 0, 0], sizes = [2, 16, 32], strides = [1, 1, 1]} : vector<16x16x32xf32> to vector<2x16x32xf32>
    %178 = vector.broadcast %176 : vector<2x16x1xf32> to vector<2x16x32xf32>
    %179 = arith.mulf %178, %177 : vector<2x16x32xf32>
    %180 = arith.addf %174, %179 : vector<2x16x32xf32>
    %181 = arith.mulf %139, %151 : vector<2x16xf32>
    %182 = vector.shape_cast %181 : vector<2x16xf32> to vector<2x16x1xf32>
    %183 = vector.extract_strided_slice %104 {offsets = [10, 0, 0], sizes = [2, 16, 32], strides = [1, 1, 1]} : vector<16x16x32xf32> to vector<2x16x32xf32>
    %184 = vector.broadcast %182 : vector<2x16x1xf32> to vector<2x16x32xf32>
    %185 = arith.mulf %184, %183 : vector<2x16x32xf32>
    %186 = arith.addf %180, %185 : vector<2x16x32xf32>
    %187 = arith.mulf %141, %151 : vector<2x16xf32>
    %188 = vector.shape_cast %187 : vector<2x16xf32> to vector<2x16x1xf32>
    %189 = vector.extract_strided_slice %104 {offsets = [12, 0, 0], sizes = [2, 16, 32], strides = [1, 1, 1]} : vector<16x16x32xf32> to vector<2x16x32xf32>
    %190 = vector.broadcast %188 : vector<2x16x1xf32> to vector<2x16x32xf32>
    %191 = arith.mulf %190, %189 : vector<2x16x32xf32>
    %192 = arith.addf %186, %191 : vector<2x16x32xf32>
    %193 = arith.mulf %143, %151 : vector<2x16xf32>
    %194 = vector.shape_cast %193 : vector<2x16xf32> to vector<2x16x1xf32>
    %195 = vector.extract_strided_slice %104 {offsets = [14, 0, 0], sizes = [2, 16, 32], strides = [1, 1, 1]} : vector<16x16x32xf32> to vector<2x16x32xf32>
    %196 = vector.broadcast %194 : vector<2x16x1xf32> to vector<2x16x32xf32>
    %197 = arith.mulf %196, %195 : vector<2x16x32xf32>
    %198 = arith.addf %192, %197 : vector<2x16x32xf32>
    %199 = vector.shape_cast %198 : vector<2x16x32xf32> to vector<32x32xf32>
    %c0_62 = arith.constant 0 : index
    %c0_63 = arith.constant 0 : index
    %200 = vector.load %arg10[%c0_62, %c0_63] : memref<32x8xf32, #tpu.memory_space<vmem>>, vector<32x8xf32>
    %cst_64 = arith.constant dense<0.000000e+00> : vector<32x8xf32>
    %201 = tpu.matmul %199, %200, %cst_64 {dimension_numbers = #tpu.dot_dimension_numbers<[1], [0], [0], [1], [0, 0, 1, 1], [], []>} : vector<32x32xf32>, vector<32x8xf32>, vector<32x8xf32> -> vector<32x8xf32>
    %c0_65 = arith.constant 0 : index
    %c0_66 = arith.constant 0 : index
    %202 = vector.load %arg11[%c0_65, %c0_66] : memref<1x8xf32, #tpu.memory_space<vmem>>, vector<1x8xf32>
    %203 = vector.broadcast %202 : vector<1x8xf32> to vector<32x8xf32>
    %204 = arith.addf %201, %203 : vector<32x8xf32>
    %c0_67 = arith.constant 0 : index
    %c0_68 = arith.constant 0 : index
    %205 = vector.load %arg12[%c0_67, %c0_68] : memref<32x8xf32, #tpu.memory_space<vmem>>, vector<32x8xf32>
    tpu.vector_store %arg12[%c0_67, %c0_68], %204 {strides = array<i32>} : memref<32x8xf32, #tpu.memory_space<vmem>>, vector<32x8xf32>,
    return
  }
}

</mosaic_0001>

<bundles_post_ra>
// kernel: decoder_forward.1
= control target key start
LH: loop header
LB: loop body
LE: loop exit
PB: predicated region body
PF: predicated region fallthrough
CT: control target
= control target key end

     0   :  { %s6321_s0 = inlined_call_operand.vmem [shape: f32[16,32], index: 0, kind: input, shape index: {}]   ;;  %s6322_s1 = inlined_call_operand.vmem [shape: f32[16,32], index: 1, kind: input, shape index: {}]   ;;  %s6323_s2 = inlined_call_operand.vmem [shape: f32[2,16,32], index: 2, kind: input, shape index: {}]   ;;  %s6324_s3 = inlined_call_operand.vmem [shape: f32[2,16,32], index: 3, kind: input, shape index: {}]   ;;  %s6325_s4 = inlined_call_operand.vmem [shape: f32[2,32,64], index: 4, kind: input, shape index: {}]   ;;  %s6326_s5 = inlined_call_operand.vmem [shape: f32[2,1,64], index: 5, kind: input, shape index: {}]   ;;  %s6327_s6 = inlined_call_operand.vmem [shape: f32[2,64,32], index: 6, kind: input, shape index: {}]   ;;  %s6328_s7 = inlined_call_operand.vmem [shape: f32[2,1,32], index: 7, kind: input, shape index: {}]   ;;  %s6329_s8 = inlined_call_operand.vmem [shape: f32[1,32], index: 8, kind: input, shape index: {}]   ;;  %s6330_s9 = inlined_call_operand.<no memory space> [shape: f32[1,1], index: 9, kind: input, shape index: {}]   ;;  %s6331_s10 = inlined_call_operand.vmem [shape: f32[32,8], index: 10, kind: input, shape index: {}]   ;;  %s6332_s11 = inlined_call_operand.vmem [shape: f32[1,8], index: 11, kind: input, shape index: {}]   ;;  %s6333_s12 = inlined_call_operand.hbm [shape: f32[32,8], index: 12, kind: output, shape index: {}]  }
   0x1   :  { %v17_v0 = vstv %s6330_s9 }
   0x2   :  { %18 = vst [vmem:[#allocation2] sm:$0x1] %v17_v0 }
   0x3   :  { %v52_v1 = vlaneseq  ;;  %v4369_v2 = vmov 1966171168  }
   0x4   :  { %v50_v3 = vunpack.c.l.s4 %v4369_v2 }
   0x5   :  { %19 = vsyncpa [#allocation4], 0  ;;  %v53_v4 = vshrl.u32 %v52_v1, 7  ;;  %v44_v6 = vld [vmem:[%s6321_s0] sm:$0xff]  ;;  %v4459_v14 = vld [vmem:[%s6322_s1 + $0x8] sm:$0xff]  ;;  %vm264_vm0 = vcmask 261120  }
   0x6   :  { %v51_v5 = vunpack.c.0.s8 %v50_v3  ;;  %v48_v10 = vcombine.high %v44_v6, %v44_v6  ;;  %v4454_v13 = vld [vmem:[%s6322_s1] sm:$0xff]  ;;  %v45_v45 = vld [vmem:[%s6321_s0 + $0x8] sm:$0xff]  ;;  %vm1284_vm1 = vcmask 523264   ;;  %vm3553_vm2 = vcmask 64512   ;;  %s4371_s22 = smov [#allocation3]  }
   0x7   :  { %v4448_v9 = vsub.s32 0, %v53_v4  ;;  %s3563_s23 = sshll.u32 %s4371_s22, 4  ;;  %s3564_s23 = int_to_ptr.vmem [resolvable:$true] %s3563_s23 }
   0x8   :  { %v4445_v7 = vsub.s32 %v51_v5, %v53_v4  ;;  %v97_v4 = vcombine.high %v45_v45, %v45_v45  ;;  %s4345_s24 = scalar_lea.vmem %s3564_s23, 512  ;;  %p4350_p1 = scmp.lt.s32.totalorder %s3564_s23, %s3564_s23 }
   0x9   :  { %p4346_p0 = scmp.ne.s32.totalorder %s3564_s23, %s4345_s24  ;;  %p4351_p2 = scmp.lt.s32.totalorder %s4345_s24, %s4345_s24 }
   0xa   :  { %v55_v8 = vrot.slane %v44_v6, %v4445_v7  ;;  %v62_v18 = vrot.slane %v48_v10, %v4445_v7  ;;  %v104_v48 = vrot.slane %v45_v45, %v4445_v7 }
   0xb   :  { %p4352_p3 = por %p4351_p2, %p4350_p1 }
   0xc   :  { %v71_v11 = vrot.slane %v55_v8, %v4445_v7  ;;  %v63_v12 = vcombine.high %v55_v8, %v55_v8  ;;  %v78_v27 = vrot.slane %v62_v18, %v4445_v7  ;;  %v64_v28 = vcombine.high %v62_v18, %v62_v18 }
   0xd   :  { %v120_v55 = vrot.slane %v104_v48, %v4445_v7  ;;  %v112_v59 = vcombine.high %v104_v48, %v104_v48  ;;  %p4353_p4 = pnand %p4352_p3, %p4346_p0 }
   0xe   :  { %v151_v15 = vrot.slane %v71_v11, %v4448_v9  ;;  %v85_v16 = vrot.slane %v63_v12, %v4445_v7  ;;  %v93_v17 = vcombine.high %v71_v11, %v71_v11  ;;  %v167_v37 = vrot.slane %v78_v27, %v4448_v9 }
   0xf   :  { %v92_v38 = vrot.slane %v64_v28, %v4445_v7  ;;  %v94_v44 = vcombine.high %v78_v27, %v78_v27  ;;  %v183_v0 = vrot.slane %v120_v55, %v4448_v9  ;;  %v134_v1 = vrot.slane %v112_v59, %v4445_v7 }
  0x10   :  { %v4465_v19 = vadd.f32 %v151_v15, %v4454_v13  ;;  %v155_v20 = vrot.slane %v85_v16, %v4448_v9  ;;  %v4469_v21 = vadd.f32 %v151_v15, %v4459_v14  ;;  %v159_v22 = vrot.slane %v93_v17, %v4448_v9 }
  0x11   :  { %v95_v23 = vcombine.high %v85_v16, %v85_v16  ;;  %v4509_v42 = vadd.f32 %v167_v37, %v4454_v13  ;;  %v171_v43 = vrot.slane %v92_v38, %v4448_v9  ;;  %v4518_v47 = vadd.f32 %v167_v37, %v4459_v14 }
  0x12   :  { %v265_v24 = vsel %vm264_vm0, %v4465_v19, 0.0  ;;  %v4475_v25 = vadd.f32 %v155_v20, %v4454_v13  ;;  %v4478_v26 = vadd.f32 %v155_v20, %v4459_v14  ;;  %v268_v30 = vsel %vm264_vm0, %v4469_v21, 0.0 }
  0x13   :  { %266 = vadd.xlane.f32.xlu0 %v265_v24  ;;  %v4486_v31 = vadd.f32 %v159_v22, %v4454_v13  ;;  %v163_v32 = vrot.slane %v95_v23, %v4448_v9  ;;  %v4492_v34 = vadd.f32 %v159_v22, %v4459_v14  ;;  %6412 = vst [vmem:[#allocation11_spill] sm:$0xff] %v4509_v42  ;;  %6413 = vst [vmem:[#allocation12_spill] sm:$0xff] %v4518_v47 }
  0x14   :  { %6407 = vst [vmem:[#allocation6_spill] sm:$0xff] %v4475_v25  ;;  %v271_v29 = vsel %vm264_vm0, %v4475_v25, 0.0  ;;  %v274_v33 = vsel %vm264_vm0, %v4478_v26, 0.0  ;;  %v289_v49 = vsel %vm264_vm0, %v4509_v42, 0.0  ;;  %v4524_v50 = vadd.f32 %v171_v43, %v4454_v13 }
  0x15   :  { %6408 = vst [vmem:[#allocation7_spill] sm:$0xff] %v4486_v31  ;;  %272 = vadd.xlane.f32.xlu1 %v271_v29  ;;  %6409 = vst [vmem:[#allocation8_spill] sm:$0xff] %v4492_v34  ;;  %v277_v35 = vsel %vm264_vm0, %v4486_v31, 0.0  ;;  %v4497_v36 = vadd.f32 %v163_v32, %v4454_v13  ;;  %v280_v39 = vsel %vm264_vm0, %v4492_v34, 0.0  ;;  %v4504_v40 = vadd.f32 %v163_v32, %v4459_v14 }
  0x16   :  { %6414 = vst [vmem:[#allocation13_spill] sm:$0xff] %v4524_v50  ;;  %v175_v51 = vrot.slane %v94_v44, %v4448_v9  ;;  %v96_v52 = vcombine.high %v92_v38, %v92_v38  ;;  %v292_v53 = vsel %vm264_vm0, %v4518_v47, 0.0  ;;  %v4530_v54 = vadd.f32 %v171_v43, %v4459_v14 }
  0x17   :  { %269 = vadd.xlane.f32.xlu0 %v268_v30  ;;  %6410 = vst [vmem:[#allocation9_spill] sm:$0xff] %v4497_v36  ;;  %6411 = vst [vmem:[#allocation10_spill] sm:$0xff] %v4504_v40  ;;  %v283_v41 = vsel %vm264_vm0, %v4497_v36, 0.0  ;;  %v286_v46 = vsel %vm264_vm0, %v4504_v40, 0.0  ;;  %v295_v56 = vsel %vm264_vm0, %v4524_v50, 0.0  ;;  %v4559_v6 = vadd.f32 %v183_v0, %v4454_v13 }
  0x18   :  { %6415 = vst [vmem:[#allocation14_spill] sm:$0xff] %v4530_v54  ;;  %v4536_v57 = vadd.f32 %v175_v51, %v4454_v13  ;;  %v179_v58 = vrot.slane %v96_v52, %v4448_v9  ;;  %v298_v60 = vsel %vm264_vm0, %v4530_v54, 0.0  ;;  %v4542_v61 = vadd.f32 %v175_v51, %v4459_v14 }
  0x19   :  { %275 = vadd.xlane.f32.xlu1 %v274_v33  ;;  %6420 = vst [vmem:[#allocation19_spill] sm:$0xff] %v4559_v6  ;;  %v187_v8 = vrot.slane %v134_v1, %v4448_v9  ;;  %v142_v10 = vcombine.high %v120_v55, %v120_v55  ;;  %v4565_v12 = vadd.f32 %v183_v0, %v4459_v14  ;;  %v313_v16 = vsel %vm264_vm0, %v4559_v6, 0.0 }
  0x1a   :  { %6416 = vst [vmem:[#allocation15_spill] sm:$0xff] %v4536_v57  ;;  %6417 = vst [vmem:[#allocation16_spill] sm:$0xff] %v4542_v61  ;;  %v301_v62 = vsel %vm264_vm0, %v4536_v57, 0.0  ;;  %v4547_v63 = vadd.f32 %v179_v58, %v4454_v13  ;;  %v304_v2 = vsel %vm264_vm0, %v4542_v61, 0.0  ;;  %v4554_v3 = vadd.f32 %v179_v58, %v4459_v14 }
  0x1b   :  { %278 = vadd.xlane.f32.xlu0 %v277_v35  ;;  %6421 = vst [vmem:[#allocation20_spill] sm:$0xff] %v4565_v12  ;;  %v111_v15 = vrot.slane %v97_v4, %v4445_v7  ;;  %v4571_v17 = vadd.f32 %v187_v8, %v4454_v13  ;;  %v191_v18 = vrot.slane %v142_v10, %v4448_v9  ;;  %v316_v22 = vsel %vm264_vm0, %v4565_v12, 0.0 }
  0x1c   :  { %6418 = vst [vmem:[#allocation17_spill] sm:$0xff] %v4547_v63  ;;  %6419 = vst [vmem:[#allocation18_spill] sm:$0xff] %v4554_v3  ;;  %v307_v5 = vsel %vm264_vm0, %v4547_v63, 0.0  ;;  %v310_v11 = vsel %vm264_vm0, %v4554_v3, 0.0  ;;  %v144_v20 = vcombine.high %v134_v1, %v134_v1  ;;  %v4577_v23 = vadd.f32 %v187_v8, %v4459_v14 }
  0x1d   :  { %281 = vadd.xlane.f32.xlu1 %v280_v39  ;;  %6422 = vst [vmem:[#allocation21_spill] sm:$0xff] %v4571_v17  ;;  %v127_v24 = vrot.slane %v111_v15, %v4445_v7  ;;  %v319_v27 = vsel %vm264_vm0, %v4571_v17, 0.0  ;;  %v4583_v28 = vadd.f32 %v191_v18, %v4454_v13  ;;  %v113_v30 = vcombine.high %v111_v15, %v111_v15 }
  0x1e   :  { %6423 = vst [vmem:[#allocation22_spill] sm:$0xff] %v4577_v23  ;;  %v195_v29 = vrot.slane %v144_v20, %v4448_v9  ;;  %v322_v32 = vsel %vm264_vm0, %v4577_v23, 0.0  ;;  %v4589_v33 = vadd.f32 %v191_v18, %v4459_v14 }
  0x1f   :  { %284 = vadd.xlane.f32.xlu0 %v283_v41  ;;  %6424 = vst [vmem:[#allocation23_spill] sm:$0xff] %v4583_v28  ;;  %v325_v35 = vsel %vm264_vm0, %v4583_v28, 0.0  ;;  %v199_v38 = vrot.slane %v127_v24, %v4448_v9  ;;  %v141_v39 = vrot.slane %v113_v30, %v4445_v7  ;;  %v143_v48 = vcombine.high %v127_v24, %v127_v24 }
  0x20   :  { %6425 = vst [vmem:[#allocation24_spill] sm:$0xff] %v4589_v33  ;;  %v4594_v37 = vadd.f32 %v195_v29, %v4454_v13  ;;  %v328_v41 = vsel %vm264_vm0, %v4589_v33, 0.0  ;;  %v4601_v43 = vadd.f32 %v195_v29, %v4459_v14 }
  0x21   :  { %287 = vadd.xlane.f32.xlu1 %v286_v46  ;;  %v4606_v45 = vadd.f32 %v199_v38, %v4454_v13  ;;  %v203_v46 = vrot.slane %v141_v39, %v4448_v9  ;;  %v145_v55 = vcombine.high %v141_v39, %v141_v39 }
  0x22   :  { %6426 = vst [vmem:[#allocation25_spill] sm:$0xff] %v4594_v37  ;;  %6427 = vst [vmem:[#allocation26_spill] sm:$0xff] %v4601_v43  ;;  %v331_v44 = vsel %vm264_vm0, %v4594_v37, 0.0  ;;  %v334_v7 = vsel %vm264_vm0, %v4601_v43, 0.0 }
  0x23   :  { %290 = vadd.xlane.f32.xlu0 %v289_v49  ;;  %6428 = vst [vmem:[#allocation27_spill] sm:$0xff] %v4606_v45  ;;  %v4612_v49 = vadd.f32 %v199_v38, %v4459_v14  ;;  %v337_v51 = vsel %vm264_vm0, %v4606_v45, 0.0  ;;  %v4617_v52 = vadd.f32 %v203_v46, %v4454_v13  ;;  %v4623_v58 = vadd.f32 %v203_v46, %v4459_v14 }
  0x25   :  { %293 = vadd.xlane.f32.xlu1 %v292_v53  ;;  %6429 = vst [vmem:[#allocation28_spill] sm:$0xff] %v4612_v49  ;;  %6430 = vst [vmem:[#allocation29_spill] sm:$0xff] %v4617_v52  ;;  %v207_v53 = vrot.slane %v143_v48, %v4448_v9  ;;  %v343_v59 = vsel %vm264_vm0, %v4617_v52, 0.0  ;;  %v346_v0 = vsel %vm264_vm0, %v4623_v58, 0.0 }
  0x26   :  { %6431 = vst [vmem:[#allocation30_spill] sm:$0xff] %v4623_v58 }
  0x27   :  { %296 = vadd.xlane.f32.xlu0 %v295_v56  ;;  %v340_v56 = vsel %vm264_vm0, %v4612_v49, 0.0  ;;  %v4634_v1 = vadd.f32 %v207_v53, %v4459_v14 }
  0x29   :  { %299 = vadd.xlane.f32.xlu1 %v298_v60  ;;  %v4628_v60 = vadd.f32 %v207_v53, %v4454_v13  ;;  %6433 = vst [vmem:[#allocation32_spill] sm:$0xff] %v4634_v1 }
  0x2b   :  { %302 = vadd.xlane.f32.xlu0 %v301_v62  ;;  %6432 = vst [vmem:[#allocation31_spill] sm:$0xff] %v4628_v60  ;;  %v211_v62 = vrot.slane %v145_v55, %v4448_v9 }
  0x2d   :  { %305 = vadd.xlane.f32.xlu1 %v304_v2  ;;  %v349_v2 = vsel %vm264_vm0, %v4628_v60, 0.0  ;;  %v4639_v4 = vadd.f32 %v211_v62, %v4454_v13  ;;  %v4644_v9 = vadd.f32 %v211_v62, %v4459_v14 }
  0x2f   :  { %308 = vadd.xlane.f32.xlu0 %v307_v5  ;;  %6434 = vst [vmem:[#allocation33_spill] sm:$0xff] %v4639_v4  ;;  %v352_v5 = vsel %vm264_vm0, %v4634_v1, 0.0  ;;  %6435 = vst [vmem:[#allocation34_spill] sm:$0xff] %v4644_v9  ;;  %v355_v8 = vsel %vm264_vm0, %v4639_v4, 0.0  ;;  %v358_v10 = vsel %vm264_vm0, %v4644_v9, 0.0 }
  0x31   :  { %311 = vadd.xlane.f32.xlu1 %v310_v11 }
  0x33   :  { %314 = vadd.xlane.f32.xlu0 %v313_v16 }
  0x35   :  { %317 = vadd.xlane.f32.xlu1 %v316_v22 }
  0x37   :  { %320 = vadd.xlane.f32.xlu0 %v319_v27 }
  0x39   :  { %323 = vadd.xlane.f32.xlu1 %v322_v32 }
  0x3b   :  { %326 = vadd.xlane.f32.xlu0 %v325_v35 }
  0x3d   :  { %329 = vadd.xlane.f32.xlu1 %v328_v41 }
  0x3f   :  { %332 = vadd.xlane.f32.xlu0 %v331_v44 }
  0x41   :  { %335 = vadd.xlane.f32.xlu1 %v334_v7 }
  0x43   :  { %338 = vadd.xlane.f32.xlu0 %v337_v51 }
  0x45   :  { %341 = vadd.xlane.f32.xlu1 %v340_v56 }
  0x47   :  { %344 = vadd.xlane.f32.xlu0 %v343_v59 }
  0x49   :  { %347 = vadd.xlane.f32.xlu1 %v346_v0 }
  0x4b   :  { %350 = vadd.xlane.f32.xlu0 %v349_v2 }
  0x4d   :  { %353 = vadd.xlane.f32.xlu1 %v352_v5 }
  0x4f   :  { %356 = vadd.xlane.f32.xlu0 %v355_v8 }
  0x51   :  { %359 = vadd.xlane.f32.xlu1 %v358_v10 }
  0xa0   :  { %v267_v11 = vpop.xlane.xlu0 %266 }
  0xa2   :  { %v273_v13 = vpop.xlane.xlu1 %272 }
  0xa4   :  { %v270_v15 = vpop.xlane.xlu0 %269 }
  0xa5   :  { %v361_v16 = vadd.f32 %v270_v15, %v267_v11 }
  0xa6   :  { %v276_v18 = vpop.xlane.xlu1 %275 }
  0xa7   :  { %v362_v20 = vrot.slane %v361_v16, 4  ;;  %v368_v22 = vadd.f32 %v276_v18, %v273_v13 }
  0xa8   :  { %v279_v24 = vpop.xlane.xlu0 %278 }
  0xa9   :  { %v363_v14 = vadd.f32 %v362_v20, %v361_v16  ;;  %v369_v27 = vrot.slane %v368_v22, 4 }
  0xaa   :  { %v282_v29 = vpop.xlane.xlu1 %281 }
  0xab   :  { %v364_v30 = vrot.slane %v363_v14, 2  ;;  %v370_v32 = vadd.f32 %v369_v27, %v368_v22  ;;  %v375_v35 = vadd.f32 %v282_v29, %v279_v24 }
  0xac   :  { %v285_v38 = vpop.xlane.xlu0 %284 }
  0xad   :  { %v365_v39 = vadd.f32 %v364_v30, %v363_v14  ;;  %v371_v41 = vrot.slane %v370_v32, 2  ;;  %v376_v44 = vrot.slane %v375_v35, 4 }
  0xae   :  { %v288_v46 = vpop.xlane.xlu1 %287 }
  0xaf   :  { %v366_v48 = vrot.slane %v365_v39, 1  ;;  %v372_v7 = vadd.f32 %v371_v41, %v370_v32  ;;  %v377_v51 = vadd.f32 %v376_v44, %v375_v35  ;;  %v382_v53 = vadd.f32 %v288_v46, %v285_v38 }
  0xb0   :  { %v291_v55 = vpop.xlane.xlu0 %290 }
  0xb1   :  { %v373_v56 = vrot.slane %v372_v7, 1  ;;  %v378_v59 = vrot.slane %v377_v51, 2  ;;  %v383_v62 = vrot.slane %v382_v53, 4  ;;  %v367_v0 = vadd.f32 %v366_v48, %v365_v39 }
  0xb2   :  { %v294_v2 = vpop.xlane.xlu1 %293 }
  0xb3   :  { %v379_v5 = vadd.f32 %v378_v59, %v377_v51  ;;  %v384_v8 = vadd.f32 %v383_v62, %v382_v53  ;;  %v389_v10 = vadd.f32 %v294_v2, %v291_v55  ;;  %v473_v11 = vmul.f32 0.001953125, %v367_v0 }
  0xb4   :  { %v297_v13 = vpop.xlane.xlu0 %296  ;;  %v374_v15 = vadd.f32 %v373_v56, %v372_v7 }
  0xb5   :  { %v380_v16 = vrot.slane %v379_v5, 1  ;;  %v385_v18 = vrot.slane %v384_v8, 2  ;;  %v390_v20 = vrot.slane %v389_v10, 4  ;;  %v4651_v22 = vsub.f32 %v4469_v21, %v473_v11 }
  0xb6   :  { %v300_v24 = vpop.xlane.xlu1 %299  ;;  %v4654_v14 = vsub.f32 %v4465_v19, %v473_v11  ;;  %v474_v27 = vmul.f32 0.001953125, %v374_v15 }
  0xb7   :  { %v386_v29 = vadd.f32 %v385_v18, %v384_v8  ;;  %v391_v30 = vadd.f32 %v390_v20, %v389_v10  ;;  %v396_v32 = vadd.f32 %v300_v24, %v297_v13  ;;  %v522_v35 = vmul.f32 %v4651_v22, %v4651_v22 }
  0xb8   :  { %v303_v38 = vpop.xlane.xlu0 %302  ;;  %v521_v39 = vmul.f32 %v4654_v14, %v4654_v14  ;;  %v4661_v41 = vsub.f32 %v4478_v26, %v474_v27  ;;  %v4664_v44 = vsub.f32 %v4475_v25, %v474_v27  ;;  %v381_v46 = vadd.f32 %v380_v16, %v379_v5 }
  0xb9   :  { %v387_v48 = vrot.slane %v386_v29, 1  ;;  %v392_v7 = vrot.slane %v391_v30, 2  ;;  %v397_v51 = vrot.slane %v396_v32, 4  ;;  %v556_v53 = vsel %vm264_vm0, %v522_v35, 0.0 }
  0xba   :  { %v306_v55 = vpop.xlane.xlu1 %305  ;;  %557 = vadd.xlane.f32.xlu1 %v556_v53  ;;  %v553_v56 = vsel %vm264_vm0, %v521_v39, 0.0  ;;  %v524_v59 = vmul.f32 %v4661_v41, %v4661_v41  ;;  %v523_v62 = vmul.f32 %v4664_v44, %v4664_v44  ;;  %v475_v0 = vmul.f32 0.001953125, %v381_v46 }
  0xbb   :  { %v393_v2 = vadd.f32 %v392_v7, %v391_v30  ;;  %v398_v8 = vadd.f32 %v397_v51, %v396_v32  ;;  %v403_v10 = vadd.f32 %v306_v55, %v303_v38  ;;  %554 = vadd.xlane.f32.xlu0 %v553_v56  ;;  %v388_v5 = vadd.f32 %v387_v48, %v386_v29 }
  0xbc   :  { %v562_v11 = vsel %vm264_vm0, %v524_v59, 0.0  ;;  %v309_v13 = vpop.xlane.xlu0 %308  ;;  %v4674_v15 = vsub.f32 %v4492_v34, %v475_v0  ;;  %v4677_v16 = vsub.f32 %v4486_v31, %v475_v0  ;;  %v559_v30 = vsel %vm264_vm0, %v523_v62, 0.0 }
  0xbd   :  { %v394_v18 = vrot.slane %v393_v2, 1  ;;  %v399_v20 = vrot.slane %v398_v8, 2  ;;  %v404_v24 = vrot.slane %v403_v10, 4  ;;  %v476_v27 = vmul.f32 0.001953125, %v388_v5 }
  0xbe   :  { %563 = vadd.xlane.f32.xlu1 %v562_v11  ;;  %v312_v35 = vpop.xlane.xlu1 %311  ;;  %v526_v29 = vmul.f32 %v4674_v15, %v4674_v15  ;;  %v525_v32 = vmul.f32 %v4677_v16, %v4677_v16 }
  0xbf   :  { %v400_v38 = vadd.f32 %v399_v20, %v398_v8  ;;  %v405_v39 = vadd.f32 %v404_v24, %v403_v10  ;;  %560 = vadd.xlane.f32.xlu0 %v559_v30  ;;  %v410_v46 = vadd.f32 %v312_v35, %v309_v13  ;;  %v4685_v48 = vsub.f32 %v4504_v40, %v476_v27 }
  0xc0   :  { %v568_v7 = vsel %vm264_vm0, %v526_v29, 0.0  ;;  %v315_v51 = vpop.xlane.xlu0 %314  ;;  %v4689_v53 = vsub.f32 %v4497_v36, %v476_v27  ;;  %v395_v55 = vadd.f32 %v394_v18, %v393_v2  ;;  %v565_v10 = vsel %vm264_vm0, %v525_v32, 0.0 }
  0xc1   :  { %v401_v56 = vrot.slane %v400_v38, 1  ;;  %v406_v59 = vrot.slane %v405_v39, 2  ;;  %v411_v62 = vrot.slane %v410_v46, 4  ;;  %v528_v0 = vmul.f32 %v4685_v48, %v4685_v48 }
  0xc2   :  { %569 = vadd.xlane.f32.xlu1 %v568_v7  ;;  %v318_v8 = vpop.xlane.xlu1 %317  ;;  %v527_v5 = vmul.f32 %v4689_v53, %v4689_v53  ;;  %v477_v11 = vmul.f32 0.001953125, %v395_v55 }
  0xc3   :  { %v407_v13 = vadd.f32 %v406_v59, %v405_v39  ;;  %v412_v20 = vadd.f32 %v411_v62, %v410_v46  ;;  %566 = vadd.xlane.f32.xlu0 %v565_v10  ;;  %v417_v24 = vadd.f32 %v318_v8, %v315_v51  ;;  %v402_v35 = vadd.f32 %v401_v56, %v400_v38 }
  0xc4   :  { %v321_v27 = vpop.xlane.xlu0 %320  ;;  %v4697_v2 = vsub.f32 %v4518_v47, %v477_v11  ;;  %v4700_v18 = vsub.f32 %v4509_v42, %v477_v11  ;;  %v574_v32 = vsel %vm264_vm0, %v528_v0, 0.0  ;;  %v571_v55 = vsel %vm264_vm0, %v527_v5, 0.0 }
  0xc5   :  { %v408_v30 = vrot.slane %v407_v13, 1  ;;  %v413_v29 = vrot.slane %v412_v20, 2  ;;  %v418_v7 = vrot.slane %v417_v24, 4  ;;  %v478_v59 = vmul.f32 0.001953125, %v402_v35 }
  0xc6   :  { %575 = vadd.xlane.f32.xlu1 %v574_v32  ;;  %v324_v39 = vpop.xlane.xlu1 %323  ;;  %v530_v46 = vmul.f32 %v4697_v2, %v4697_v2  ;;  %v529_v51 = vmul.f32 %v4700_v18, %v4700_v18 }
  0xc7   :  { %v414_v62 = vadd.f32 %v413_v29, %v412_v20  ;;  %v419_v8 = vadd.f32 %v418_v7, %v417_v24  ;;  %572 = vadd.xlane.f32.xlu0 %v571_v55  ;;  %v424_v38 = vadd.f32 %v324_v39, %v321_v27  ;;  %v409_v56 = vadd.f32 %v408_v30, %v407_v13 }
  0xc8   :  { %v580_v10 = vsel %vm264_vm0, %v530_v46, 0.0  ;;  %v327_v11 = vpop.xlane.xlu0 %326  ;;  %v4710_v0 = vsub.f32 %v4530_v54, %v478_v59  ;;  %v4713_v5 = vsub.f32 %v4524_v50, %v478_v59  ;;  %v577_v20 = vsel %vm264_vm0, %v529_v51, 0.0 }
  0xc9   :  { %v415_v32 = vrot.slane %v414_v62, 1  ;;  %v420_v42 = vrot.slane %v419_v8, 2  ;;  %v425_v47 = vrot.slane %v424_v38, 4  ;;  %v479_v36 = vmul.f32 0.001953125, %v409_v56 }
  0xca   :  { %581 = vadd.xlane.f32.xlu1 %v580_v10  ;;  %v330_v24 = vpop.xlane.xlu1 %329  ;;  %v532_v13 = vmul.f32 %v4710_v0, %v4710_v0  ;;  %v531_v27 = vmul.f32 %v4713_v5, %v4713_v5 }
  0xcb   :  { %v421_v35 = vadd.f32 %v420_v42, %v419_v8  ;;  %v426_v30 = vadd.f32 %v425_v47, %v424_v38  ;;  %578 = vadd.xlane.f32.xlu0 %v577_v20  ;;  %v431_v29 = vadd.f32 %v330_v24, %v327_v11  ;;  %v4721_v7 = vsub.f32 %v4542_v61, %v479_v36 }
  0xcc   :  { %v586_v55 = vsel %vm264_vm0, %v532_v13, 0.0  ;;  %v333_v39 = vpop.xlane.xlu0 %332  ;;  %v4725_v46 = vsub.f32 %v4536_v57, %v479_v36  ;;  %v416_v51 = vadd.f32 %v415_v32, %v414_v62  ;;  %v583_v42 = vsel %vm264_vm0, %v531_v27, 0.0 }
  0xcd   :  { %v422_v59 = vrot.slane %v421_v35, 1  ;;  %v427_v56 = vrot.slane %v426_v30, 2  ;;  %v432_v10 = vrot.slane %v431_v29, 4  ;;  %v534_v50 = vmul.f32 %v4721_v7, %v4721_v7 }
  0xce   :  { %587 = vadd.xlane.f32.xlu1 %v586_v55  ;;  %v336_v47 = vpop.xlane.xlu1 %335  ;;  %v533_v8 = vmul.f32 %v4725_v46, %v4725_v46  ;;  %v480_v38 = vmul.f32 0.001953125, %v416_v51 }
  0xcf   :  { %v428_v11 = vadd.f32 %v427_v56, %v426_v30  ;;  %v433_v20 = vadd.f32 %v432_v10, %v431_v29  ;;  %584 = vadd.xlane.f32.xlu0 %v583_v42  ;;  %v438_v36 = vadd.f32 %v336_v47, %v333_v39  ;;  %v423_v13 = vadd.f32 %v422_v59, %v421_v35 }
  0xd0   :  { %v339_v24 = vpop.xlane.xlu0 %338  ;;  %v4733_v62 = vsub.f32 %v4554_v3, %v480_v38  ;;  %v4736_v32 = vsub.f32 %v4547_v63, %v480_v38  ;;  %v592_v61 = vsel %vm264_vm0, %v534_v50, 0.0  ;;  %v589_v51 = vsel %vm264_vm0, %v533_v8, 0.0 }
  0xd1   :  { %v429_v55 = vrot.slane %v428_v11, 1  ;;  %v434_v57 = vrot.slane %v433_v20, 2  ;;  %v439_v27 = vrot.slane %v438_v36, 4  ;;  %v481_v56 = vmul.f32 0.001953125, %v423_v13 }
  0xd2   :  { %593 = vadd.xlane.f32.xlu1 %v592_v61  ;;  %v342_v30 = vpop.xlane.xlu1 %341  ;;  %v536_v29 = vmul.f32 %v4733_v62, %v4733_v62  ;;  %v535_v39 = vmul.f32 %v4736_v32, %v4736_v32 }
  0xd3   :  { %v435_v10 = vadd.f32 %v434_v57, %v433_v20  ;;  %v440_v42 = vadd.f32 %v439_v27, %v438_v36  ;;  %590 = vadd.xlane.f32.xlu0 %v589_v51  ;;  %v445_v35 = vadd.f32 %v342_v30, %v339_v24  ;;  %v430_v59 = vadd.f32 %v429_v55, %v428_v11 }
  0xd4   :  { %v598_v47 = vsel %vm264_vm0, %v536_v29, 0.0  ;;  %v345_v38 = vpop.xlane.xlu0 %344  ;;  %v4746_v50 = vsub.f32 %v4565_v12, %v481_v56  ;;  %v4749_v61 = vsub.f32 %v4559_v6, %v481_v56  ;;  %v595_v57 = vsel %vm264_vm0, %v535_v39, 0.0 }
  0xd5   :  { %v436_v8 = vrot.slane %v435_v10, 1  ;;  %v441_v63 = vrot.slane %v440_v42, 2  ;;  %v446_v3 = vrot.slane %v445_v35, 4  ;;  %v482_v54 = vmul.f32 0.001953125, %v430_v59 }
  0xd6   :  { %599 = vadd.xlane.f32.xlu1 %v598_v47  ;;  %v348_v20 = vpop.xlane.xlu1 %347  ;;  %v538_v11 = vmul.f32 %v4746_v50, %v4746_v50  ;;  %v537_v36 = vmul.f32 %v4749_v61, %v4749_v61 }
  0xd7   :  { %v442_v24 = vadd.f32 %v441_v63, %v440_v42  ;;  %v447_v13 = vadd.f32 %v446_v3, %v445_v35  ;;  %596 = vadd.xlane.f32.xlu0 %v595_v57  ;;  %v452_v55 = vadd.f32 %v348_v20, %v345_v38  ;;  %v4757_v27 = vsub.f32 %v4577_v23, %v482_v54 }
  0xd8   :  { %v604_v51 = vsel %vm264_vm0, %v538_v11, 0.0  ;;  %v351_v30 = vpop.xlane.xlu0 %350  ;;  %v4761_v29 = vsub.f32 %v4571_v17, %v482_v54  ;;  %v437_v39 = vadd.f32 %v436_v8, %v435_v10  ;;  %v601_v63 = vsel %vm264_vm0, %v537_v36, 0.0 }
  0xd9   :  { %v443_v56 = vrot.slane %v442_v24, 1  ;;  %v448_v59 = vrot.slane %v447_v13, 2  ;;  %v453_v47 = vrot.slane %v452_v55, 4  ;;  %v540_v6 = vmul.f32 %v4757_v27, %v4757_v27 }
  0xda   :  { %605 = vadd.xlane.f32.xlu1 %v604_v51  ;;  %v354_v3 = vpop.xlane.xlu1 %353  ;;  %v539_v42 = vmul.f32 %v4761_v29, %v4761_v29  ;;  %v483_v35 = vmul.f32 0.001953125, %v437_v39 }
  0xdb   :  { %v449_v38 = vadd.f32 %v448_v59, %v447_v13  ;;  %v454_v57 = vadd.f32 %v453_v47, %v452_v55  ;;  %602 = vadd.xlane.f32.xlu0 %v601_v63  ;;  %v459_v54 = vadd.f32 %v354_v3, %v351_v30  ;;  %v610_v10 = vsel %vm264_vm0, %v540_v6, 0.0 }
  0xdc   :  { %v607_v8 = vsel %vm264_vm0, %v539_v42, 0.0  ;;  %v357_v20 = vpop.xlane.xlu0 %356  ;;  %v4771_v11 = vsub.f32 %v4589_v33, %v483_v35  ;;  %v4774_v51 = vsub.f32 %v4583_v28, %v483_v35  ;;  %v444_v36 = vadd.f32 %v443_v56, %v442_v24 }
  0xdd   :  { %v450_v17 = vrot.slane %v449_v38, 1  ;;  %v455_v23 = vrot.slane %v454_v57, 2  ;;  %v460_v12 = vrot.slane %v459_v54, 4 }
  0xde   :  { %611 = vadd.xlane.f32.xlu1 %v610_v10  ;;  %v360_v13 = vpop.xlane.xlu1 %359  ;;  %v542_v55 = vmul.f32 %v4771_v11, %v4771_v11  ;;  %v541_v6 = vmul.f32 %v4774_v51, %v4774_v51  ;;  %v484_v30 = vmul.f32 0.001953125, %v444_v36 }
  0xdf   :  { %v456_v39 = vadd.f32 %v455_v23, %v454_v57  ;;  %v461_v59 = vadd.f32 %v460_v12, %v459_v54  ;;  %608 = vadd.xlane.f32.xlu0 %v607_v8  ;;  %v466_v47 = vadd.f32 %v360_v13, %v357_v20  ;;  %v451_v63 = vadd.f32 %v450_v17, %v449_v38  ;;  %v905_v8 = vld [vmem:[%s6325_s4] sm:$0xff]  ;;  %v906_v20 = vld [vmem:[%s6325_s4 + $0x8] sm:$0xff] }
  0xe0   :  { %v616_v3 = vsel %vm264_vm0, %v542_v55, 0.0  ;;  %v613_v24 = vsel %vm264_vm0, %v541_v6, 0.0  ;;  %v4783_v56 = vsub.f32 %v4601_v43, %v484_v30  ;;  %v4786_v42 = vsub.f32 %v4594_v37, %v484_v30 }
  0xe1   :  { %v457_v35 = vrot.slane %v456_v39, 1  ;;  %v462_v10 = vrot.slane %v461_v59, 2  ;;  %v467_v28 = vrot.slane %v466_v47, 4  ;;  %v485_v33 = vmul.f32 0.001953125, %v451_v63 }
  0xe2   :  { %617 = vadd.xlane.f32.xlu1 %v616_v3  ;;  %v544_v12 = vmul.f32 %v4783_v56, %v4783_v56  ;;  %v543_v17 = vmul.f32 %v4786_v42, %v4786_v42  ;;  %v4145_v55 = vpack.c.bf16 %v906_v20, %v905_v8 }
  0xe3   :  { %v463_v23 = vadd.f32 %v462_v10, %v461_v59  ;;  %v468_v38 = vadd.f32 %v467_v28, %v466_v47  ;;  %614 = vadd.xlane.f32.xlu0 %v613_v24  ;;  %v4793_v57 = vsub.f32 %v4612_v49, %v485_v33  ;;  %v4796_v54 = vsub.f32 %v4606_v45, %v485_v33 }
  0xe4   :  { %v622_v36 = vsel %vm264_vm0, %v544_v12, 0.0  ;;  %v619_v13 = vsel %vm264_vm0, %v543_v17, 0.0  ;;  %v458_v28 = vadd.f32 %v457_v35, %v456_v39  ;;  %4146 = vmatprep.subr.bf16.mxu0 %v4145_v55  ;;  %v907_v39 = vld [vmem:[%s6325_s4 + $0x10] sm:$0xff]  ;;  %v908_v35 = vld [vmem:[%s6325_s4 + $0x18] sm:$0xff] }
  0xe5   :  { %v464_v6 = vrot.slane %v463_v23, 1  ;;  %v469_v30 = vrot.slane %v468_v38, 2  ;;  %v546_v33 = vmul.f32 %v4793_v57, %v4793_v57  ;;  %v545_v59 = vmul.f32 %v4796_v54, %v4796_v54  ;;  %4148 = vmatpush3.bf16.msra.mxu0 %v4145_v55 }
  0xe6   :  { %623 = vadd.xlane.f32.xlu1 %v622_v36  ;;  %v486_v47 = vmul.f32 0.001953125, %v458_v28 }
  0xe7   :  { %v470_v63 = vadd.f32 %v469_v30, %v468_v38  ;;  %620 = vadd.xlane.f32.xlu0 %v619_v13  ;;  %v628_v3 = vsel %vm264_vm0, %v546_v33, 0.0  ;;  %v465_v24 = vadd.f32 %v464_v6, %v463_v23  ;;  %v625_v10 = vsel %vm264_vm0, %v545_v59, 0.0 }
  0xe8   :  { %v4819_v12 = vsub.f32 %v4623_v58, %v486_v47  ;;  %v4822_v17 = vsub.f32 %v4617_v52, %v486_v47  ;;  %v4149_v38 = vpack.c.bf16 %v908_v35, %v907_v39 }
  0xe9   :  { %v471_v8 = vrot.slane %v470_v63, 1  ;;  %v487_v23 = vmul.f32 0.001953125, %v465_v24 }
  0xea   :  { %629 = vadd.xlane.f32.xlu1 %v628_v3  ;;  %v548_v20 = vmul.f32 %v4819_v12, %v4819_v12  ;;  %v547_v36 = vmul.f32 %v4822_v17, %v4822_v17  ;;  %4150 = vmatprep.subr.bf16.mxu0 %v4149_v38 }
  0xeb   :  { %626 = vadd.xlane.f32.xlu0 %v625_v10  ;;  %v4829_v13 = vsub.f32 %v4634_v1, %v487_v23  ;;  %v4832_v28 = vsub.f32 %v4628_v60, %v487_v23  ;;  %v472_v55 = vadd.f32 %v471_v8, %v470_v63  ;;  %4152 = vmatpush3.bf16.msra.mxu0 %v4149_v38  ;;  %v1269_v23 = vld [vmem:[%s6327_s6] sm:$0xff] }
  0xec   :  { %v634_v6 = vsel %vm264_vm0, %v548_v20, 0.0  ;;  %v631_v30 = vsel %vm264_vm0, %v547_v36, 0.0  ;;  %v1270_v20 = vld [vmem:[%s6327_s6 + $0x8] sm:$0xff]  ;;  %v1271_v36 = vld [vmem:[%s6327_s6 + $0x10] sm:$0xff] }
  0xed   :  { %v550_v33 = vmul.f32 %v4829_v13, %v4829_v13  ;;  %v549_v59 = vmul.f32 %v4832_v28, %v4832_v28  ;;  %v488_v47 = vmul.f32 0.001953125, %v472_v55  ;;  %v4153_v55 = vpack.c.bf16 %v1270_v20, %v1269_v23 }
  0xee   :  { %635 = vadd.xlane.f32.xlu1 %v634_v6  ;;  %v1272_v6 = vld [vmem:[%s6327_s6 + $0x18] sm:$0xff] }
  0xef   :  { %632 = vadd.xlane.f32.xlu0 %v631_v30  ;;  %v640_v3 = vsel %vm264_vm0, %v550_v33, 0.0  ;;  %v4842_v24 = vsub.f32 %v4644_v9, %v488_v47  ;;  %v4845_v63 = vsub.f32 %v4639_v4, %v488_v47  ;;  %v637_v39 = vsel %vm264_vm0, %v549_v59, 0.0  ;;  %v1273_v33 = vld [vmem:[%s6327_s6 + $0x20] sm:$0xff]  ;;  %v1274_v59 = vld [vmem:[%s6327_s6 + $0x28] sm:$0xff]  ;;  %4154 = vmatprep.subr.bf16.mxu1 %v4153_v55 }
  0xf0   :  { %v4157_v30 = vpack.c.bf16 %v1272_v6, %v1271_v36  ;;  %4156 = vmatpush3.bf16.msra.mxu1 %v4153_v55  ;;  %v4161_v47 = vpack.c.bf16 %v1274_v59, %v1273_v33 }
  0xf1   :  { %v552_v35 = vmul.f32 %v4842_v24, %v4842_v24  ;;  %v551_v10 = vmul.f32 %v4845_v63, %v4845_v63 }
  0xf2   :  { %641 = vadd.xlane.f32.xlu1 %v640_v3  ;;  %4158 = vmatprep.subr.bf16.mxu1 %v4157_v30 }
  0xf3   :  { %638 = vadd.xlane.f32.xlu0 %v637_v39  ;;  %v646_v38 = vsel %vm264_vm0, %v552_v35, 0.0  ;;  %v643_v8 = vsel %vm264_vm0, %v551_v10, 0.0 }
  0xf4   :  { %4160 = vmatpush3.bf16.msra.mxu1 %v4157_v30 }
  0xf5   :  { %4162 = vmatprep.subr.bf16.mxu1 %v4161_v47 }
  0xf6   :  { %647 = vadd.xlane.f32.xlu1 %v646_v38 }
  0xf7   :  { %644 = vadd.xlane.f32.xlu0 %v643_v8 }
  0xf8   :  { %4164 = vmatpush3.bf16.msra.mxu1 %v4161_v47 }
 0x147   :  { %v558_v3 = vpop.xlane.xlu1 %557 }
 0x148   :  { %v555_v39 = vpop.xlane.xlu0 %554 }
 0x149   :  { %v649_v35 = vadd.f32 %v558_v3, %v555_v39 }
 0x14b   :  { %v650_v10 = vrot.slane %v649_v35, 4  ;;  %v564_v38 = vpop.xlane.xlu1 %563 }
 0x14c   :  { %v561_v8 = vpop.xlane.xlu0 %560 }
 0x14d   :  { %v651_v23 = vadd.f32 %v650_v10, %v649_v35  ;;  %v656_v20 = vadd.f32 %v564_v38, %v561_v8 }
 0x14f   :  { %v652_v36 = vrot.slane %v651_v23, 2  ;;  %v657_v6 = vrot.slane %v656_v20, 4  ;;  %v570_v4 = vpop.xlane.xlu1 %569 }
 0x150   :  { %v567_v9 = vpop.xlane.xlu0 %566 }
 0x151   :  { %v653_v60 = vadd.f32 %v652_v36, %v651_v23  ;;  %v658_v1 = vadd.f32 %v657_v6, %v656_v20  ;;  %v663_v55 = vadd.f32 %v570_v4, %v567_v9 }
 0x153   :  { %v654_v52 = vrot.slane %v653_v60, 1  ;;  %v659_v33 = vrot.slane %v658_v1, 2  ;;  %v664_v30 = vrot.slane %v663_v55, 4  ;;  %v576_v59 = vpop.xlane.xlu1 %575 }
 0x154   :  { %v573_v47 = vpop.xlane.xlu0 %572 }
 0x155   :  { %v655_v58 = vadd.f32 %v654_v52, %v653_v60  ;;  %v660_v45 = vadd.f32 %v659_v33, %v658_v1  ;;  %v665_v3 = vadd.f32 %v664_v30, %v663_v55  ;;  %v670_v39 = vadd.f32 %v576_v59, %v573_v47 }
 0x157   :  { %v761_v49 = vmul.f32 0.001953125, %v655_v58  ;;  %v661_v37 = vrot.slane %v660_v45, 1  ;;  %v666_v35 = vrot.slane %v665_v3, 2  ;;  %v671_v10 = vrot.slane %v670_v39, 4  ;;  %v582_v38 = vpop.xlane.xlu1 %581 }
 0x158   :  { %v579_v8 = vpop.xlane.xlu0 %578 }
 0x159   :  { %v777_v43 = vadd.f32 1e-05, %v761_v49  ;;  %v662_v40 = vadd.f32 %v661_v37, %v660_v45  ;;  %v667_v23 = vadd.f32 %v666_v35, %v665_v3  ;;  %v672_v20 = vadd.f32 %v671_v10, %v670_v39 }
 0x15a   :  { %v677_v4 = vadd.f32 %v582_v38, %v579_v8 }
 0x15b   :  { %4209 = vrsqrt.f32 %v777_v43  ;;  %v762_v9 = vmul.f32 0.001953125, %v662_v40  ;;  %v668_v36 = vrot.slane %v667_v23, 1  ;;  %v673_v6 = vrot.slane %v672_v20, 2  ;;  %v588_v31 = vpop.xlane.xlu1 %587 }
 0x15c   :  { %v678_v52 = vrot.slane %v677_v4, 4  ;;  %v585_v60 = vpop.xlane.xlu0 %584 }
 0x15d   :  { %v778_v1 = vadd.f32 1e-05, %v762_v9  ;;  %v669_v55 = vadd.f32 %v668_v36, %v667_v23  ;;  %v674_v58 = vadd.f32 %v673_v6, %v672_v20  ;;  %v684_v33 = vadd.f32 %v588_v31, %v585_v60 }
 0x15e   :  { %v679_v30 = vadd.f32 %v678_v52, %v677_v4 }
 0x15f   :  { %4211 = vrsqrt.f32 %v778_v1  ;;  %v763_v59 = vmul.f32 0.001953125, %v669_v55  ;;  %v675_v47 = vrot.slane %v674_v58, 1  ;;  %v685_v49 = vrot.slane %v684_v33, 4  ;;  %v594_v37 = vpop.xlane.xlu1 %593  ;;  %v4875_v1 = vld [vmem:[%s6323_s2] sm:$0xff]  ;;  %v4880_v55 = vld [vmem:[%s6323_s2 + $0x8] sm:$0xff] }
 0x160   :  { %v680_v45 = vrot.slane %v679_v30, 2  ;;  %v591_v3 = vpop.xlane.xlu0 %590 }
 0x161   :  { %v779_v39 = vadd.f32 1e-05, %v763_v59  ;;  %v676_v43 = vadd.f32 %v675_v47, %v674_v58  ;;  %v686_v40 = vadd.f32 %v685_v49, %v684_v33  ;;  %v691_v35 = vadd.f32 %v594_v37, %v591_v3  ;;  %v4892_v3 = vld [vmem:[%s6324_s3 + $0x8] sm:$0xff] }
 0x162   :  { %v681_v10 = vadd.f32 %v680_v45, %v679_v30  ;;  %v4887_v45 = vld [vmem:[%s6324_s3] sm:$0xff] }
 0x163   :  { %4213 = vrsqrt.f32 %v779_v39  ;;  %v764_v38 = vmul.f32 0.001953125, %v676_v43  ;;  %v687_v8 = vrot.slane %v686_v40, 2  ;;  %v692_v9 = vrot.slane %v691_v35, 4  ;;  %v600_v23 = vpop.xlane.xlu1 %599 }
 0x164   :  { %v682_v20 = vrot.slane %v681_v10, 1  ;;  %v597_v31 = vpop.xlane.xlu0 %596 }
 0x165   :  { %v4210_v4 = vpop.eup %4209  ;;  %v780_v36 = vadd.f32 1e-05, %v764_v38  ;;  %v688_v6 = vadd.f32 %v687_v8, %v686_v40  ;;  %v693_v52 = vadd.f32 %v692_v9, %v691_v35  ;;  %v698_v60 = vadd.f32 %v600_v23, %v597_v31 }
 0x166   :  { %v683_v58 = vadd.f32 %v682_v20, %v681_v10  ;;  %v809_v33 = vmul.f32 %v4210_v4, %v4654_v14  ;;  %v810_v30 = vmul.f32 %v4210_v4, %v4651_v22 }
 0x167   :  { %4215 = vrsqrt.f32 %v780_v36  ;;  %v689_v59 = vrot.slane %v688_v6, 1  ;;  %v694_v47 = vrot.slane %v693_v52, 2  ;;  %v699_v49 = vrot.slane %v698_v60, 4  ;;  %v606_v37 = vpop.xlane.xlu1 %605 }
 0x168   :  { %v765_v39 = vmul.f32 0.001953125, %v683_v58  ;;  %v603_v43 = vpop.xlane.xlu0 %602  ;;  %v841_v14 = vmul.f32 %v809_v33, %v4875_v1  ;;  %v842_v22 = vmul.f32 %v810_v30, %v4880_v55 }
 0x169   :  { %v4212_v40 = vpop.eup %4211  ;;  %v690_v35 = vadd.f32 %v689_v59, %v688_v6  ;;  %v695_v10 = vadd.f32 %v694_v47, %v693_v52  ;;  %v700_v38 = vadd.f32 %v699_v49, %v698_v60  ;;  %v705_v8 = vadd.f32 %v606_v37, %v603_v43 }
 0x16a   :  { %v781_v9 = vadd.f32 1e-05, %v765_v39  ;;  %v873_v23 = vadd.f32 %v841_v14, %v4887_v45  ;;  %v874_v20 = vadd.f32 %v842_v22, %v4892_v3  ;;  %v811_v31 = vmul.f32 %v4212_v40, %v4664_v44 }
 0x16b   :  { %v766_v4 = vmul.f32 0.001953125, %v690_v35  ;;  %v696_v36 = vrot.slane %v695_v10, 1  ;;  %v701_v58 = vrot.slane %v700_v38, 2  ;;  %v706_v34 = vrot.slane %v705_v8, 4  ;;  %v612_v25 = vpop.xlane.xlu1 %611 }
 0x16c   :  { %4217 = vrsqrt.f32 %v781_v9  ;;  %3899 = vmatprep.mubr.msk.f32.mxu0 %vm264_vm0, %v873_v23  ;;  %v609_v33 = vpop.xlane.xlu0 %608  ;;  %v843_v6 = vmul.f32 %v811_v31, %v4875_v1  ;;  %v812_v52 = vmul.f32 %v4212_v40, %v4661_v41 }
 0x16d   :  { %v4214_v60 = vpop.eup %4213  ;;  %v782_v30 = vadd.f32 1e-05, %v766_v4  ;;  %v697_v59 = vadd.f32 %v696_v36, %v695_v10  ;;  %v702_v47 = vadd.f32 %v701_v58, %v700_v38  ;;  %v707_v49 = vadd.f32 %v706_v34, %v705_v8  ;;  %3900 = vmatmul.mubr.msk.f32.vlgmr.msra.gmra.mrb[0].mxu0 %vm264_vm0, %v874_v20 }
 0x16e   :  { %v712_v44 = vadd.f32 %v612_v25, %v609_v33  ;;  %v875_v37 = vadd.f32 %v843_v6, %v4887_v45  ;;  %v844_v39 = vmul.f32 %v812_v52, %v4880_v55  ;;  %v813_v43 = vmul.f32 %v4214_v60, %v4677_v16 }
 0x16f   :  { %4219 = vrsqrt.f32 %v782_v30  ;;  %v767_v14 = vmul.f32 0.001953125, %v697_v59  ;;  %v703_v22 = vrot.slane %v702_v47, 1  ;;  %v708_v35 = vrot.slane %v707_v49, 2  ;;  %v618_v9 = vpop.xlane.xlu1 %617 }
 0x170   :  { %v713_v41 = vrot.slane %v712_v44, 4  ;;  %3902 = vmatprep.mubr.msk.f32.mxu0 %vm264_vm0, %v875_v37  ;;  %v615_v40 = vpop.xlane.xlu0 %614  ;;  %v876_v34 = vadd.f32 %v844_v39, %v4892_v3  ;;  %v845_v10 = vmul.f32 %v813_v43, %v4875_v1  ;;  %v814_v25 = vmul.f32 %v4214_v60, %v4674_v15 }
 0x171   :  { %v4216_v38 = vpop.eup %4215  ;;  %v783_v8 = vadd.f32 1e-05, %v767_v14  ;;  %v704_v23 = vadd.f32 %v703_v22, %v702_v47  ;;  %v709_v20 = vadd.f32 %v708_v35, %v707_v49  ;;  %v719_v16 = vadd.f32 %v618_v9, %v615_v40 }
 0x172   :  { %v714_v31 = vadd.f32 %v713_v41, %v712_v44  ;;  %3903 = vmatmul.mubr.msk.f32.gmra.mrb[2].mxu0 %vm264_vm0, %v876_v34  ;;  %v877_v4 = vadd.f32 %v845_v10, %v4887_v45  ;;  %v846_v36 = vmul.f32 %v814_v25, %v4880_v55  ;;  %v815_v58 = vmul.f32 %v4216_v38, %v4689_v53 }
 0x173   :  { %4221 = vrsqrt.f32 %v783_v8  ;;  %v768_v33 = vmul.f32 0.001953125, %v704_v23  ;;  %v710_v6 = vrot.slane %v709_v20, 1  ;;  %v720_v52 = vrot.slane %v719_v16, 4  ;;  %v624_v30 = vpop.xlane.xlu1 %623 }
 0x174   :  { %v715_v15 = vrot.slane %v714_v31, 2  ;;  %3905 = vmatprep.mubr.msk.f32.mxu0 %vm264_vm0, %v877_v4  ;;  %v621_v60 = vpop.xlane.xlu0 %620  ;;  %v878_v59 = vadd.f32 %v846_v36, %v4892_v3  ;;  %v847_v47 = vmul.f32 %v815_v58, %v4875_v1  ;;  %v816_v49 = vmul.f32 %v4216_v38, %v4685_v48 }
 0x175   :  { %v784_v44 = vadd.f32 1e-05, %v768_v33  ;;  %v711_v37 = vadd.f32 %v710_v6, %v709_v20  ;;  %v721_v39 = vadd.f32 %v720_v52, %v719_v16  ;;  %v726_v43 = vadd.f32 %v624_v30, %v621_v60 }
 0x176   :  { %v4218_v53 = vpop.eup %4217  ;;  %v716_v14 = vadd.f32 %v715_v15, %v714_v31  ;;  %3906 = vmatmul.mubr.msk.f32.gmra.mrb[4].mxu0 %vm264_vm0, %v878_v59  ;;  %v879_v22 = vadd.f32 %v847_v47, %v4887_v45  ;;  %v848_v35 = vmul.f32 %v816_v49, %v4880_v55 }
 0x177   :  { %4223 = vrsqrt.f32 %v784_v44  ;;  %v769_v9 = vmul.f32 0.001953125, %v711_v37  ;;  %v722_v41 = vrot.slane %v721_v39, 2  ;;  %v727_v40 = vrot.slane %v726_v43, 4  ;;  %v630_v34 = vpop.xlane.xlu1 %629 }
 0x178   :  { %v717_v10 = vrot.slane %v716_v14, 1  ;;  %3908 = vmatprep.mubr.msk.f32.mxu0 %vm264_vm0, %v879_v22  ;;  %v627_v48 = vpop.xlane.xlu0 %626  ;;  %v880_v25 = vadd.f32 %v848_v35, %v4892_v3  ;;  %v817_v38 = vmul.f32 %v4218_v53, %v4700_v18  ;;  %v818_v8 = vmul.f32 %v4218_v53, %v4697_v2 }
 0x179   :  { %v4220_v23 = vpop.eup %4219  ;;  %v785_v20 = vadd.f32 1e-05, %v769_v9  ;;  %v723_v16 = vadd.f32 %v722_v41, %v721_v39  ;;  %v728_v31 = vadd.f32 %v727_v40, %v726_v43  ;;  %v733_v4 = vadd.f32 %v630_v34, %v627_v48 }
 0x17a   :  { %v718_v36 = vadd.f32 %v717_v10, %v716_v14  ;;  %3909 = vmatmul.mubr.msk.f32.gmra.mrb[6].mxu0 %vm264_vm0, %v880_v25  ;;  %v849_v58 = vmul.f32 %v817_v38, %v4875_v1  ;;  %v850_v33 = vmul.f32 %v818_v8, %v4880_v55  ;;  %v819_v6 = vmul.f32 %v4220_v23, %v4713_v5 }
 0x17b   :  { %4225 = vrsqrt.f32 %v785_v20  ;;  %v724_v52 = vrot.slane %v723_v16, 1  ;;  %v729_v30 = vrot.slane %v728_v31, 2  ;;  %v734_v18 = vrot.slane %v733_v4, 4  ;;  %v636_v15 = vpop.xlane.xlu1 %635 }
 0x17c   :  { %v770_v2 = vmul.f32 0.001953125, %v718_v36  ;;  %v881_v60 = vadd.f32 %v849_v58, %v4887_v45  ;;  %v633_v59 = vpop.xlane.xlu0 %632  ;;  %v882_v47 = vadd.f32 %v850_v33, %v4892_v3  ;;  %v851_v49 = vmul.f32 %v819_v6, %v4875_v1 }
 0x17d   :  { %v4222_v44 = vpop.eup %4221  ;;  %v725_v37 = vadd.f32 %v724_v52, %v723_v16  ;;  %v730_v39 = vadd.f32 %v729_v30, %v728_v31  ;;  %v735_v43 = vadd.f32 %v734_v18, %v733_v4  ;;  %v740_v53 = vadd.f32 %v636_v15, %v633_v59 }
 0x17e   :  { %v786_v14 = vadd.f32 1e-05, %v770_v2  ;;  %3911 = vmatprep.mubr.msk.f32.mxu0 %vm264_vm0, %v881_v60  ;;  %v883_v5 = vadd.f32 %v851_v49, %v4887_v45  ;;  %v820_v22 = vmul.f32 %v4220_v23, %v4710_v0  ;;  %v821_v35 = vmul.f32 %v4222_v44, %v4725_v46 }
 0x17f   :  { %v771_v9 = vmul.f32 0.001953125, %v725_v37  ;;  %v731_v41 = vrot.slane %v730_v39, 1  ;;  %v736_v40 = vrot.slane %v735_v43, 2  ;;  %v741_v34 = vrot.slane %v740_v53, 4  ;;  %3912 = vmatmul.mubr.msk.f32.gmra.mrb[8].mxu0 %vm264_vm0, %v882_v47  ;;  %v642_v10 = vpop.xlane.xlu1 %641 }
 0x180   :  { %4227 = vrsqrt.f32 %v786_v14  ;;  %3914 = vmatprep.mubr.msk.f32.mxu0 %vm264_vm0, %v883_v5  ;;  %v639_v48 = vpop.xlane.xlu0 %638  ;;  %v852_v25 = vmul.f32 %v820_v22, %v4880_v55  ;;  %v853_v38 = vmul.f32 %v821_v35, %v4875_v1  ;;  %v822_v8 = vmul.f32 %v4222_v44, %v4721_v7 }
 0x181   :  { %v4224_v0 = vpop.eup %4223  ;;  %v787_v23 = vadd.f32 1e-05, %v771_v9  ;;  %v732_v46 = vadd.f32 %v731_v41, %v730_v39  ;;  %v737_v20 = vadd.f32 %v736_v40, %v735_v43  ;;  %v742_v16 = vadd.f32 %v741_v34, %v740_v53 }
 0x182   :  { %v747_v31 = vadd.f32 %v642_v10, %v639_v48  ;;  %v884_v4 = vadd.f32 %v852_v25, %v4892_v3  ;;  %v885_v36 = vadd.f32 %v853_v38, %v4887_v45  ;;  %v854_v58 = vmul.f32 %v822_v8, %v4880_v55 }
 0x183   :  { %4229 = vrsqrt.f32 %v787_v23  ;;  %v772_v33 = vmul.f32 0.001953125, %v732_v46  ;;  %v738_v6 = vrot.slane %v737_v20, 1  ;;  %v743_v52 = vrot.slane %v742_v16, 2  ;;  %v648_v30 = vpop.xlane.xlu1 %647 }
 0x184   :  { %v748_v18 = vrot.slane %v747_v31, 4  ;;  %3915 = vmatmul.mubr.msk.f32.gmra.mrb[10].mxu0 %vm264_vm0, %v884_v4  ;;  %v645_v7 = vpop.xlane.xlu0 %644  ;;  %v886_v15 = vadd.f32 %v854_v58, %v4892_v3  ;;  %v823_v2 = vmul.f32 %v4224_v0, %v4736_v32  ;;  %v824_v60 = vmul.f32 %v4224_v0, %v4733_v62 }
 0x185   :  { %v4226_v59 = vpop.eup %4225  ;;  %v788_v47 = vadd.f32 1e-05, %v772_v33  ;;  %v739_v49 = vadd.f32 %v738_v6, %v737_v20  ;;  %v744_v44 = vadd.f32 %v743_v52, %v742_v16  ;;  %3917 = vmatprep.mubr.msk.f32.mxu0 %vm264_vm0, %v885_v36  ;;  %v754_v37 = vadd.f32 %v648_v30, %v645_v7 }
 0x186   :  { %v749_v39 = vadd.f32 %v748_v18, %v747_v31  ;;  %v855_v43 = vmul.f32 %v823_v2, %v4875_v1  ;;  %v856_v53 = vmul.f32 %v824_v60, %v4880_v55  ;;  %v825_v14 = vmul.f32 %v4226_v59, %v4749_v61 }
 0x187   :  { %4231 = vrsqrt.f32 %v788_v47  ;;  %v773_v5 = vmul.f32 0.001953125, %v739_v49  ;;  %v745_v22 = vrot.slane %v744_v44, 1  ;;  %v755_v32 = vrot.slane %v754_v37, 4 }
 0x188   :  { %v750_v35 = vrot.slane %v749_v39, 2  ;;  %3918 = vmatmul.mubr.msk.f32.gmra.mrb[12].mxu0 %vm264_vm0, %v886_v15  ;;  %v887_v62 = vadd.f32 %v855_v43, %v4887_v45  ;;  %v888_v9 = vadd.f32 %v856_v53, %v4892_v3  ;;  %v857_v41 = vmul.f32 %v825_v14, %v4875_v1 }
 0x189   :  { %v789_v40 = vadd.f32 1e-05, %v773_v5  ;;  %v746_v34 = vadd.f32 %v745_v22, %v744_v44  ;;  %v756_v10 = vadd.f32 %v755_v32, %v754_v37  ;;  %v826_v48 = vmul.f32 %v4226_v59, %v4746_v50 }
 0x18a   :  { %v4228_v25 = vpop.eup %4227  ;;  %v751_v61 = vadd.f32 %v750_v35, %v749_v39  ;;  %3920 = vmatprep.mubr.msk.f32.mxu0 %vm264_vm0, %v887_v62  ;;  %v889_v38 = vadd.f32 %v857_v41, %v4887_v45 }
 0x18b   :  { %4233 = vrsqrt.f32 %v789_v40  ;;  %v774_v8 = vmul.f32 0.001953125, %v746_v34  ;;  %v757_v0 = vrot.slane %v756_v10, 2  ;;  %v858_v23 = vmul.f32 %v826_v48, %v4880_v55 }
 0x18c   :  { %v752_v46 = vrot.slane %v751_v61, 1  ;;  %3921 = vmatmul.mubr.msk.f32.gmra.mrb[14].mxu0 %vm264_vm0, %v888_v9  ;;  %v827_v20 = vmul.f32 %v4228_v25, %v4761_v29  ;;  %v828_v16 = vmul.f32 %v4228_v25, %v4757_v27 }
 0x18d   :  { %v4230_v31 = vpop.eup %4229  ;;  %v790_v50 = vadd.f32 1e-05, %v774_v8  ;;  %v758_v4 = vadd.f32 %v757_v0, %v756_v10  ;;  %3923 = vmatprep.mubr.msk.f32.mxu0 %vm264_vm0, %v889_v38  ;;  %v890_v36 = vadd.f32 %v858_v23, %v4892_v3 }
 0x18e   :  { %v753_v58 = vadd.f32 %v752_v46, %v751_v61  ;;  %v859_v33 = vmul.f32 %v827_v20, %v4875_v1  ;;  %v860_v6 = vmul.f32 %v828_v16, %v4880_v55  ;;  %v829_v52 = vmul.f32 %v4230_v31, %v4774_v51 }
 0x18f   :  { %4235 = vrsqrt.f32 %v790_v50  ;;  %v759_v30 = vrot.slane %v758_v4, 1  ;;  %v830_v29 = vmul.f32 %v4230_v31, %v4771_v11 }
 0x190   :  { %v775_v18 = vmul.f32 0.001953125, %v753_v58  ;;  %3924 = vmatmul.mubr.msk.f32.gmra.mrb[16].mxu0 %vm264_vm0, %v890_v36  ;;  %v891_v27 = vadd.f32 %v859_v33, %v4887_v45  ;;  %v892_v7 = vadd.f32 %v860_v6, %v4892_v3  ;;  %v861_v15 = vmul.f32 %v829_v52, %v4875_v1 }
 0x191   :  { %v4232_v2 = vpop.eup %4231  ;;  %v760_v60 = vadd.f32 %v759_v30, %v758_v4  ;;  %v862_v59 = vmul.f32 %v830_v29, %v4880_v55 }
 0x192   :  { %v791_v47 = vadd.f32 1e-05, %v775_v18  ;;  %3926 = vmatprep.mubr.msk.f32.mxu0 %vm264_vm0, %v891_v27  ;;  %v893_v51 = vadd.f32 %v861_v15, %v4887_v45  ;;  %v831_v11 = vmul.f32 %v4232_v2, %v4786_v42  ;;  %v832_v49 = vmul.f32 %v4232_v2, %v4783_v56 }
 0x193   :  { %v776_v44 = vmul.f32 0.001953125, %v760_v60  ;;  %v894_v37 = vadd.f32 %v862_v59, %v4892_v3 }
 0x194   :  { %4237 = vrsqrt.f32 %v791_v47  ;;  %3927 = vmatmul.mubr.msk.f32.gmra.mrb[18].mxu0 %vm264_vm0, %v892_v7  ;;  %v863_v39 = vmul.f32 %v831_v11, %v4875_v1  ;;  %v864_v43 = vmul.f32 %v832_v49, %v4880_v55 }
 0x195   :  { %v4234_v53 = vpop.eup %4233  ;;  %v792_v14 = vadd.f32 1e-05, %v776_v44  ;;  %3929 = vmatprep.mubr.msk.f32.mxu0 %vm264_vm0, %v893_v51 }
 0x196   :  { %v895_v5 = vadd.f32 %v863_v39, %v4887_v45  ;;  %v833_v42 = vmul.f32 %v4234_v53, %v4796_v54  ;;  %v834_v56 = vmul.f32 %v4234_v53, %v4793_v57  ;;  %v896_v22 = vadd.f32 %v864_v43, %v4892_v3 }
 0x197   :  { %4239 = vrsqrt.f32 %v792_v14 }
 0x198   :  { %3930 = vmatmul.mubr.msk.f32.gmra.mrb[20].mxu0 %vm264_vm0, %v894_v37  ;;  %v865_v32 = vmul.f32 %v833_v42, %v4875_v1  ;;  %v866_v35 = vmul.f32 %v834_v56, %v4880_v55 }
 0x199   :  { %v4236_v62 = vpop.eup %4235  ;;  %3932 = vmatprep.mubr.msk.f32.mxu0 %vm264_vm0, %v895_v5 }
 0x19a   :  { %v897_v9 = vadd.f32 %v865_v32, %v4887_v45  ;;  %v835_v41 = vmul.f32 %v4236_v62, %v4822_v17  ;;  %v836_v54 = vmul.f32 %v4236_v62, %v4819_v12  ;;  %v898_v57 = vadd.f32 %v866_v35, %v4892_v3 }
 0x19c   :  { %3933 = vmatmul.mubr.msk.f32.gmra.mrb[22].mxu0 %vm264_vm0, %v896_v22  ;;  %v867_v40 = vmul.f32 %v835_v41, %v4875_v1  ;;  %v868_v34 = vmul.f32 %v836_v54, %v4880_v55 }
 0x19d   :  { %3935 = vmatprep.mubr.msk.f32.mxu0 %vm264_vm0, %v897_v9 }
 0x19e   :  { %v4238_v10 = vpop.eup %4237  ;;  %v899_v48 = vadd.f32 %v867_v40, %v4887_v45  ;;  %v900_v12 = vadd.f32 %v868_v34, %v4892_v3 }
 0x19f   :  { %v837_v25 = vmul.f32 %v4238_v10, %v4832_v28  ;;  %v838_v61 = vmul.f32 %v4238_v10, %v4829_v13 }
 0x1a0   :  { %3936 = vmatmul.mubr.msk.f32.gmra.mrb[24].mxu0 %vm264_vm0, %v898_v57 }
 0x1a1   :  { %v4240_v17 = vpop.eup %4239  ;;  %3938 = vmatprep.mubr.msk.f32.mxu0 %vm264_vm0, %v899_v48  ;;  %v869_v38 = vmul.f32 %v837_v25, %v4875_v1  ;;  %v870_v8 = vmul.f32 %v838_v61, %v4880_v55 }
 0x1a2   :  { %v839_v0 = vmul.f32 %v4240_v17, %v4845_v63  ;;  %v840_v23 = vmul.f32 %v4240_v17, %v4842_v24  ;;  %v1275_v24 = vld [vmem:[%s6327_s6 + $0x30] sm:$0xff] }
 0x1a3   :  { %v901_v46 = vadd.f32 %v869_v38, %v4887_v45  ;;  %v902_v13 = vadd.f32 %v870_v8, %v4892_v3 }
 0x1a4   :  { %3939 = vmatmul.mubr.msk.f32.gmra.mrb[26].mxu0 %vm264_vm0, %v900_v12  ;;  %v871_v28 = vmul.f32 %v839_v0, %v4875_v1  ;;  %v872_v20 = vmul.f32 %v840_v23, %v4880_v55  ;;  %v1276_v1 = vld [vmem:[%s6327_s6 + $0x38] sm:$0xff] }
 0x1a5   :  { %3941 = vmatprep.mubr.msk.f32.mxu0 %vm264_vm0, %v901_v46  ;;  %v4165_v55 = vpack.c.bf16 %v1276_v1, %v1275_v24 }
 0x1a6   :  { %v903_v16 = vadd.f32 %v871_v28, %v4887_v45  ;;  %v904_v63 = vadd.f32 %v872_v20, %v4892_v3  ;;  %v5029_v45 = vld [vmem:[%s6326_s5] ss:$0 sm:$0xff] }
 0x1a7   :  { %4166 = vmatprep.subr.bf16.mxu1 %v4165_v55 }
 0x1a8   :  { %3942 = vmatmul.mubr.msk.f32.gmra.mrb[28].mxu0 %vm264_vm0, %v902_v13  ;;  %4168 = vmatpush3.bf16.msra.mxu1 %v4165_v55 }
 0x1a9   :  { %3944 = vmatprep.mubr.msk.f32.mxu0 %vm264_vm0, %v903_v16 }
 0x1ac   :  { %3945 = vmatmul.mubr.msk.f32.gmra.mrb[30].mxu0 %vm264_vm0, %v904_v63 }
 0x240   :  { %v3901_v3 = vpop.f32.mrb[0].mxu0 }
 0x241   :  { %v1084_v31 = vadd.f32 %v3901_v3, %v5029_v45  ;;  %v1078_v50 = vpop.f32.mrb[1].mxu0 }
 0x242   :  { %v1079_v4 = vadd.f32 %v5029_v45, %v1078_v50 }
 0x243   :  { %v1238_v58 = vmax.f32 %v1084_v31, 0.0 }
 0x244   :  { %v1237_v36 = vmax.f32 %v1079_v4, 0.0 }
 0x245   :  { %v3904_v33 = vpop.f32.mrb[2].mxu0 }
 0x246   :  { %v1094_v6 = vadd.f32 %v3904_v33, %v5029_v45  ;;  %v1088_v52 = vpop.f32.mrb[3].mxu0  ;;  %3963 = vmatprep.mubr.msk.f32.mxu1 %vm1284_vm1, %v1237_v36 }
 0x247   :  { %v1089_v30 = vadd.f32 %v5029_v45, %v1088_v52  ;;  %3964 = vmatmul.mubr.msk.f32.vlgmr.msra.gmra.mrb[0].mxu1 %vm1284_vm1, %v1238_v58 }
 0x248   :  { %v1240_v27 = vmax.f32 %v1094_v6, 0.0 }
 0x249   :  { %v1239_v29 = vmax.f32 %v1089_v30, 0.0  ;;  %v3907_v18 = vpop.f32.mrb[4].mxu0 }
 0x24a   :  { %v1104_v7 = vadd.f32 %v3907_v18, %v5029_v45  ;;  %v1098_v15 = vpop.f32.mrb[5].mxu0 }
 0x24b   :  { %v1099_v2 = vadd.f32 %v5029_v45, %v1098_v15  ;;  %3966 = vmatprep.mubr.msk.f32.mxu1 %vm1284_vm1, %v1239_v29 }
 0x24c   :  { %3967 = vmatmul.mubr.msk.f32.gmra.mrb[2].mxu1 %vm1284_vm1, %v1240_v27  ;;  %v1242_v47 = vmax.f32 %v1104_v7, 0.0 }
 0x24d   :  { %v1241_v60 = vmax.f32 %v1099_v2, 0.0  ;;  %v3910_v59 = vpop.f32.mrb[6].mxu0 }
 0x24e   :  { %v1114_v51 = vadd.f32 %v3910_v59, %v5029_v45  ;;  %v1108_v11 = vpop.f32.mrb[7].mxu0 }
 0x24f   :  { %v1109_v49 = vadd.f32 %v5029_v45, %v1108_v11  ;;  %3969 = vmatprep.mubr.msk.f32.mxu1 %vm1284_vm1, %v1241_v60 }
 0x250   :  { %3970 = vmatmul.mubr.msk.f32.gmra.mrb[4].mxu1 %vm1284_vm1, %v1242_v47  ;;  %v1244_v37 = vmax.f32 %v1114_v51, 0.0 }
 0x251   :  { %v1243_v44 = vmax.f32 %v1109_v49, 0.0 }
 0x252   :  { %v3913_v39 = vpop.f32.mrb[8].mxu0 }
 0x253   :  { %v1124_v43 = vadd.f32 %v3913_v39, %v5029_v45  ;;  %v1118_v53 = vpop.f32.mrb[9].mxu0  ;;  %3972 = vmatprep.mubr.msk.f32.mxu1 %vm1284_vm1, %v1243_v44 }
 0x254   :  { %v1119_v14 = vadd.f32 %v5029_v45, %v1118_v53  ;;  %3973 = vmatmul.mubr.msk.f32.gmra.mrb[6].mxu1 %vm1284_vm1, %v1244_v37 }
 0x255   :  { %v1246_v42 = vmax.f32 %v1124_v43, 0.0 }
 0x256   :  { %v1245_v5 = vmax.f32 %v1119_v14, 0.0 }
 0x257   :  { %v3916_v56 = vpop.f32.mrb[10].mxu0 }
 0x258   :  { %v1134_v22 = vadd.f32 %v3916_v56, %v5029_v45  ;;  %v1128_v32 = vpop.f32.mrb[11].mxu0  ;;  %3975 = vmatprep.mubr.msk.f32.mxu1 %vm1284_vm1, %v1245_v5 }
 0x259   :  { %v1129_v35 = vadd.f32 %v5029_v45, %v1128_v32  ;;  %3976 = vmatmul.mubr.msk.f32.gmra.mrb[8].mxu1 %vm1284_vm1, %v1246_v42 }
 0x25a   :  { %v1248_v41 = vmax.f32 %v1134_v22, 0.0 }
 0x25b   :  { %v1247_v62 = vmax.f32 %v1129_v35, 0.0  ;;  %v3919_v9 = vpop.f32.mrb[12].mxu0 }
 0x25c   :  { %v1144_v54 = vadd.f32 %v3919_v9, %v5029_v45  ;;  %v1138_v57 = vpop.f32.mrb[13].mxu0 }
 0x25d   :  { %v1139_v40 = vadd.f32 %v5029_v45, %v1138_v57  ;;  %3978 = vmatprep.mubr.msk.f32.mxu1 %vm1284_vm1, %v1247_v62 }
 0x25e   :  { %3979 = vmatmul.mubr.msk.f32.gmra.mrb[10].mxu1 %vm1284_vm1, %v1248_v41  ;;  %v1250_v48 = vmax.f32 %v1144_v54, 0.0  ;;  %v5098_v41 = vld [vmem:[%s6328_s7] ss:$0 sm:$0xff] }
 0x25f   :  { %v1249_v34 = vmax.f32 %v1139_v40, 0.0  ;;  %v3922_v10 = vpop.f32.mrb[14].mxu0 }
 0x260   :  { %v1154_v25 = vadd.f32 %v3922_v10, %v5029_v45  ;;  %v1148_v61 = vpop.f32.mrb[15].mxu0 }
 0x261   :  { %v1149_v12 = vadd.f32 %v5029_v45, %v1148_v61  ;;  %3981 = vmatprep.mubr.msk.f32.mxu1 %vm1284_vm1, %v1249_v34 }
 0x262   :  { %3982 = vmatmul.mubr.msk.f32.gmra.mrb[12].mxu1 %vm1284_vm1, %v1250_v48  ;;  %v1252_v8 = vmax.f32 %v1154_v25, 0.0 }
 0x263   :  { %v1251_v17 = vmax.f32 %v1149_v12, 0.0  ;;  %v3925_v38 = vpop.f32.mrb[16].mxu0 }
 0x264   :  { %v1164_v0 = vadd.f32 %v3925_v38, %v5029_v45  ;;  %v1158_v23 = vpop.f32.mrb[17].mxu0 }
 0x265   :  { %v1159_v46 = vadd.f32 %v5029_v45, %v1158_v23  ;;  %3984 = vmatprep.mubr.msk.f32.mxu1 %vm1284_vm1, %v1251_v17 }
 0x266   :  { %3985 = vmatmul.mubr.msk.f32.gmra.mrb[14].mxu1 %vm1284_vm1, %v1252_v8  ;;  %v1254_v20 = vmax.f32 %v1164_v0, 0.0  ;;  %v6436_v8 = vld [vmem:[#allocation6_spill] sm:$0xff] }
 0x267   :  { %v1253_v13 = vmax.f32 %v1159_v46, 0.0  ;;  %v3928_v28 = vpop.f32.mrb[18].mxu0 }
 0x268   :  { %v1174_v16 = vadd.f32 %v3928_v28, %v5029_v45  ;;  %v1168_v63 = vpop.f32.mrb[19].mxu0 }
 0x269   :  { %v1169_v24 = vadd.f32 %v5029_v45, %v1168_v63  ;;  %3987 = vmatprep.mubr.msk.f32.mxu1 %vm1284_vm1, %v1253_v13 }
 0x26a   :  { %3988 = vmatmul.mubr.msk.f32.gmra.mrb[16].mxu1 %vm1284_vm1, %v1254_v20  ;;  %v1256_v3 = vmax.f32 %v1174_v16, 0.0  ;;  %v6437_v16 = vld [vmem:[#allocation8_spill] sm:$0xff] }
 0x26b   :  { %v1255_v1 = vmax.f32 %v1169_v24, 0.0  ;;  %v3931_v55 = vpop.f32.mrb[20].mxu0 }
 0x26c   :  { %v1184_v31 = vadd.f32 %v3931_v55, %v5029_v45  ;;  %v1178_v50 = vpop.f32.mrb[21].mxu0 }
 0x26d   :  { %v1179_v4 = vadd.f32 %v5029_v45, %v1178_v50  ;;  %3990 = vmatprep.mubr.msk.f32.mxu1 %vm1284_vm1, %v1255_v1 }
 0x26e   :  { %3991 = vmatmul.mubr.msk.f32.gmra.mrb[18].mxu1 %vm1284_vm1, %v1256_v3  ;;  %v1258_v33 = vmax.f32 %v1184_v31, 0.0 }
 0x26f   :  { %v1257_v36 = vmax.f32 %v1179_v4, 0.0  ;;  %v3934_v58 = vpop.f32.mrb[22].mxu0 }
 0x270   :  { %v1194_v6 = vadd.f32 %v3934_v58, %v5029_v45  ;;  %v1188_v52 = vpop.f32.mrb[23].mxu0 }
 0x271   :  { %v1189_v30 = vadd.f32 %v5029_v45, %v1188_v52  ;;  %3993 = vmatprep.mubr.msk.f32.mxu1 %vm1284_vm1, %v1257_v36  ;;  %v6440_v36 = vld [vmem:[#allocation10_spill] sm:$0xff] }
 0x272   :  { %3994 = vmatmul.mubr.msk.f32.gmra.mrb[20].mxu1 %vm1284_vm1, %v1258_v33  ;;  %v1260_v27 = vmax.f32 %v1194_v6, 0.0  ;;  %v6442_v33 = vld [vmem:[#allocation9_spill] sm:$0xff] }
 0x273   :  { %v1259_v29 = vmax.f32 %v1189_v30, 0.0  ;;  %v3937_v18 = vpop.f32.mrb[24].mxu0 }
 0x274   :  { %v1204_v7 = vadd.f32 %v3937_v18, %v5029_v45  ;;  %v1198_v15 = vpop.f32.mrb[25].mxu0 }
 0x275   :  { %v1199_v2 = vadd.f32 %v5029_v45, %v1198_v15  ;;  %3996 = vmatprep.mubr.msk.f32.mxu1 %vm1284_vm1, %v1259_v29  ;;  %v6444_v15 = vld [vmem:[#allocation12_spill] sm:$0xff] }
 0x276   :  { %3997 = vmatmul.mubr.msk.f32.gmra.mrb[22].mxu1 %vm1284_vm1, %v1260_v27  ;;  %v1262_v47 = vmax.f32 %v1204_v7, 0.0 }
 0x277   :  { %v1261_v60 = vmax.f32 %v1199_v2, 0.0  ;;  %v3940_v59 = vpop.f32.mrb[26].mxu0 }
 0x278   :  { %v1214_v51 = vadd.f32 %v3940_v59, %v5029_v45  ;;  %v1208_v11 = vpop.f32.mrb[27].mxu0 }
 0x279   :  { %v1209_v49 = vadd.f32 %v5029_v45, %v1208_v11  ;;  %3999 = vmatprep.mubr.msk.f32.mxu1 %vm1284_vm1, %v1261_v60  ;;  %v6446_v60 = vld [vmem:[#allocation11_spill] sm:$0xff] }
 0x27a   :  { %4000 = vmatmul.mubr.msk.f32.gmra.mrb[24].mxu1 %vm1284_vm1, %v1262_v47  ;;  %v1264_v39 = vmax.f32 %v1214_v51, 0.0 }
 0x27b   :  { %v1263_v44 = vmax.f32 %v1209_v49, 0.0  ;;  %v3943_v37 = vpop.f32.mrb[28].mxu0 }
 0x27c   :  { %v1224_v43 = vadd.f32 %v3943_v37, %v5029_v45  ;;  %v1218_v53 = vpop.f32.mrb[29].mxu0 }
 0x27d   :  { %v1219_v14 = vadd.f32 %v5029_v45, %v1218_v53  ;;  %4002 = vmatprep.mubr.msk.f32.mxu1 %vm1284_vm1, %v1263_v44  ;;  %v6450_v53 = vld [vmem:[#allocation13_spill] sm:$0xff] }
 0x27e   :  { %4003 = vmatmul.mubr.msk.f32.gmra.mrb[26].mxu1 %vm1284_vm1, %v1264_v39  ;;  %v1266_v56 = vmax.f32 %v1224_v43, 0.0  ;;  %v6448_v39 = vld [vmem:[#allocation14_spill] sm:$0xff] }
 0x27f   :  { %v1265_v5 = vmax.f32 %v1219_v14, 0.0  ;;  %v3946_v42 = vpop.f32.mrb[30].mxu0 }
 0x280   :  { %v1234_v22 = vadd.f32 %v3946_v42, %v5029_v45  ;;  %v1228_v32 = vpop.f32.mrb[31].mxu0 }
 0x281   :  { %v1229_v35 = vadd.f32 %v5029_v45, %v1228_v32  ;;  %4005 = vmatprep.mubr.msk.f32.mxu1 %vm1284_vm1, %v1265_v5 }
 0x282   :  { %4006 = vmatmul.mubr.msk.f32.gmra.mrb[28].mxu1 %vm1284_vm1, %v1266_v56  ;;  %v1268_v9 = vmax.f32 %v1234_v22, 0.0 }
 0x283   :  { %v1267_v62 = vmax.f32 %v1229_v35, 0.0 }
 0x285   :  { %4008 = vmatprep.mubr.msk.f32.mxu1 %vm1284_vm1, %v1267_v62  ;;  %v6452_v62 = vld [vmem:[#allocation16_spill] sm:$0xff] }
 0x286   :  { %4009 = vmatmul.mubr.msk.f32.gmra.mrb[30].mxu1 %vm1284_vm1, %v1268_v9 }
 0x31a   :  { %v3965_v54 = vpop.f32.mrb[0].mxu1 }
 0x31b   :  { %v1453_v57 = vadd.f32 %v3965_v54, %v5098_v41  ;;  %v1447_v40 = vpop.f32.mrb[1].mxu1  ;;  %v6454_v54 = vld [vmem:[#allocation15_spill] sm:$0xff] }
 0x31c   :  { %v1448_v45 = vadd.f32 %v5098_v41, %v1447_v40 }
 0x31d   :  { %v5103_v34 = vadd.f32 %v1453_v57, %v4469_v21 }
 0x31e   :  { %v5106_v10 = vadd.f32 %v1448_v45, %v4465_v19 }
 0x31f   :  { %v3968_v48 = vpop.f32.mrb[2].mxu1  ;;  %v1647_v25 = vsel %vm264_vm0, %v5103_v34, 0.0 }
 0x320   :  { %v1463_v61 = vadd.f32 %v3968_v48, %v5098_v41  ;;  %v1457_v12 = vpop.f32.mrb[3].mxu1  ;;  %1648 = vadd.xlane.f32.xlu1 %v1647_v25  ;;  %v1644_v17 = vsel %vm264_vm0, %v5106_v10, 0.0 }
 0x321   :  { %v1458_v38 = vadd.f32 %v5098_v41, %v1457_v12  ;;  %1645 = vadd.xlane.f32.xlu0 %v1644_v17  ;;  %v6456_v17 = vld [vmem:[#allocation18_spill] sm:$0xff] }
 0x322   :  { %v5115_v21 = vadd.f32 %v1463_v61, %v4478_v26  ;;  %v6438_v26 = vld [vmem:[#allocation7_spill] sm:$0xff] }
 0x323   :  { %v5118_v19 = vadd.f32 %v1458_v38, %v6436_v8  ;;  %v3971_v0 = vpop.f32.mrb[4].mxu1  ;;  %v6458_v8 = vld [vmem:[#allocation17_spill] sm:$0xff] }
 0x324   :  { %v1473_v23 = vadd.f32 %v3971_v0, %v5098_v41  ;;  %v1467_v46 = vpop.f32.mrb[5].mxu1  ;;  %v1653_v13 = vsel %vm264_vm0, %v5115_v21, 0.0 }
 0x325   :  { %v1468_v28 = vadd.f32 %v5098_v41, %v1467_v46  ;;  %1654 = vadd.xlane.f32.xlu1 %v1653_v13  ;;  %v1650_v20 = vsel %vm264_vm0, %v5118_v19, 0.0 }
 0x326   :  { %v5127_v63 = vadd.f32 %v1473_v23, %v6437_v16  ;;  %1651 = vadd.xlane.f32.xlu0 %v1650_v20 }
 0x327   :  { %v5130_v24 = vadd.f32 %v1468_v28, %v6438_v26  ;;  %v3974_v1 = vpop.f32.mrb[6].mxu1  ;;  %v6460_v26 = vld [vmem:[#allocation20_spill] sm:$0xff] }
 0x328   :  { %v1483_v55 = vadd.f32 %v3974_v1, %v5098_v41  ;;  %v1477_v3 = vpop.f32.mrb[7].mxu1  ;;  %v1659_v31 = vsel %vm264_vm0, %v5127_v63, 0.0 }
 0x329   :  { %6439 = vst [vmem:[#allocation6_spill] sm:$0xff] %v5130_v24  ;;  %v1478_v50 = vadd.f32 %v5098_v41, %v1477_v3  ;;  %1660 = vadd.xlane.f32.xlu1 %v1659_v31  ;;  %v1656_v4 = vsel %vm264_vm0, %v5130_v24, 0.0 }
 0x32a   :  { %v5139_v58 = vadd.f32 %v1483_v55, %v6440_v36  ;;  %1657 = vadd.xlane.f32.xlu0 %v1656_v4  ;;  %v6462_v55 = vld [vmem:[#allocation19_spill] sm:$0xff] }
 0x32b   :  { %v5142_v6 = vadd.f32 %v1478_v50, %v6442_v33 }
 0x32c   :  { %6441 = vst [vmem:[#allocation8_spill] sm:$0xff] %v5139_v58  ;;  %v3977_v52 = vpop.f32.mrb[8].mxu1  ;;  %v1665_v30 = vsel %vm264_vm0, %v5139_v58, 0.0 }
 0x32d   :  { %6443 = vst [vmem:[#allocation7_spill] sm:$0xff] %v5142_v6  ;;  %v1493_v29 = vadd.f32 %v3977_v52, %v5098_v41  ;;  %v1487_v18 = vpop.f32.mrb[9].mxu1  ;;  %1666 = vadd.xlane.f32.xlu1 %v1665_v30  ;;  %v1662_v27 = vsel %vm264_vm0, %v5142_v6, 0.0  ;;  %v6464_v30 = vld [vmem:[#allocation22_spill] sm:$0xff] }
 0x32e   :  { %v1488_v7 = vadd.f32 %v5098_v41, %v1487_v18  ;;  %1663 = vadd.xlane.f32.xlu0 %v1662_v27  ;;  %v6466_v18 = vld [vmem:[#allocation21_spill] sm:$0xff] }
 0x32f   :  { %v5151_v2 = vadd.f32 %v1493_v29, %v6444_v15 }
 0x330   :  { %v5154_v59 = vadd.f32 %v1488_v7, %v6446_v60 }
 0x331   :  { %6445 = vst [vmem:[#allocation10_spill] sm:$0xff] %v5151_v2  ;;  %v3980_v47 = vpop.f32.mrb[10].mxu1  ;;  %v1671_v51 = vsel %vm264_vm0, %v5151_v2, 0.0 }
 0x332   :  { %6447 = vst [vmem:[#allocation9_spill] sm:$0xff] %v5154_v59  ;;  %v1503_v11 = vadd.f32 %v3980_v47, %v5098_v41  ;;  %v1497_v49 = vpop.f32.mrb[11].mxu1  ;;  %1672 = vadd.xlane.f32.xlu1 %v1671_v51  ;;  %v1668_v44 = vsel %vm264_vm0, %v5154_v59, 0.0 }
 0x333   :  { %v1498_v37 = vadd.f32 %v5098_v41, %v1497_v49  ;;  %1669 = vadd.xlane.f32.xlu0 %v1668_v44  ;;  %v6468_v49 = vld [vmem:[#allocation24_spill] sm:$0xff] }
 0x334   :  { %v5163_v43 = vadd.f32 %v1503_v11, %v6448_v39 }
 0x335   :  { %v5166_v14 = vadd.f32 %v1498_v37, %v6450_v53  ;;  %v3983_v5 = vpop.f32.mrb[12].mxu1  ;;  %v6470_v37 = vld [vmem:[#allocation23_spill] sm:$0xff] }
 0x336   :  { %6449 = vst [vmem:[#allocation12_spill] sm:$0xff] %v5163_v43  ;;  %v1513_v42 = vadd.f32 %v3983_v5, %v5098_v41  ;;  %v1507_v56 = vpop.f32.mrb[13].mxu1  ;;  %v1677_v22 = vsel %vm264_vm0, %v5163_v43, 0.0 }
 0x337   :  { %6451 = vst [vmem:[#allocation11_spill] sm:$0xff] %v5166_v14  ;;  %v1508_v32 = vadd.f32 %v5098_v41, %v1507_v56  ;;  %1678 = vadd.xlane.f32.xlu1 %v1677_v22  ;;  %v1674_v35 = vsel %vm264_vm0, %v5166_v14, 0.0 }
 0x338   :  { %v5175_v9 = vadd.f32 %v1513_v42, %v6452_v62  ;;  %1675 = vadd.xlane.f32.xlu0 %v1674_v35  ;;  %v6472_v35 = vld [vmem:[#allocation26_spill] sm:$0xff] }
 0x339   :  { %v5178_v57 = vadd.f32 %v1508_v32, %v6454_v54  ;;  %v3986_v40 = vpop.f32.mrb[14].mxu1  ;;  %v6474_v54 = vld [vmem:[#allocation25_spill] sm:$0xff] }
 0x33a   :  { %6453 = vst [vmem:[#allocation14_spill] sm:$0xff] %v5175_v9  ;;  %v1523_v45 = vadd.f32 %v3986_v40, %v5098_v41  ;;  %v1517_v48 = vpop.f32.mrb[15].mxu1  ;;  %v1683_v25 = vsel %vm264_vm0, %v5175_v9, 0.0 }
 0x33b   :  { %6455 = vst [vmem:[#allocation13_spill] sm:$0xff] %v5178_v57  ;;  %v1518_v61 = vadd.f32 %v5098_v41, %v1517_v48  ;;  %1684 = vadd.xlane.f32.xlu1 %v1683_v25  ;;  %v1680_v12 = vsel %vm264_vm0, %v5178_v57, 0.0 }
 0x33c   :  { %v5187_v38 = vadd.f32 %v1523_v45, %v6456_v17  ;;  %1681 = vadd.xlane.f32.xlu0 %v1680_v12 }
 0x33d   :  { %v5190_v0 = vadd.f32 %v1518_v61, %v6458_v8  ;;  %v3989_v23 = vpop.f32.mrb[16].mxu1  ;;  %v6476_v8 = vld [vmem:[#allocation28_spill] sm:$0xff] }
 0x33e   :  { %6457 = vst [vmem:[#allocation16_spill] sm:$0xff] %v5187_v38  ;;  %v1533_v46 = vadd.f32 %v3989_v23, %v5098_v41  ;;  %v1527_v13 = vpop.f32.mrb[17].mxu1  ;;  %v1689_v28 = vsel %vm264_vm0, %v5187_v38, 0.0 }
 0x33f   :  { %6459 = vst [vmem:[#allocation15_spill] sm:$0xff] %v5190_v0  ;;  %v1528_v20 = vadd.f32 %v5098_v41, %v1527_v13  ;;  %1690 = vadd.xlane.f32.xlu1 %v1689_v28  ;;  %v1686_v16 = vsel %vm264_vm0, %v5190_v0, 0.0 }
 0x340   :  { %v5199_v1 = vadd.f32 %v1533_v46, %v6460_v26  ;;  %1687 = vadd.xlane.f32.xlu0 %v1686_v16  ;;  %v6478_v46 = vld [vmem:[#allocation27_spill] sm:$0xff] }
 0x341   :  { %v5202_v3 = vadd.f32 %v1528_v20, %v6462_v55  ;;  %v3992_v31 = vpop.f32.mrb[18].mxu1 }
 0x342   :  { %6461 = vst [vmem:[#allocation18_spill] sm:$0xff] %v5199_v1  ;;  %v1543_v50 = vadd.f32 %v3992_v31, %v5098_v41  ;;  %v1537_v4 = vpop.f32.mrb[19].mxu1  ;;  %v1695_v36 = vsel %vm264_vm0, %v5199_v1, 0.0 }
 0x343   :  { %6463 = vst [vmem:[#allocation17_spill] sm:$0xff] %v5202_v3  ;;  %v1538_v33 = vadd.f32 %v5098_v41, %v1537_v4  ;;  %1696 = vadd.xlane.f32.xlu1 %v1695_v36  ;;  %v1692_v52 = vsel %vm264_vm0, %v5202_v3, 0.0  ;;  %v6482_v36 = vld [vmem:[#allocation29_spill] sm:$0xff] }
 0x344   :  { %v5211_v29 = vadd.f32 %v1543_v50, %v6464_v30  ;;  %1693 = vadd.xlane.f32.xlu0 %v1692_v52  ;;  %v6480_v50 = vld [vmem:[#allocation30_spill] sm:$0xff] }
 0x345   :  { %v5214_v27 = vadd.f32 %v1538_v33, %v6466_v18  ;;  %v3995_v7 = vpop.f32.mrb[20].mxu1 }
 0x346   :  { %6465 = vst [vmem:[#allocation20_spill] sm:$0xff] %v5211_v29  ;;  %v1553_v15 = vadd.f32 %v3995_v7, %v5098_v41  ;;  %v1547_v60 = vpop.f32.mrb[21].mxu1  ;;  %v1701_v47 = vsel %vm264_vm0, %v5211_v29, 0.0 }
 0x347   :  { %6467 = vst [vmem:[#allocation19_spill] sm:$0xff] %v5214_v27  ;;  %v1548_v51 = vadd.f32 %v5098_v41, %v1547_v60  ;;  %1702 = vadd.xlane.f32.xlu1 %v1701_v47  ;;  %v1698_v11 = vsel %vm264_vm0, %v5214_v27, 0.0  ;;  %v6484_v47 = vld [vmem:[#allocation32_spill] sm:$0xff] }
 0x348   :  { %v5223_v44 = vadd.f32 %v1553_v15, %v6468_v49  ;;  %1699 = vadd.xlane.f32.xlu0 %v1698_v11  ;;  %v6486_v11 = vld [vmem:[#allocation31_spill] sm:$0xff] }
 0x349   :  { %v5226_v39 = vadd.f32 %v1548_v51, %v6470_v37  ;;  %v3998_v53 = vpop.f32.mrb[22].mxu1 }
 0x34a   :  { %6469 = vst [vmem:[#allocation22_spill] sm:$0xff] %v5223_v44  ;;  %v1563_v5 = vadd.f32 %v3998_v53, %v5098_v41  ;;  %v1557_v42 = vpop.f32.mrb[23].mxu1  ;;  %v1707_v56 = vsel %vm264_vm0, %v5223_v44, 0.0 }
 0x34b   :  { %6471 = vst [vmem:[#allocation21_spill] sm:$0xff] %v5226_v39  ;;  %v1558_v22 = vadd.f32 %v5098_v41, %v1557_v42  ;;  %1708 = vadd.xlane.f32.xlu1 %v1707_v56  ;;  %v1704_v32 = vsel %vm264_vm0, %v5226_v39, 0.0 }
 0x34c   :  { %v5235_v62 = vadd.f32 %v1563_v5, %v6472_v35  ;;  %1705 = vadd.xlane.f32.xlu0 %v1704_v32  ;;  %v6488_v32 = vld [vmem:[#allocation34_spill] sm:$0xff] }
 0x34d   :  { %v5238_v40 = vadd.f32 %v1558_v22, %v6474_v54  ;;  %v4001_v45 = vpop.f32.mrb[24].mxu1  ;;  %v6490_v54 = vld [vmem:[#allocation33_spill] sm:$0xff] }
 0x34e   :  { %6473 = vst [vmem:[#allocation24_spill] sm:$0xff] %v5235_v62  ;;  %v1573_v48 = vadd.f32 %v4001_v45, %v5098_v41  ;;  %v1567_v25 = vpop.f32.mrb[25].mxu1  ;;  %v1713_v61 = vsel %vm264_vm0, %v5235_v62, 0.0 }
 0x34f   :  { %6475 = vst [vmem:[#allocation23_spill] sm:$0xff] %v5238_v40  ;;  %v1568_v12 = vadd.f32 %v5098_v41, %v1567_v25  ;;  %1714 = vadd.xlane.f32.xlu1 %v1713_v61  ;;  %v1710_v17 = vsel %vm264_vm0, %v5238_v40, 0.0  ;;  %v3645_v61 = vld [vmem:[%s6325_s4 + $0x28] sm:$0xff] }
 0x350   :  { %v5247_v23 = vadd.f32 %v1573_v48, %v6476_v8  ;;  %1711 = vadd.xlane.f32.xlu0 %v1710_v17 }
 0x351   :  { %v5250_v13 = vadd.f32 %v1568_v12, %v6478_v46  ;;  %v4004_v28 = vpop.f32.mrb[26].mxu1 }
 0x352   :  { %6477 = vst [vmem:[#allocation26_spill] sm:$0xff] %v5247_v23  ;;  %v1583_v20 = vadd.f32 %v4004_v28, %v5098_v41  ;;  %v1577_v16 = vpop.f32.mrb[27].mxu1  ;;  %v1719_v26 = vsel %vm264_vm0, %v5247_v23, 0.0 }
 0x353   :  { %6479 = vst [vmem:[#allocation25_spill] sm:$0xff] %v5250_v13  ;;  %v1578_v55 = vadd.f32 %v5098_v41, %v1577_v16  ;;  %1720 = vadd.xlane.f32.xlu1 %v1719_v26  ;;  %v1716_v31 = vsel %vm264_vm0, %v5250_v13, 0.0 }
 0x354   :  { %v5259_v4 = vadd.f32 %v1583_v20, %v6480_v50  ;;  %1717 = vadd.xlane.f32.xlu0 %v1716_v31 }
 0x355   :  { %v5262_v33 = vadd.f32 %v1578_v55, %v6482_v36  ;;  %v4007_v52 = vpop.f32.mrb[28].mxu1 }
 0x356   :  { %6481 = vst [vmem:[#allocation28_spill] sm:$0xff] %v5259_v4  ;;  %v1593_v30 = vadd.f32 %v4007_v52, %v5098_v41  ;;  %v1587_v18 = vpop.f32.mrb[29].mxu1  ;;  %v1725_v7 = vsel %vm264_vm0, %v5259_v4, 0.0 }
 0x357   :  { %6483 = vst [vmem:[#allocation27_spill] sm:$0xff] %v5262_v33  ;;  %v1588_v15 = vadd.f32 %v5098_v41, %v1587_v18  ;;  %1726 = vadd.xlane.f32.xlu1 %v1725_v7  ;;  %v1722_v60 = vsel %vm264_vm0, %v5262_v33, 0.0 }
 0x358   :  { %v5271_v51 = vadd.f32 %v1593_v30, %v6484_v47  ;;  %1723 = vadd.xlane.f32.xlu0 %v1722_v60 }
 0x359   :  { %v5274_v49 = vadd.f32 %v1588_v15, %v6486_v11  ;;  %v4010_v37 = vpop.f32.mrb[30].mxu1 }
 0x35a   :  { %6485 = vst [vmem:[#allocation30_spill] sm:$0xff] %v5271_v51  ;;  %v1603_v53 = vadd.f32 %v4010_v37, %v5098_v41  ;;  %v1597_v5 = vpop.f32.mrb[31].mxu1  ;;  %v1731_v42 = vsel %vm264_vm0, %v5271_v51, 0.0 }
 0x35b   :  { %6487 = vst [vmem:[#allocation29_spill] sm:$0xff] %v5274_v49  ;;  %v1598_v56 = vadd.f32 %v5098_v41, %v1597_v5  ;;  %1732 = vadd.xlane.f32.xlu1 %v1731_v42  ;;  %v1728_v22 = vsel %vm264_vm0, %v5274_v49, 0.0  ;;  %v3644_v41 = vld [vmem:[%s6325_s4 + $0x20] sm:$0xff] }
 0x35c   :  { %v5283_v35 = vadd.f32 %v1603_v53, %v6488_v32  ;;  %1729 = vadd.xlane.f32.xlu0 %v1728_v22  ;;  %v4169_v12 = vpack.c.bf16 %v3645_v61, %v3644_v41 }
 0x35d   :  { %v5286_v45 = vadd.f32 %v1598_v56, %v6490_v54 }
 0x35e   :  { %6489 = vst [vmem:[#allocation32_spill] sm:$0xff] %v5283_v35  ;;  %v1737_v48 = vsel %vm264_vm0, %v5283_v35, 0.0  ;;  %4170 = vmatprep.subr.bf16.mxu0 %v4169_v12 }
 0x35f   :  { %6491 = vst [vmem:[#allocation31_spill] sm:$0xff] %v5286_v45  ;;  %1738 = vadd.xlane.f32.xlu1 %v1737_v48  ;;  %v1734_v25 = vsel %vm264_vm0, %v5286_v45, 0.0  ;;  %4172 = vmatpush3.bf16.msra.mxu0 %v4169_v12 }
 0x360   :  { %1735 = vadd.xlane.f32.xlu0 %v1734_v25 }
 0x3ad   :  { %v1649_v17 = vpop.xlane.xlu1 %1648 }
 0x3ae   :  { %v1646_v8 = vpop.xlane.xlu0 %1645 }
 0x3af   :  { %v1740_v46 = vadd.f32 %v1649_v17, %v1646_v8 }
 0x3b1   :  { %v1741_v28 = vrot.slane %v1740_v46, 4 }
 0x3b2   :  { %v1655_v20 = vpop.xlane.xlu1 %1654 }
 0x3b3   :  { %v1742_v16 = vadd.f32 %v1741_v28, %v1740_v46  ;;  %v1652_v26 = vpop.xlane.xlu0 %1651 }
 0x3b4   :  { %v1747_v55 = vadd.f32 %v1655_v20, %v1652_v26 }
 0x3b5   :  { %v1743_v31 = vrot.slane %v1742_v16, 2 }
 0x3b6   :  { %v1748_v50 = vrot.slane %v1747_v55, 4  ;;  %v1661_v36 = vpop.xlane.xlu1 %1660 }
 0x3b7   :  { %v1744_v52 = vadd.f32 %v1743_v31, %v1742_v16  ;;  %v1658_v30 = vpop.xlane.xlu0 %1657 }
 0x3b8   :  { %v1749_v18 = vadd.f32 %v1748_v50, %v1747_v55  ;;  %v1754_v7 = vadd.f32 %v1661_v36, %v1658_v30 }
 0x3b9   :  { %v1745_v15 = vrot.slane %v1744_v52, 1 }
 0x3ba   :  { %v1750_v60 = vrot.slane %v1749_v18, 2  ;;  %v1755_v47 = vrot.slane %v1754_v7, 4  ;;  %v1667_v11 = vpop.xlane.xlu1 %1666 }
 0x3bb   :  { %v1746_v37 = vadd.f32 %v1745_v15, %v1744_v52  ;;  %v1664_v53 = vpop.xlane.xlu0 %1663 }
 0x3bc   :  { %v1751_v5 = vadd.f32 %v1750_v60, %v1749_v18  ;;  %v1756_v42 = vadd.f32 %v1755_v47, %v1754_v7  ;;  %v1761_v56 = vadd.f32 %v1667_v11, %v1664_v53 }
 0x3bd   :  { %v1852_v22 = vmul.f32 0.001953125, %v1746_v37 }
 0x3be   :  { %v1752_v32 = vrot.slane %v1751_v5, 1  ;;  %v1757_v54 = vrot.slane %v1756_v42, 2  ;;  %v1762_v48 = vrot.slane %v1761_v56, 4 }
 0x3bf   :  { %v1673_v25 = vpop.xlane.xlu1 %1672  ;;  %v5299_v41 = vsub.f32 %v5103_v34, %v1852_v22  ;;  %v5302_v61 = vsub.f32 %v5106_v10, %v1852_v22 }
 0x3c0   :  { %v1753_v12 = vadd.f32 %v1752_v32, %v1751_v5  ;;  %v1758_v17 = vadd.f32 %v1757_v54, %v1756_v42  ;;  %v1763_v8 = vadd.f32 %v1762_v48, %v1761_v56  ;;  %v1670_v46 = vpop.xlane.xlu0 %1669 }
 0x3c1   :  { %v1768_v28 = vadd.f32 %v1673_v25, %v1670_v46  ;;  %v1901_v20 = vmul.f32 %v5299_v41, %v5299_v41  ;;  %v1900_v16 = vmul.f32 %v5302_v61, %v5302_v61 }
 0x3c2   :  { %v1853_v26 = vmul.f32 0.001953125, %v1753_v12  ;;  %v1759_v55 = vrot.slane %v1758_v17, 1  ;;  %v1764_v31 = vrot.slane %v1763_v8, 2 }
 0x3c3   :  { %v1769_v50 = vrot.slane %v1768_v28, 4  ;;  %v1935_v36 = vsel %vm264_vm0, %v1901_v20, 0.0  ;;  %v1932_v52 = vsel %vm264_vm0, %v1900_v16, 0.0 }
 0x3c4   :  { %v1760_v30 = vadd.f32 %v1759_v55, %v1758_v17  ;;  %v1765_v18 = vadd.f32 %v1764_v31, %v1763_v8  ;;  %v1679_v7 = vpop.xlane.xlu1 %1678  ;;  %1936 = vadd.xlane.f32.xlu1 %v1935_v36  ;;  %1933 = vadd.xlane.f32.xlu0 %v1932_v52  ;;  %v5311_v15 = vsub.f32 %v5115_v21, %v1853_v26 }
 0x3c5   :  { %v1770_v60 = vadd.f32 %v1769_v50, %v1768_v28  ;;  %v1676_v47 = vpop.xlane.xlu0 %1675  ;;  %v5314_v11 = vsub.f32 %v5118_v19, %v1853_v26 }
 0x3c6   :  { %v1854_v37 = vmul.f32 0.001953125, %v1760_v30  ;;  %v1766_v53 = vrot.slane %v1765_v18, 1  ;;  %v1775_v5 = vadd.f32 %v1679_v7, %v1676_v47  ;;  %v1903_v42 = vmul.f32 %v5311_v15, %v5311_v15 }
 0x3c7   :  { %v1771_v56 = vrot.slane %v1770_v60, 2  ;;  %v1902_v22 = vmul.f32 %v5314_v11, %v5314_v11 }
 0x3c8   :  { %v1767_v32 = vadd.f32 %v1766_v53, %v1765_v18  ;;  %v1776_v54 = vrot.slane %v1775_v5, 4  ;;  %v1685_v48 = vpop.xlane.xlu1 %1684  ;;  %v1941_v25 = vsel %vm264_vm0, %v1903_v42, 0.0  ;;  %v5322_v12 = vsub.f32 %v5127_v63, %v1854_v37 }
 0x3c9   :  { %v1772_v17 = vadd.f32 %v1771_v56, %v1770_v60  ;;  %v1682_v8 = vpop.xlane.xlu0 %1681  ;;  %1942 = vadd.xlane.f32.xlu1 %v1941_v25  ;;  %v1938_v46 = vsel %vm264_vm0, %v1902_v22, 0.0  ;;  %v5326_v28 = vsub.f32 %v5130_v24, %v1854_v37 }
 0x3ca   :  { %v1855_v20 = vmul.f32 0.001953125, %v1767_v32  ;;  %v1777_v16 = vadd.f32 %v1776_v54, %v1775_v5  ;;  %v1782_v26 = vadd.f32 %v1685_v48, %v1682_v8  ;;  %1939 = vadd.xlane.f32.xlu0 %v1938_v46  ;;  %v1905_v55 = vmul.f32 %v5322_v12, %v5322_v12 }
 0x3cb   :  { %v1773_v31 = vrot.slane %v1772_v17, 1  ;;  %v1904_v50 = vmul.f32 %v5326_v28, %v5326_v28 }
 0x3cc   :  { %v1778_v36 = vrot.slane %v1777_v16, 2  ;;  %v1783_v52 = vrot.slane %v1782_v26, 4  ;;  %v1691_v30 = vpop.xlane.xlu1 %1690  ;;  %v1947_v18 = vsel %vm264_vm0, %v1905_v55, 0.0  ;;  %v5334_v7 = vsub.f32 %v5139_v58, %v1855_v20 }
 0x3cd   :  { %v1774_v60 = vadd.f32 %v1773_v31, %v1772_v17  ;;  %v1688_v47 = vpop.xlane.xlu0 %1687  ;;  %1948 = vadd.xlane.f32.xlu1 %v1947_v18  ;;  %v1944_v37 = vsel %vm264_vm0, %v1904_v50, 0.0  ;;  %v5338_v53 = vsub.f32 %v5142_v6, %v1855_v20 }
 0x3ce   :  { %v1779_v5 = vadd.f32 %v1778_v36, %v1777_v16  ;;  %v1784_v42 = vadd.f32 %v1783_v52, %v1782_v26  ;;  %v1789_v56 = vadd.f32 %v1691_v30, %v1688_v47  ;;  %1945 = vadd.xlane.f32.xlu0 %v1944_v37  ;;  %v1907_v22 = vmul.f32 %v5334_v7, %v5334_v7 }
 0x3cf   :  { %v1856_v32 = vmul.f32 0.001953125, %v1774_v60  ;;  %v1906_v54 = vmul.f32 %v5338_v53, %v5338_v53 }
 0x3d0   :  { %v1780_v48 = vrot.slane %v1779_v5, 1  ;;  %v1785_v25 = vrot.slane %v1784_v42, 2  ;;  %v1790_v17 = vrot.slane %v1789_v56, 4  ;;  %v1697_v8 = vpop.xlane.xlu1 %1696  ;;  %v1953_v46 = vsel %vm264_vm0, %v1907_v22, 0.0 }
 0x3d1   :  { %v1694_v55 = vpop.xlane.xlu0 %1693  ;;  %1954 = vadd.xlane.f32.xlu1 %v1953_v46  ;;  %v1950_v20 = vsel %vm264_vm0, %v1906_v54, 0.0  ;;  %v5347_v16 = vsub.f32 %v5151_v2, %v1856_v32  ;;  %v5350_v26 = vsub.f32 %v5154_v59, %v1856_v32 }
 0x3d2   :  { %v1781_v31 = vadd.f32 %v1780_v48, %v1779_v5  ;;  %v1786_v50 = vadd.f32 %v1785_v25, %v1784_v42  ;;  %v1791_v36 = vadd.f32 %v1790_v17, %v1789_v56  ;;  %v1796_v52 = vadd.f32 %v1697_v8, %v1694_v55  ;;  %1951 = vadd.xlane.f32.xlu0 %v1950_v20 }
 0x3d3   :  { %v1909_v30 = vmul.f32 %v5347_v16, %v5347_v16  ;;  %v1908_v18 = vmul.f32 %v5350_v26, %v5350_v26 }
 0x3d4   :  { %v1857_v60 = vmul.f32 0.001953125, %v1781_v31  ;;  %v1787_v47 = vrot.slane %v1786_v50, 1  ;;  %v1792_v37 = vrot.slane %v1791_v36, 2  ;;  %v1797_v22 = vrot.slane %v1796_v52, 4  ;;  %v1703_v54 = vpop.xlane.xlu1 %1702 }
 0x3d5   :  { %v1700_v46 = vpop.xlane.xlu0 %1699  ;;  %v1959_v32 = vsel %vm264_vm0, %v1909_v30, 0.0  ;;  %v1956_v5 = vsel %vm264_vm0, %v1908_v18, 0.0 }
 0x3d6   :  { %v1788_v42 = vadd.f32 %v1787_v47, %v1786_v50  ;;  %v1793_v56 = vadd.f32 %v1792_v37, %v1791_v36  ;;  %v1798_v48 = vadd.f32 %v1797_v22, %v1796_v52  ;;  %v1803_v25 = vadd.f32 %v1703_v54, %v1700_v46  ;;  %1960 = vadd.xlane.f32.xlu1 %v1959_v32 }
 0x3d7   :  { %1957 = vadd.xlane.f32.xlu0 %v1956_v5  ;;  %v5359_v17 = vsub.f32 %v5163_v43, %v1857_v60  ;;  %v5362_v8 = vsub.f32 %v5166_v14, %v1857_v60 }
 0x3d8   :  { %v1858_v55 = vmul.f32 0.001953125, %v1788_v42  ;;  %v1794_v20 = vrot.slane %v1793_v56, 1  ;;  %v1799_v31 = vrot.slane %v1798_v48, 2  ;;  %v1804_v59 = vrot.slane %v1803_v25, 4  ;;  %v1709_v2 = vpop.xlane.xlu1 %1708 }
 0x3d9   :  { %v1706_v30 = vpop.xlane.xlu0 %1705  ;;  %v1911_v50 = vmul.f32 %v5359_v17, %v5359_v17  ;;  %v1910_v36 = vmul.f32 %v5362_v8, %v5362_v8 }
 0x3da   :  { %v1795_v52 = vadd.f32 %v1794_v20, %v1793_v56  ;;  %v1800_v18 = vadd.f32 %v1799_v31, %v1798_v48  ;;  %v1805_v47 = vadd.f32 %v1804_v59, %v1803_v25  ;;  %v1810_v37 = vadd.f32 %v1709_v2, %v1706_v30 }
 0x3db   :  { %v1965_v22 = vsel %vm264_vm0, %v1911_v50, 0.0  ;;  %v1962_v60 = vsel %vm264_vm0, %v1910_v36, 0.0  ;;  %v5371_v54 = vsub.f32 %v5175_v9, %v1858_v55  ;;  %v5374_v46 = vsub.f32 %v5178_v57, %v1858_v55 }
 0x3dc   :  { %v1859_v32 = vmul.f32 0.001953125, %v1795_v52  ;;  %v1801_v5 = vrot.slane %v1800_v18, 1  ;;  %v1806_v42 = vrot.slane %v1805_v47, 2  ;;  %v1811_v14 = vrot.slane %v1810_v37, 4  ;;  %1966 = vadd.xlane.f32.xlu1 %v1965_v22  ;;  %1963 = vadd.xlane.f32.xlu0 %v1962_v60  ;;  %v1715_v56 = vpop.xlane.xlu1 %1714 }
 0x3dd   :  { %v1712_v48 = vpop.xlane.xlu0 %1711  ;;  %v1913_v2 = vmul.f32 %v5371_v54, %v5371_v54  ;;  %v1912_v59 = vmul.f32 %v5374_v46, %v5374_v46 }
 0x3de   :  { %v1802_v25 = vadd.f32 %v1801_v5, %v1800_v18  ;;  %v1807_v20 = vadd.f32 %v1806_v42, %v1805_v47  ;;  %v1812_v31 = vadd.f32 %v1811_v14, %v1810_v37  ;;  %v1817_v30 = vadd.f32 %v1715_v56, %v1712_v48 }
 0x3df   :  { %v1971_v55 = vsel %vm264_vm0, %v1913_v2, 0.0  ;;  %v1968_v50 = vsel %vm264_vm0, %v1912_v59, 0.0  ;;  %v5383_v36 = vsub.f32 %v5187_v38, %v1859_v32  ;;  %v5386_v52 = vsub.f32 %v5190_v0, %v1859_v32 }
 0x3e0   :  { %v1860_v22 = vmul.f32 0.001953125, %v1802_v25  ;;  %v1808_v60 = vrot.slane %v1807_v20, 1  ;;  %v1813_v57 = vrot.slane %v1812_v31, 2  ;;  %v1818_v9 = vrot.slane %v1817_v30, 4  ;;  %1972 = vadd.xlane.f32.xlu1 %v1971_v55  ;;  %1969 = vadd.xlane.f32.xlu0 %v1968_v50  ;;  %v1721_v18 = vpop.xlane.xlu1 %1720 }
 0x3e1   :  { %v1718_v47 = vpop.xlane.xlu0 %1717  ;;  %v1915_v14 = vmul.f32 %v5383_v36, %v5383_v36  ;;  %v1914_v37 = vmul.f32 %v5386_v52, %v5386_v52 }
 0x3e2   :  { %v1809_v5 = vadd.f32 %v1808_v60, %v1807_v20  ;;  %v1814_v42 = vadd.f32 %v1813_v57, %v1812_v31  ;;  %v1819_v56 = vadd.f32 %v1818_v9, %v1817_v30  ;;  %v1824_v48 = vadd.f32 %v1721_v18, %v1718_v47 }
 0x3e3   :  { %v1977_v32 = vsel %vm264_vm0, %v1915_v14, 0.0  ;;  %v1974_v2 = vsel %vm264_vm0, %v1914_v37, 0.0  ;;  %v5395_v59 = vsub.f32 %v5199_v1, %v1860_v22  ;;  %v5398_v25 = vsub.f32 %v5202_v3, %v1860_v22 }
 0x3e4   :  { %v1861_v55 = vmul.f32 0.001953125, %v1809_v5  ;;  %v1815_v50 = vrot.slane %v1814_v42, 1  ;;  %v1820_v0 = vrot.slane %v1819_v56, 2  ;;  %v1825_v38 = vrot.slane %v1824_v48, 4  ;;  %1978 = vadd.xlane.f32.xlu1 %v1977_v32  ;;  %1975 = vadd.xlane.f32.xlu0 %v1974_v2  ;;  %v1727_v20 = vpop.xlane.xlu1 %1726 }
 0x3e5   :  { %v1724_v57 = vpop.xlane.xlu0 %1723  ;;  %v1917_v9 = vmul.f32 %v5395_v59, %v5395_v59  ;;  %v1916_v31 = vmul.f32 %v5398_v25, %v5398_v25 }
 0x3e6   :  { %v1816_v30 = vadd.f32 %v1815_v50, %v1814_v42  ;;  %v1821_v60 = vadd.f32 %v1820_v0, %v1819_v56  ;;  %v1826_v18 = vadd.f32 %v1825_v38, %v1824_v48  ;;  %v1831_v47 = vadd.f32 %v1727_v20, %v1724_v57 }
 0x3e7   :  { %v1983_v22 = vsel %vm264_vm0, %v1917_v9, 0.0  ;;  %v1980_v14 = vsel %vm264_vm0, %v1916_v31, 0.0  ;;  %v5407_v37 = vsub.f32 %v5211_v29, %v1861_v55  ;;  %v5410_v5 = vsub.f32 %v5214_v27, %v1861_v55 }
 0x3e8   :  { %v1862_v32 = vmul.f32 0.001953125, %v1816_v30  ;;  %v1822_v2 = vrot.slane %v1821_v60, 1  ;;  %v1827_v3 = vrot.slane %v1826_v18, 2  ;;  %v1832_v1 = vrot.slane %v1831_v47, 4  ;;  %1984 = vadd.xlane.f32.xlu1 %v1983_v22  ;;  %1981 = vadd.xlane.f32.xlu0 %v1980_v14  ;;  %v1733_v42 = vpop.xlane.xlu1 %1732 }
 0x3e9   :  { %v1730_v0 = vpop.xlane.xlu0 %1729  ;;  %v1919_v38 = vmul.f32 %v5407_v37, %v5407_v37  ;;  %v1918_v56 = vmul.f32 %v5410_v5, %v5410_v5 }
 0x3ea   :  { %v1823_v48 = vadd.f32 %v1822_v2, %v1821_v60  ;;  %v1828_v50 = vadd.f32 %v1827_v3, %v1826_v18  ;;  %v1833_v20 = vadd.f32 %v1832_v1, %v1831_v47  ;;  %v1838_v57 = vadd.f32 %v1733_v42, %v1730_v0 }
 0x3eb   :  { %v1989_v55 = vsel %vm264_vm0, %v1919_v38, 0.0  ;;  %v1986_v9 = vsel %vm264_vm0, %v1918_v56, 0.0  ;;  %v5419_v31 = vsub.f32 %v5223_v44, %v1862_v32  ;;  %v5422_v30 = vsub.f32 %v5226_v39, %v1862_v32 }
 0x3ec   :  { %v1863_v22 = vmul.f32 0.001953125, %v1823_v48  ;;  %v1829_v14 = vrot.slane %v1828_v50, 1  ;;  %v1834_v27 = vrot.slane %v1833_v20, 2  ;;  %v1839_v29 = vrot.slane %v1838_v57, 4  ;;  %1990 = vadd.xlane.f32.xlu1 %v1989_v55  ;;  %1987 = vadd.xlane.f32.xlu0 %v1986_v9  ;;  %v1739_v60 = vpop.xlane.xlu1 %1738  ;;  %v3646_v55 = vld [vmem:[%s6325_s4 + $0x30] sm:$0xff] }
 0x3ed   :  { %v1736_v3 = vpop.xlane.xlu0 %1735  ;;  %v1921_v1 = vmul.f32 %v5419_v31, %v5419_v31  ;;  %v1920_v18 = vmul.f32 %v5422_v30, %v5422_v30 }
 0x3ee   :  { %v1830_v47 = vadd.f32 %v1829_v14, %v1828_v50  ;;  %v1835_v2 = vadd.f32 %v1834_v27, %v1833_v20  ;;  %v1840_v42 = vadd.f32 %v1839_v29, %v1838_v57  ;;  %v1845_v0 = vadd.f32 %v1739_v60, %v1736_v3  ;;  %v3647_v27 = vld [vmem:[%s6325_s4 + $0x38] sm:$0xff] }
 0x3ef   :  { %v1995_v32 = vsel %vm264_vm0, %v1921_v1, 0.0  ;;  %v1992_v38 = vsel %vm264_vm0, %v1920_v18, 0.0  ;;  %v5431_v56 = vsub.f32 %v5235_v62, %v1863_v22  ;;  %v5434_v48 = vsub.f32 %v5238_v40, %v1863_v22 }
 0x3f0   :  { %v1864_v29 = vmul.f32 0.001953125, %v1830_v47  ;;  %v1836_v50 = vrot.slane %v1835_v2, 1  ;;  %v1841_v20 = vrot.slane %v1840_v42, 2  ;;  %v1846_v57 = vrot.slane %v1845_v0, 4  ;;  %1996 = vadd.xlane.f32.xlu1 %v1995_v32  ;;  %1993 = vadd.xlane.f32.xlu0 %v1992_v38 }
 0x3f1   :  { %v1923_v9 = vmul.f32 %v5431_v56, %v5431_v56  ;;  %v1922_v22 = vmul.f32 %v5434_v48, %v5434_v48  ;;  %v4173_v14 = vpack.c.bf16 %v3647_v27, %v3646_v55 }
 0x3f2   :  { %v1837_v60 = vadd.f32 %v1836_v50, %v1835_v2  ;;  %v1842_v3 = vadd.f32 %v1841_v20, %v1840_v42  ;;  %v1847_v1 = vadd.f32 %v1846_v57, %v1845_v0  ;;  %v5447_v18 = vsub.f32 %v5247_v23, %v1864_v29 }
 0x3f3   :  { %v2001_v47 = vsel %vm264_vm0, %v1923_v9, 0.0  ;;  %v1998_v40 = vsel %vm264_vm0, %v1922_v22, 0.0  ;;  %v5452_v32 = vsub.f32 %v5250_v13, %v1864_v29  ;;  %4174 = vmatprep.subr.bf16.mxu0 %v4173_v14 }
 0x3f4   :  { %v1865_v38 = vmul.f32 0.001953125, %v1837_v60  ;;  %v1843_v62 = vrot.slane %v1842_v3, 1  ;;  %v1848_v39 = vrot.slane %v1847_v1, 2  ;;  %2002 = vadd.xlane.f32.xlu1 %v2001_v47  ;;  %1999 = vadd.xlane.f32.xlu0 %v1998_v40  ;;  %v1925_v2 = vmul.f32 %v5447_v18, %v5447_v18 }
 0x3f5   :  { %v1924_v42 = vmul.f32 %v5452_v32, %v5452_v32  ;;  %4176 = vmatpush3.bf16.msra.mxu0 %v4173_v14 }
 0x3f6   :  { %v1844_v0 = vadd.f32 %v1843_v62, %v1842_v3  ;;  %v1849_v55 = vadd.f32 %v1848_v39, %v1847_v1  ;;  %v2007_v27 = vsel %vm264_vm0, %v1925_v2, 0.0  ;;  %v5460_v29 = vsub.f32 %v5259_v4, %v1865_v38 }
 0x3f7   :  { %v2004_v50 = vsel %vm264_vm0, %v1924_v42, 0.0  ;;  %v5464_v20 = vsub.f32 %v5262_v33, %v1865_v38 }
 0x3f8   :  { %v1866_v40 = vmul.f32 0.001953125, %v1844_v0  ;;  %v1850_v57 = vrot.slane %v1849_v55, 1  ;;  %2008 = vadd.xlane.f32.xlu1 %v2007_v27  ;;  %2005 = vadd.xlane.f32.xlu0 %v2004_v50  ;;  %v1927_v9 = vmul.f32 %v5460_v29, %v5460_v29 }
 0x3f9   :  { %v1926_v39 = vmul.f32 %v5464_v20, %v5464_v20 }
 0x3fa   :  { %v1851_v62 = vadd.f32 %v1850_v57, %v1849_v55  ;;  %v2013_v22 = vsel %vm264_vm0, %v1927_v9, 0.0  ;;  %v5472_v14 = vsub.f32 %v5271_v51, %v1866_v40  ;;  %v5475_v60 = vsub.f32 %v5274_v49, %v1866_v40  ;;  %v3682_v9 = vld [vmem:[%s6327_s6 + $0x40] sm:$0xff] }
 0x3fb   :  { %v2010_v3 = vsel %vm264_vm0, %v1926_v39, 0.0  ;;  %v3683_v39 = vld [vmem:[%s6327_s6 + $0x48] sm:$0xff] }
 0x3fc   :  { %v1867_v1 = vmul.f32 0.001953125, %v1851_v62  ;;  %2014 = vadd.xlane.f32.xlu1 %v2013_v22  ;;  %2011 = vadd.xlane.f32.xlu0 %v2010_v3  ;;  %v1929_v47 = vmul.f32 %v5472_v14, %v5472_v14  ;;  %v1928_v38 = vmul.f32 %v5475_v60, %v5475_v60  ;;  %v3684_v62 = vld [vmem:[%s6327_s6 + $0x50] sm:$0xff]  ;;  %v4177_v22 = vpack.c.bf16 %v3683_v39, %v3682_v9  ;;  %v3685_v3 = vld [vmem:[%s6327_s6 + $0x58] sm:$0xff] }
 0x3fe   :  { %v2019_v2 = vsel %vm264_vm0, %v1929_v47, 0.0  ;;  %v2016_v42 = vsel %vm264_vm0, %v1928_v38, 0.0  ;;  %v5485_v0 = vsub.f32 %v5283_v35, %v1867_v1  ;;  %v5488_v55 = vsub.f32 %v5286_v45, %v1867_v1  ;;  %v3686_v47 = vld [vmem:[%s6327_s6 + $0x60] sm:$0xff]  ;;  %v3687_v38 = vld [vmem:[%s6327_s6 + $0x68] sm:$0xff]  ;;  %4178 = vmatprep.subr.bf16.mxu1 %v4177_v22 }
 0x3ff   :  { %v4181_v1 = vpack.c.bf16 %v3685_v3, %v3684_v62  ;;  %4180 = vmatpush3.bf16.msra.mxu1 %v4177_v22 }
 0x400   :  { %2020 = vadd.xlane.f32.xlu1 %v2019_v2  ;;  %2017 = vadd.xlane.f32.xlu0 %v2016_v42  ;;  %v1931_v27 = vmul.f32 %v5485_v0, %v5485_v0  ;;  %v1930_v50 = vmul.f32 %v5488_v55, %v5488_v55  ;;  %v4185_v2 = vpack.c.bf16 %v3687_v38, %v3686_v47  ;;  %v3688_v42 = vld [vmem:[%s6327_s6 + $0x70] sm:$0xff] }
 0x401   :  { %4182 = vmatprep.subr.bf16.mxu1 %v4181_v1 }
 0x402   :  { %v2025_v40 = vsel %vm264_vm0, %v1931_v27, 0.0  ;;  %v2022_v57 = vsel %vm264_vm0, %v1930_v50, 0.0  ;;  %v3689_v27 = vld [vmem:[%s6327_s6 + $0x78] sm:$0xff] }
 0x403   :  { %4184 = vmatpush3.bf16.msra.mxu1 %v4181_v1  ;;  %v4189_v50 = vpack.c.bf16 %v3689_v27, %v3688_v42 }
 0x404   :  { %2026 = vadd.xlane.f32.xlu1 %v2025_v40  ;;  %2023 = vadd.xlane.f32.xlu0 %v2022_v57 }
 0x405   :  { %4186 = vmatprep.subr.bf16.mxu1 %v4185_v2 }
 0x407   :  { %4188 = vmatpush3.bf16.msra.mxu1 %v4185_v2 }
 0x408   :  { %4190 = vmatprep.subr.bf16.mxu1 %v4189_v50 }
 0x40b   :  { %4192 = vmatpush3.bf16.msra.mxu1 %v4189_v50 }
 0x451   :  { %v1937_v40 = vpop.xlane.xlu1 %1936  ;;  %v1934_v57 = vpop.xlane.xlu0 %1933 }
 0x452   :  { %v2028_v9 = vadd.f32 %v1937_v40, %v1934_v57 }
 0x454   :  { %v2029_v39 = vrot.slane %v2028_v9, 4 }
 0x456   :  { %v2030_v62 = vadd.f32 %v2029_v39, %v2028_v9  ;;  %v1943_v22 = vpop.xlane.xlu1 %1942 }
 0x457   :  { %v1940_v3 = vpop.xlane.xlu0 %1939 }
 0x458   :  { %v2031_v47 = vrot.slane %v2030_v62, 2  ;;  %v2035_v38 = vadd.f32 %v1943_v22, %v1940_v3 }
 0x45a   :  { %v2032_v35 = vadd.f32 %v2031_v47, %v2030_v62  ;;  %v2036_v45 = vrot.slane %v2035_v38, 4  ;;  %v1949_v49 = vpop.xlane.xlu1 %1948 }
 0x45b   :  { %v1946_v51 = vpop.xlane.xlu0 %1945 }
 0x45c   :  { %v2033_v4 = vrot.slane %v2032_v35, 1  ;;  %v2037_v1 = vadd.f32 %v2036_v45, %v2035_v38  ;;  %v2042_v33 = vadd.f32 %v1949_v49, %v1946_v51 }
 0x45e   :  { %v2034_v42 = vadd.f32 %v2033_v4, %v2032_v35  ;;  %v2038_v2 = vrot.slane %v2037_v1, 2  ;;  %v2043_v27 = vrot.slane %v2042_v33, 4  ;;  %v1955_v50 = vpop.xlane.xlu1 %1954 }
 0x45f   :  { %v1952_v13 = vpop.xlane.xlu0 %1951 }
 0x460   :  { %v2140_v23 = vmul.f32 0.001953125, %v2034_v42  ;;  %v2039_v40 = vadd.f32 %v2038_v2, %v2037_v1  ;;  %v2044_v57 = vadd.f32 %v2043_v27, %v2042_v33  ;;  %v2049_v9 = vadd.f32 %v1955_v50, %v1952_v13 }
 0x462   :  { %v2156_v39 = vadd.f32 1e-05, %v2140_v23  ;;  %v2040_v44 = vrot.slane %v2039_v40, 1  ;;  %v2045_v43 = vrot.slane %v2044_v57, 2  ;;  %v2050_v22 = vrot.slane %v2049_v9, 4 }
 0x463   :  { %v1961_v62 = vpop.xlane.xlu1 %1960 }
 0x464   :  { %4241 = vrsqrt.f32 %v2156_v39  ;;  %v2041_v3 = vadd.f32 %v2040_v44, %v2039_v40  ;;  %v2046_v47 = vadd.f32 %v2045_v43, %v2044_v57  ;;  %v2051_v6 = vadd.f32 %v2050_v22, %v2049_v9  ;;  %v1958_v45 = vpop.xlane.xlu0 %1957 }
 0x465   :  { %v2056_v51 = vadd.f32 %v1961_v62, %v1958_v45 }
 0x466   :  { %v2141_v4 = vmul.f32 0.001953125, %v2041_v3  ;;  %v2047_v49 = vrot.slane %v2046_v47, 1  ;;  %v2052_v35 = vrot.slane %v2051_v6, 2 }
 0x467   :  { %v2057_v38 = vrot.slane %v2056_v51, 4 }
 0x468   :  { %v2157_v58 = vadd.f32 1e-05, %v2141_v4  ;;  %v2048_v42 = vadd.f32 %v2047_v49, %v2046_v47  ;;  %v2053_v1 = vadd.f32 %v2052_v35, %v2051_v6  ;;  %v5523_v6 = vld [vmem:[%s6323_s2 + $0x10] sm:$0xff] }
 0x469   :  { %v2058_v33 = vadd.f32 %v2057_v38, %v2056_v51  ;;  %v1967_v13 = vpop.xlane.xlu1 %1966  ;;  %v1964_v23 = vpop.xlane.xlu0 %1963 }
 0x46a   :  { %4243 = vrsqrt.f32 %v2157_v58  ;;  %v2142_v2 = vmul.f32 0.001953125, %v2048_v42  ;;  %v2054_v27 = vrot.slane %v2053_v1, 1  ;;  %v2063_v50 = vadd.f32 %v1967_v13, %v1964_v23  ;;  %v5528_v58 = vld [vmem:[%s6323_s2 + $0x18] sm:$0xff] }
 0x46b   :  { %v2059_v39 = vrot.slane %v2058_v33, 2 }
 0x46c   :  { %v2158_v44 = vadd.f32 1e-05, %v2142_v2  ;;  %v2055_v43 = vadd.f32 %v2054_v27, %v2053_v1  ;;  %v2064_v40 = vrot.slane %v2063_v50, 4  ;;  %v5535_v1 = vld [vmem:[%s6324_s3 + $0x10] sm:$0xff] }
 0x46d   :  { %v2060_v57 = vadd.f32 %v2059_v39, %v2058_v33  ;;  %v1973_v9 = vpop.xlane.xlu1 %1972  ;;  %v1970_v22 = vpop.xlane.xlu0 %1969  ;;  %v5540_v33 = vld [vmem:[%s6324_s3 + $0x18] sm:$0xff] }
 0x46e   :  { %v4242_v62 = vpop.eup %4241  ;;  %4245 = vrsqrt.f32 %v2158_v44  ;;  %v2143_v3 = vmul.f32 0.001953125, %v2055_v43  ;;  %v2065_v45 = vadd.f32 %v2064_v40, %v2063_v50  ;;  %v2070_v47 = vadd.f32 %v1973_v9, %v1970_v22 }
 0x46f   :  { %v2189_v51 = vmul.f32 %v4242_v62, %v5299_v41  ;;  %v2061_v4 = vrot.slane %v2060_v57, 1  ;;  %v2188_v49 = vmul.f32 %v4242_v62, %v5302_v61 }
 0x470   :  { %v2159_v35 = vadd.f32 1e-05, %v2143_v3  ;;  %v2066_v38 = vrot.slane %v2065_v45, 2  ;;  %v2071_v42 = vrot.slane %v2070_v47, 4 }
 0x471   :  { %v2062_v13 = vadd.f32 %v2061_v4, %v2060_v57  ;;  %v1979_v23 = vpop.xlane.xlu1 %1978  ;;  %v1976_v2 = vpop.xlane.xlu0 %1975  ;;  %v2220_v41 = vmul.f32 %v5523_v6, %v2188_v49  ;;  %v2221_v61 = vmul.f32 %v5528_v58, %v2189_v51 }
 0x472   :  { %4247 = vrsqrt.f32 %v2159_v35  ;;  %v2067_v27 = vadd.f32 %v2066_v38, %v2065_v45  ;;  %v2072_v50 = vadd.f32 %v2071_v42, %v2070_v47  ;;  %v2077_v39 = vadd.f32 %v1979_v23, %v1976_v2 }
 0x473   :  { %v2144_v44 = vmul.f32 0.001953125, %v2062_v13  ;;  %v2252_v43 = vadd.f32 %v5535_v1, %v2220_v41  ;;  %v2253_v40 = vadd.f32 %v5540_v33, %v2221_v61 }
 0x474   :  { %v4244_v9 = vpop.eup %4243  ;;  %v2068_v22 = vrot.slane %v2067_v27, 1  ;;  %v2073_v62 = vrot.slane %v2072_v50, 2  ;;  %v2078_v3 = vrot.slane %v2077_v39, 4 }
 0x475   :  { %v2160_v57 = vadd.f32 1e-05, %v2144_v44  ;;  %v1985_v4 = vpop.xlane.xlu1 %1984  ;;  %v1982_v24 = vpop.xlane.xlu0 %1981  ;;  %4019 = vmatprep.mubr.msk.f32.mxu0 %vm264_vm0, %v2252_v43  ;;  %v2190_v51 = vmul.f32 %v4244_v9, %v5314_v11  ;;  %v2191_v45 = vmul.f32 %v4244_v9, %v5311_v15 }
 0x476   :  { %v2069_v47 = vadd.f32 %v2068_v22, %v2067_v27  ;;  %v2074_v49 = vadd.f32 %v2073_v62, %v2072_v50  ;;  %v2079_v35 = vadd.f32 %v2078_v3, %v2077_v39  ;;  %v2084_v38 = vadd.f32 %v1985_v4, %v1982_v24  ;;  %4020 = vmatmul.mubr.msk.f32.vlgmr.msra.gmra.mrb[32].mxu0 %vm264_vm0, %v2253_v40 }
 0x477   :  { %4249 = vrsqrt.f32 %v2160_v57  ;;  %v2222_v42 = vmul.f32 %v5523_v6, %v2190_v51  ;;  %v2223_v13 = vmul.f32 %v5528_v58, %v2191_v45 }
 0x478   :  { %v4246_v23 = vpop.eup %4245  ;;  %v2145_v2 = vmul.f32 0.001953125, %v2069_v47  ;;  %v2075_v41 = vrot.slane %v2074_v49, 1  ;;  %v2080_v61 = vrot.slane %v2079_v35, 2  ;;  %v2085_v44 = vrot.slane %v2084_v38, 4 }
 0x479   :  { %v1991_v43 = vpop.xlane.xlu1 %1990  ;;  %v1988_v11 = vpop.xlane.xlu0 %1987  ;;  %v2254_v15 = vadd.f32 %v5535_v1, %v2222_v42  ;;  %v2255_v27 = vadd.f32 %v5540_v33, %v2223_v13  ;;  %v2192_v24 = vmul.f32 %v4246_v23, %v5326_v28  ;;  %v2193_v50 = vmul.f32 %v4246_v23, %v5322_v12 }
 0x47a   :  { %v2161_v39 = vadd.f32 1e-05, %v2145_v2  ;;  %v2076_v40 = vadd.f32 %v2075_v41, %v2074_v49  ;;  %v2081_v9 = vadd.f32 %v2080_v61, %v2079_v35  ;;  %v2086_v22 = vadd.f32 %v2085_v44, %v2084_v38 }
 0x47b   :  { %v2091_v62 = vadd.f32 %v1991_v43, %v1988_v11  ;;  %4022 = vmatprep.mubr.msk.f32.mxu0 %vm264_vm0, %v2254_v15  ;;  %v2224_v3 = vmul.f32 %v5523_v6, %v2192_v24  ;;  %v2225_v57 = vmul.f32 %v5528_v58, %v2193_v50 }
 0x47c   :  { %v4248_v4 = vpop.eup %4247  ;;  %4251 = vrsqrt.f32 %v2161_v39  ;;  %v2146_v51 = vmul.f32 0.001953125, %v2076_v40  ;;  %v2082_v45 = vrot.slane %v2081_v9, 1  ;;  %v2087_v47 = vrot.slane %v2086_v22, 2  ;;  %4023 = vmatmul.mubr.msk.f32.gmra.mrb[34].mxu0 %vm264_vm0, %v2255_v27 }
 0x47d   :  { %v2092_v28 = vrot.slane %v2091_v62, 4  ;;  %v1997_v12 = vpop.xlane.xlu1 %1996  ;;  %v1994_v42 = vpop.xlane.xlu0 %1993  ;;  %v2256_v49 = vadd.f32 %v5535_v1, %v2224_v3  ;;  %v2257_v35 = vadd.f32 %v5540_v33, %v2225_v57  ;;  %v2194_v38 = vmul.f32 %v4248_v4, %v5338_v53 }
 0x47e   :  { %v2162_v13 = vadd.f32 1e-05, %v2146_v51  ;;  %v2083_v23 = vadd.f32 %v2082_v45, %v2081_v9  ;;  %v2088_v2 = vadd.f32 %v2087_v47, %v2086_v22  ;;  %v2098_v41 = vadd.f32 %v1997_v12, %v1994_v42 }
 0x47f   :  { %v2093_v61 = vadd.f32 %v2092_v28, %v2091_v62  ;;  %4025 = vmatprep.mubr.msk.f32.mxu0 %vm264_vm0, %v2256_v49  ;;  %v2226_v44 = vmul.f32 %v5523_v6, %v2194_v38  ;;  %v2195_v43 = vmul.f32 %v4248_v4, %v5334_v7 }
 0x480   :  { %4253 = vrsqrt.f32 %v2162_v13  ;;  %v2147_v11 = vmul.f32 0.001953125, %v2083_v23  ;;  %v2089_v15 = vrot.slane %v2088_v2, 1  ;;  %v2099_v27 = vrot.slane %v2098_v41, 4  ;;  %4026 = vmatmul.mubr.msk.f32.gmra.mrb[36].mxu0 %vm264_vm0, %v2257_v35 }
 0x481   :  { %v4250_v24 = vpop.eup %4249  ;;  %v2094_v50 = vrot.slane %v2093_v61, 2  ;;  %v2003_v53 = vpop.xlane.xlu1 %2002  ;;  %v2258_v40 = vadd.f32 %v5535_v1, %v2226_v44  ;;  %v2227_v9 = vmul.f32 %v5528_v58, %v2195_v43 }
 0x482   :  { %v2000_v39 = vpop.xlane.xlu0 %1999  ;;  %v2163_v22 = vadd.f32 1e-05, %v2147_v11  ;;  %v2090_v62 = vadd.f32 %v2089_v15, %v2088_v2  ;;  %v2100_v3 = vadd.f32 %v2099_v27, %v2098_v41  ;;  %v2196_v4 = vmul.f32 %v4250_v24, %v5350_v26 }
 0x483   :  { %v2105_v57 = vadd.f32 %v2003_v53, %v2000_v39  ;;  %v2095_v51 = vadd.f32 %v2094_v50, %v2093_v61  ;;  %4028 = vmatprep.mubr.msk.f32.mxu0 %vm264_vm0, %v2258_v40  ;;  %v2259_v7 = vadd.f32 %v5540_v33, %v2227_v9  ;;  %v2197_v45 = vmul.f32 %v4250_v24, %v5347_v16 }
 0x484   :  { %4255 = vrsqrt.f32 %v2163_v22  ;;  %v2148_v47 = vmul.f32 0.001953125, %v2090_v62  ;;  %v2101_v28 = vrot.slane %v2100_v3, 2  ;;  %v2228_v38 = vmul.f32 %v5523_v6, %v2196_v4 }
 0x485   :  { %v2106_v12 = vrot.slane %v2105_v57, 4  ;;  %v2096_v42 = vrot.slane %v2095_v51, 1  ;;  %v2009_v49 = vpop.xlane.xlu1 %2008  ;;  %4029 = vmatmul.mubr.msk.f32.gmra.mrb[38].mxu0 %vm264_vm0, %v2259_v7  ;;  %v2229_v13 = vmul.f32 %v5528_v58, %v2197_v45 }
 0x486   :  { %v2006_v35 = vpop.xlane.xlu0 %2005  ;;  %v4252_v23 = vpop.eup %4251  ;;  %v2164_v2 = vadd.f32 1e-05, %v2148_v47  ;;  %v2102_v41 = vadd.f32 %v2101_v28, %v2100_v3  ;;  %v2260_v16 = vadd.f32 %v5535_v1, %v2228_v38 }
 0x487   :  { %v2107_v61 = vadd.f32 %v2106_v12, %v2105_v57  ;;  %v2112_v26 = vadd.f32 %v2009_v49, %v2006_v35  ;;  %v2097_v44 = vadd.f32 %v2096_v42, %v2095_v51  ;;  %v2261_v43 = vadd.f32 %v5540_v33, %v2229_v13 }
 0x488   :  { %v2198_v11 = vmul.f32 %v4252_v23, %v5362_v8  ;;  %4257 = vrsqrt.f32 %v2164_v2  ;;  %v2103_v15 = vrot.slane %v2102_v41, 1  ;;  %4031 = vmatprep.mubr.msk.f32.mxu0 %vm264_vm0, %v2260_v16  ;;  %v2199_v9 = vmul.f32 %v4252_v23, %v5359_v17 }
 0x489   :  { %v2108_v27 = vrot.slane %v2107_v61, 2  ;;  %v2113_v24 = vrot.slane %v2112_v26, 4  ;;  %v2149_v50 = vmul.f32 0.001953125, %v2097_v44  ;;  %v2015_v53 = vpop.xlane.xlu1 %2014  ;;  %4032 = vmatmul.mubr.msk.f32.gmra.mrb[40].mxu0 %vm264_vm0, %v2261_v43 }
 0x48a   :  { %v2012_v39 = vpop.xlane.xlu0 %2011  ;;  %v2230_v40 = vmul.f32 %v5523_v6, %v2198_v11  ;;  %v4254_v22 = vpop.eup %4253  ;;  %v2104_v62 = vadd.f32 %v2103_v15, %v2102_v41  ;;  %v2231_v4 = vmul.f32 %v5528_v58, %v2199_v9 }
 0x48b   :  { %v2109_v3 = vadd.f32 %v2108_v27, %v2107_v61  ;;  %v2114_v57 = vadd.f32 %v2113_v24, %v2112_v26  ;;  %v2119_v51 = vadd.f32 %v2015_v53, %v2012_v39  ;;  %v2165_v8 = vadd.f32 1e-05, %v2149_v50 }
 0x48c   :  { %v2262_v7 = vadd.f32 %v5535_v1, %v2230_v40  ;;  %v2200_v45 = vmul.f32 %v4254_v22, %v5374_v46  ;;  %v2150_v47 = vmul.f32 0.001953125, %v2104_v62  ;;  %v2263_v35 = vadd.f32 %v5540_v33, %v2231_v4 }
 0x48d   :  { %v2110_v28 = vrot.slane %v2109_v3, 1  ;;  %v2115_v12 = vrot.slane %v2114_v57, 2  ;;  %v2120_v42 = vrot.slane %v2119_v51, 4  ;;  %4259 = vrsqrt.f32 %v2165_v8  ;;  %v2021_v17 = vpop.xlane.xlu1 %2020 }
 0x48e   :  { %4034 = vmatprep.mubr.msk.f32.mxu0 %vm264_vm0, %v2262_v7  ;;  %v2018_v49 = vpop.xlane.xlu0 %2017  ;;  %v2232_v38 = vmul.f32 %v5523_v6, %v2200_v45  ;;  %v2201_v13 = vmul.f32 %v4254_v22, %v5371_v54  ;;  %v4256_v23 = vpop.eup %4255  ;;  %v2166_v2 = vadd.f32 1e-05, %v2150_v47 }
 0x48f   :  { %v2111_v41 = vadd.f32 %v2110_v28, %v2109_v3  ;;  %v2116_v61 = vadd.f32 %v2115_v12, %v2114_v57  ;;  %v2121_v46 = vadd.f32 %v2120_v42, %v2119_v51  ;;  %v2126_v26 = vadd.f32 %v2021_v17, %v2018_v49  ;;  %4035 = vmatmul.mubr.msk.f32.gmra.mrb[42].mxu0 %vm264_vm0, %v2263_v35 }
 0x490   :  { %v2264_v44 = vadd.f32 %v5535_v1, %v2232_v38  ;;  %v2233_v16 = vmul.f32 %v5528_v58, %v2201_v13  ;;  %v2202_v43 = vmul.f32 %v4256_v23, %v5386_v52  ;;  %4261 = vrsqrt.f32 %v2166_v2 }
 0x491   :  { %v2151_v11 = vmul.f32 0.001953125, %v2111_v41  ;;  %v2117_v15 = vrot.slane %v2116_v61, 1  ;;  %v2122_v27 = vrot.slane %v2121_v46, 2  ;;  %v2127_v24 = vrot.slane %v2126_v26, 4  ;;  %v2027_v54 = vpop.xlane.xlu1 %2026 }
 0x492   :  { %4037 = vmatprep.mubr.msk.f32.mxu0 %vm264_vm0, %v2264_v44  ;;  %v2024_v50 = vpop.xlane.xlu0 %2023  ;;  %v2265_v53 = vadd.f32 %v5540_v33, %v2233_v16  ;;  %v2234_v39 = vmul.f32 %v5523_v6, %v2202_v43  ;;  %v2203_v40 = vmul.f32 %v4256_v23, %v5383_v36  ;;  %v4258_v9 = vpop.eup %4257 }
 0x493   :  { %v2167_v22 = vadd.f32 1e-05, %v2151_v11  ;;  %v2118_v62 = vadd.f32 %v2117_v15, %v2116_v61  ;;  %v2123_v3 = vadd.f32 %v2122_v27, %v2121_v46  ;;  %v2133_v52 = vadd.f32 %v2027_v54, %v2024_v50 }
 0x494   :  { %v2128_v57 = vadd.f32 %v2127_v24, %v2126_v26  ;;  %4038 = vmatmul.mubr.msk.f32.gmra.mrb[44].mxu0 %vm264_vm0, %v2265_v53  ;;  %v2266_v51 = vadd.f32 %v5535_v1, %v2234_v39  ;;  %v2235_v8 = vmul.f32 %v5528_v58, %v2203_v40  ;;  %v2204_v7 = vmul.f32 %v4258_v9, %v5398_v25 }
 0x495   :  { %4263 = vrsqrt.f32 %v2167_v22  ;;  %v2152_v4 = vmul.f32 0.001953125, %v2118_v62  ;;  %v2124_v45 = vrot.slane %v2123_v3, 1  ;;  %v2134_v47 = vrot.slane %v2133_v52, 4 }
 0x496   :  { %v2129_v28 = vrot.slane %v2128_v57, 2  ;;  %4040 = vmatprep.mubr.msk.f32.mxu0 %vm264_vm0, %v2266_v51  ;;  %v2267_v36 = vadd.f32 %v5540_v33, %v2235_v8  ;;  %v2236_v12 = vmul.f32 %v5523_v6, %v2204_v7  ;;  %v2205_v42 = vmul.f32 %v4258_v9, %v5395_v59 }
 0x497   :  { %v2168_v17 = vadd.f32 1e-05, %v2152_v4  ;;  %v2125_v49 = vadd.f32 %v2124_v45, %v2123_v3  ;;  %v2135_v35 = vadd.f32 %v2134_v47, %v2133_v52  ;;  %v4260_v38 = vpop.eup %4259 }
 0x498   :  { %v2130_v13 = vadd.f32 %v2129_v28, %v2128_v57  ;;  %4041 = vmatmul.mubr.msk.f32.gmra.mrb[46].mxu0 %vm264_vm0, %v2267_v36  ;;  %v2268_v25 = vadd.f32 %v5535_v1, %v2236_v12  ;;  %v2237_v23 = vmul.f32 %v5528_v58, %v2205_v42  ;;  %v2206_v61 = vmul.f32 %v4260_v38, %v5410_v5 }
 0x499   :  { %4265 = vrsqrt.f32 %v2168_v17  ;;  %v2153_v2 = vmul.f32 0.001953125, %v2125_v49  ;;  %v2136_v41 = vrot.slane %v2135_v35, 2  ;;  %v2207_v26 = vmul.f32 %v4260_v38, %v5407_v37 }
 0x49a   :  { %v2131_v46 = vrot.slane %v2130_v13, 1  ;;  %4043 = vmatprep.mubr.msk.f32.mxu0 %vm264_vm0, %v2268_v25  ;;  %v2269_v59 = vadd.f32 %v5540_v33, %v2237_v23  ;;  %v4262_v44 = vpop.eup %4261  ;;  %v2238_v11 = vmul.f32 %v5523_v6, %v2206_v61 }
 0x49b   :  { %v2169_v16 = vadd.f32 1e-05, %v2153_v2  ;;  %v2137_v43 = vadd.f32 %v2136_v41, %v2135_v35  ;;  %v2239_v27 = vmul.f32 %v5528_v58, %v2207_v26  ;;  %v2208_v24 = vmul.f32 %v4262_v44, %v5422_v30 }
 0x49c   :  { %v2132_v15 = vadd.f32 %v2131_v46, %v2130_v13  ;;  %4044 = vmatmul.mubr.msk.f32.gmra.mrb[48].mxu0 %vm264_vm0, %v2269_v59  ;;  %v2209_v5 = vmul.f32 %v4262_v44, %v5419_v31  ;;  %v2270_v50 = vadd.f32 %v5535_v1, %v2238_v11 }
 0x49d   :  { %4267 = vrsqrt.f32 %v2169_v16  ;;  %v2138_v54 = vrot.slane %v2137_v43, 1  ;;  %v2271_v37 = vadd.f32 %v5540_v33, %v2239_v27  ;;  %v2240_v39 = vmul.f32 %v5523_v6, %v2208_v24 }
 0x49e   :  { %v2154_v53 = vmul.f32 0.001953125, %v2132_v15  ;;  %v2241_v40 = vmul.f32 %v5528_v58, %v2209_v5  ;;  %4046 = vmatprep.mubr.msk.f32.mxu0 %vm264_vm0, %v2270_v50 }
 0x49f   :  { %v4264_v9 = vpop.eup %4263  ;;  %v2139_v22 = vadd.f32 %v2138_v54, %v2137_v43  ;;  %v2272_v31 = vadd.f32 %v5535_v1, %v2240_v39 }
 0x4a0   :  { %v2170_v62 = vadd.f32 1e-05, %v2154_v53  ;;  %4047 = vmatmul.mubr.msk.f32.gmra.mrb[50].mxu0 %vm264_vm0, %v2271_v37  ;;  %v2273_v30 = vadd.f32 %v5540_v33, %v2241_v40  ;;  %v2210_v3 = vmul.f32 %v4264_v9, %v5434_v48  ;;  %v2211_v57 = vmul.f32 %v4264_v9, %v5431_v56 }
 0x4a1   :  { %v2155_v52 = vmul.f32 0.001953125, %v2139_v22  ;;  %4049 = vmatprep.mubr.msk.f32.mxu0 %vm264_vm0, %v2272_v31 }
 0x4a2   :  { %4269 = vrsqrt.f32 %v2170_v62  ;;  %v2242_v51 = vmul.f32 %v5523_v6, %v2210_v3  ;;  %v2243_v4 = vmul.f32 %v5528_v58, %v2211_v57 }
 0x4a3   :  { %v4266_v8 = vpop.eup %4265  ;;  %v2171_v7 = vadd.f32 1e-05, %v2155_v52 }
 0x4a4   :  { %4050 = vmatmul.mubr.msk.f32.gmra.mrb[52].mxu0 %vm264_vm0, %v2273_v30  ;;  %v2274_v45 = vadd.f32 %v5535_v1, %v2242_v51  ;;  %v2212_v47 = vmul.f32 %v4266_v8, %v5452_v32  ;;  %v2213_v48 = vmul.f32 %v4266_v8, %v5447_v18  ;;  %v2275_v56 = vadd.f32 %v5540_v33, %v2243_v4 }
 0x4a5   :  { %4271 = vrsqrt.f32 %v2171_v7 }
 0x4a6   :  { %4052 = vmatprep.mubr.msk.f32.mxu0 %vm264_vm0, %v2274_v45  ;;  %v2244_v28 = vmul.f32 %v5523_v6, %v2212_v47  ;;  %v2245_v36 = vmul.f32 %v5528_v58, %v2213_v48 }
 0x4a7   :  { %v4268_v12 = vpop.eup %4267 }
 0x4a8   :  { %4053 = vmatmul.mubr.msk.f32.gmra.mrb[54].mxu0 %vm264_vm0, %v2275_v56  ;;  %v2276_v42 = vadd.f32 %v5535_v1, %v2244_v28  ;;  %v2277_v17 = vadd.f32 %v5540_v33, %v2245_v36  ;;  %v2214_v32 = vmul.f32 %v4268_v12, %v5464_v20  ;;  %v2215_v18 = vmul.f32 %v4268_v12, %v5460_v29 }
 0x4aa   :  { %4055 = vmatprep.mubr.msk.f32.mxu0 %vm264_vm0, %v2276_v42  ;;  %v2246_v49 = vmul.f32 %v5523_v6, %v2214_v32  ;;  %v2247_v35 = vmul.f32 %v5528_v58, %v2215_v18 }
 0x4ac   :  { %v4270_v38 = vpop.eup %4269  ;;  %4056 = vmatmul.mubr.msk.f32.gmra.mrb[56].mxu0 %vm264_vm0, %v2277_v17  ;;  %v2278_v13 = vadd.f32 %v5535_v1, %v2246_v49  ;;  %v2279_v25 = vadd.f32 %v5540_v33, %v2247_v35 }
 0x4ad   :  { %v2216_v23 = vmul.f32 %v4270_v38, %v5475_v60  ;;  %v2217_v2 = vmul.f32 %v4270_v38, %v5472_v14 }
 0x4ae   :  { %4058 = vmatprep.mubr.msk.f32.mxu0 %vm264_vm0, %v2278_v13 }
 0x4af   :  { %v4272_v29 = vpop.eup %4271  ;;  %v2248_v20 = vmul.f32 %v5523_v6, %v2216_v23  ;;  %v2249_v41 = vmul.f32 %v5528_v58, %v2217_v2 }
 0x4b0   :  { %4059 = vmatmul.mubr.msk.f32.gmra.mrb[58].mxu0 %vm264_vm0, %v2279_v25  ;;  %v2218_v61 = vmul.f32 %v4272_v29, %v5488_v55  ;;  %v2219_v46 = vmul.f32 %v4272_v29, %v5485_v0  ;;  %v5671_v0 = vld [vmem:[%s6326_s5 + $0x1] ss:$0 sm:$0xff] }
 0x4b1   :  { %v2280_v59 = vadd.f32 %v5535_v1, %v2248_v20  ;;  %v2281_v26 = vadd.f32 %v5540_v33, %v2249_v41 }
 0x4b2   :  { %v2250_v60 = vmul.f32 %v5523_v6, %v2218_v61  ;;  %v2251_v14 = vmul.f32 %v5528_v58, %v2219_v46 }
 0x4b3   :  { %4061 = vmatprep.mubr.msk.f32.mxu0 %vm264_vm0, %v2280_v59 }
 0x4b4   :  { %4062 = vmatmul.mubr.msk.f32.gmra.mrb[60].mxu0 %vm264_vm0, %v2281_v26  ;;  %v2282_v44 = vadd.f32 %v5535_v1, %v2250_v60  ;;  %v2283_v16 = vadd.f32 %v5540_v33, %v2251_v14 }
 0x4b6   :  { %4064 = vmatprep.mubr.msk.f32.mxu0 %vm264_vm0, %v2282_v44 }
 0x4b8   :  { %4065 = vmatmul.mubr.msk.f32.gmra.mrb[62].mxu0 %vm264_vm0, %v2283_v16 }
 0x549   :  { %v4021_v55 = vpop.f32.mrb[32].mxu0 }
 0x54a   :  { %v2465_v6 = vadd.f32 %v4021_v55, %v5671_v0  ;;  %v2459_v58 = vpop.f32.mrb[33].mxu0 }
 0x54b   :  { %v2460_v43 = vadd.f32 %v5671_v0, %v2459_v58 }
 0x54c   :  { %v2619_v15 = vmax.f32 %v2465_v6, 0.0 }
 0x54d   :  { %v2618_v11 = vmax.f32 %v2460_v43, 0.0 }
 0x54f   :  { %v4024_v1 = vpop.f32.mrb[34].mxu0  ;;  %4083 = vmatprep.mubr.msk.f32.mxu1 %vm1284_vm1, %v2618_v11 }
 0x550   :  { %v2475_v33 = vadd.f32 %v4024_v1, %v5671_v0  ;;  %v2469_v27 = vpop.f32.mrb[35].mxu0  ;;  %4084 = vmatmul.mubr.msk.f32.vlgmr.msra.gmra.mrb[32].mxu1 %vm1284_vm1, %v2619_v15 }
 0x551   :  { %v2470_v24 = vadd.f32 %v5671_v0, %v2469_v27 }
 0x552   :  { %v2621_v50 = vmax.f32 %v2475_v33, 0.0 }
 0x553   :  { %v2620_v5 = vmax.f32 %v2470_v24, 0.0  ;;  %v4027_v54 = vpop.f32.mrb[36].mxu0 }
 0x554   :  { %v2485_v53 = vadd.f32 %v4027_v54, %v5671_v0  ;;  %v2479_v37 = vpop.f32.mrb[37].mxu0 }
 0x555   :  { %v2480_v39 = vadd.f32 %v5671_v0, %v2479_v37  ;;  %4086 = vmatprep.mubr.msk.f32.mxu1 %vm1284_vm1, %v2620_v5 }
 0x556   :  { %4087 = vmatmul.mubr.msk.f32.gmra.mrb[34].mxu1 %vm1284_vm1, %v2621_v50  ;;  %v2623_v9 = vmax.f32 %v2485_v53, 0.0 }
 0x557   :  { %v2622_v40 = vmax.f32 %v2480_v39, 0.0 }
 0x558   :  { %v4030_v22 = vpop.f32.mrb[38].mxu0 }
 0x559   :  { %v2495_v62 = vadd.f32 %v4030_v22, %v5671_v0  ;;  %v2489_v31 = vpop.f32.mrb[39].mxu0  ;;  %4089 = vmatprep.mubr.msk.f32.mxu1 %vm1284_vm1, %v2622_v40 }
 0x55a   :  { %v2490_v30 = vadd.f32 %v5671_v0, %v2489_v31  ;;  %4090 = vmatmul.mubr.msk.f32.gmra.mrb[36].mxu1 %vm1284_vm1, %v2623_v9 }
 0x55b   :  { %v2625_v52 = vmax.f32 %v2495_v62, 0.0 }
 0x55c   :  { %v2624_v3 = vmax.f32 %v2490_v30, 0.0  ;;  %v4033_v57 = vpop.f32.mrb[40].mxu0 }
 0x55d   :  { %v2505_v51 = vadd.f32 %v4033_v57, %v5671_v0  ;;  %v2499_v8 = vpop.f32.mrb[41].mxu0 }
 0x55e   :  { %4092 = vmatprep.mubr.msk.f32.mxu1 %vm1284_vm1, %v2624_v3  ;;  %v2500_v7 = vadd.f32 %v5671_v0, %v2499_v8 }
 0x55f   :  { %4093 = vmatmul.mubr.msk.f32.gmra.mrb[38].mxu1 %vm1284_vm1, %v2625_v52  ;;  %v2627_v45 = vmax.f32 %v2505_v51, 0.0 }
 0x560   :  { %v2626_v4 = vmax.f32 %v2500_v7, 0.0 }
 0x562   :  { %v4036_v47 = vpop.f32.mrb[42].mxu0  ;;  %4095 = vmatprep.mubr.msk.f32.mxu1 %vm1284_vm1, %v2626_v4 }
 0x563   :  { %v2515_v48 = vadd.f32 %v4036_v47, %v5671_v0  ;;  %v2509_v56 = vpop.f32.mrb[43].mxu0  ;;  %4096 = vmatmul.mubr.msk.f32.gmra.mrb[40].mxu1 %vm1284_vm1, %v2627_v45 }
 0x564   :  { %v2510_v28 = vadd.f32 %v5671_v0, %v2509_v56 }
 0x565   :  { %v2629_v42 = vmax.f32 %v2515_v48, 0.0 }
 0x566   :  { %v2628_v36 = vmax.f32 %v2510_v28, 0.0 }
 0x567   :  { %v4039_v12 = vpop.f32.mrb[44].mxu0 }
 0x568   :  { %v2525_v17 = vadd.f32 %v4039_v12, %v5671_v0  ;;  %v2519_v32 = vpop.f32.mrb[45].mxu0  ;;  %4098 = vmatprep.mubr.msk.f32.mxu1 %vm1284_vm1, %v2628_v36 }
 0x569   :  { %v2520_v18 = vadd.f32 %v5671_v0, %v2519_v32  ;;  %4099 = vmatmul.mubr.msk.f32.gmra.mrb[42].mxu1 %vm1284_vm1, %v2629_v42  ;;  %v4370_v32 = vmov 0  }
 0x56a   :  { %v2631_v38 = vmax.f32 %v2525_v17, 0.0  ;;  %4206 = vset.pattern.permute.xlu0 %v4370_v32 }
 0x56b   :  { %v2630_v49 = vmax.f32 %v2520_v18, 0.0  ;;  %v4042_v35 = vpop.f32.mrb[46].mxu0  ;;  %v5740_v18 = vld [vmem:[%s6328_s7 + $0x1] ss:$0 sm:$0xff] }
 0x56c   :  { %v2535_v13 = vadd.f32 %v4042_v35, %v5671_v0  ;;  %v2529_v25 = vpop.f32.mrb[47].mxu0 }
 0x56d   :  { %v2530_v23 = vadd.f32 %v5671_v0, %v2529_v25  ;;  %4101 = vmatprep.mubr.msk.f32.mxu1 %vm1284_vm1, %v2630_v49 }
 0x56e   :  { %4102 = vmatmul.mubr.msk.f32.gmra.mrb[44].mxu1 %vm1284_vm1, %v2631_v38  ;;  %v2633_v20 = vmax.f32 %v2535_v13, 0.0  ;;  %v5747_v13 = vld [vmem:[%s6329_s8] ss:$0 sm:$0xff] }
 0x56f   :  { %v2632_v2 = vmax.f32 %v2530_v23, 0.0  ;;  %v4045_v29 = vpop.f32.mrb[48].mxu0 }
 0x570   :  { %v2545_v41 = vadd.f32 %v4045_v29, %v5671_v0  ;;  %v2539_v61 = vpop.f32.mrb[49].mxu0 }
 0x571   :  { %v2540_v46 = vadd.f32 %v5671_v0, %v2539_v61  ;;  %4104 = vmatprep.mubr.msk.f32.mxu1 %vm1284_vm1, %v2632_v2 }
 0x572   :  { %4105 = vmatmul.mubr.msk.f32.gmra.mrb[46].mxu1 %vm1284_vm1, %v2633_v20  ;;  %v2635_v60 = vmax.f32 %v2545_v41, 0.0 }
 0x573   :  { %v2634_v59 = vmax.f32 %v2540_v46, 0.0  ;;  %v4048_v26 = vpop.f32.mrb[50].mxu0 }
 0x574   :  { %v2555_v14 = vadd.f32 %v4048_v26, %v5671_v0  ;;  %v2549_v44 = vpop.f32.mrb[51].mxu0 }
 0x575   :  { %v2550_v16 = vadd.f32 %v5671_v0, %v2549_v44  ;;  %4107 = vmatprep.mubr.msk.f32.mxu1 %vm1284_vm1, %v2634_v59 }
 0x576   :  { %4108 = vmatmul.mubr.msk.f32.gmra.mrb[48].mxu1 %vm1284_vm1, %v2635_v60  ;;  %v2637_v58 = vmax.f32 %v2555_v14, 0.0 }
 0x577   :  { %v2636_v55 = vmax.f32 %v2550_v16, 0.0  ;;  %v4051_v6 = vpop.f32.mrb[52].mxu0 }
 0x578   :  { %v2565_v43 = vadd.f32 %v4051_v6, %v5671_v0  ;;  %v2559_v11 = vpop.f32.mrb[53].mxu0 }
 0x579   :  { %v2560_v15 = vadd.f32 %v5671_v0, %v2559_v11  ;;  %4110 = vmatprep.mubr.msk.f32.mxu1 %vm1284_vm1, %v2636_v55 }
 0x57a   :  { %4111 = vmatmul.mubr.msk.f32.gmra.mrb[50].mxu1 %vm1284_vm1, %v2637_v58  ;;  %v2639_v27 = vmax.f32 %v2565_v43, 0.0  ;;  %v6493_v58 = vld [vmem:[#allocation6_spill] sm:$0xff] }
 0x57b   :  { %v2638_v1 = vmax.f32 %v2560_v15, 0.0  ;;  %v4054_v33 = vpop.f32.mrb[54].mxu0 }
 0x57c   :  { %v2575_v24 = vadd.f32 %v4054_v33, %v5671_v0  ;;  %v2569_v5 = vpop.f32.mrb[55].mxu0 }
 0x57d   :  { %v2570_v54 = vadd.f32 %v5671_v0, %v2569_v5  ;;  %4113 = vmatprep.mubr.msk.f32.mxu1 %vm1284_vm1, %v2638_v1 }
 0x57e   :  { %4114 = vmatmul.mubr.msk.f32.gmra.mrb[52].mxu1 %vm1284_vm1, %v2639_v27  ;;  %v2641_v37 = vmax.f32 %v2575_v24, 0.0 }
 0x57f   :  { %v2640_v50 = vmax.f32 %v2570_v54, 0.0  ;;  %v4057_v53 = vpop.f32.mrb[56].mxu0  ;;  %v6494_v54 = vld [vmem:[#allocation8_spill] sm:$0xff] }
 0x580   :  { %v2585_v39 = vadd.f32 %v4057_v53, %v5671_v0  ;;  %v2579_v40 = vpop.f32.mrb[57].mxu0  ;;  %v6496_v53 = vld [vmem:[#allocation7_spill] sm:$0xff] }
 0x581   :  { %v2580_v9 = vadd.f32 %v5671_v0, %v2579_v40  ;;  %4116 = vmatprep.mubr.msk.f32.mxu1 %vm1284_vm1, %v2640_v50 }
 0x582   :  { %4117 = vmatmul.mubr.msk.f32.gmra.mrb[54].mxu1 %vm1284_vm1, %v2641_v37  ;;  %v2643_v31 = vmax.f32 %v2585_v39, 0.0 }
 0x583   :  { %v2642_v22 = vmax.f32 %v2580_v9, 0.0  ;;  %v4060_v62 = vpop.f32.mrb[58].mxu0 }
 0x584   :  { %v2595_v30 = vadd.f32 %v4060_v62, %v5671_v0  ;;  %v2589_v3 = vpop.f32.mrb[59].mxu0 }
 0x585   :  { %v2590_v52 = vadd.f32 %v5671_v0, %v2589_v3  ;;  %4119 = vmatprep.mubr.msk.f32.mxu1 %vm1284_vm1, %v2642_v22 }
 0x586   :  { %4120 = vmatmul.mubr.msk.f32.gmra.mrb[56].mxu1 %vm1284_vm1, %v2643_v31  ;;  %v2645_v8 = vmax.f32 %v2595_v30, 0.0 }
 0x587   :  { %v2644_v57 = vmax.f32 %v2590_v52, 0.0  ;;  %v4063_v51 = vpop.f32.mrb[60].mxu0  ;;  %v6497_v52 = vld [vmem:[#allocation10_spill] sm:$0xff] }
 0x588   :  { %v2605_v7 = vadd.f32 %v4063_v51, %v5671_v0  ;;  %v2599_v4 = vpop.f32.mrb[61].mxu0  ;;  %v6498_v51 = vld [vmem:[#allocation9_spill] sm:$0xff] }
 0x589   :  { %v2600_v45 = vadd.f32 %v5671_v0, %v2599_v4  ;;  %4122 = vmatprep.mubr.msk.f32.mxu1 %vm1284_vm1, %v2644_v57 }
 0x58a   :  { %4123 = vmatmul.mubr.msk.f32.gmra.mrb[58].mxu1 %vm1284_vm1, %v2645_v8  ;;  %v2647_v56 = vmax.f32 %v2605_v7, 0.0 }
 0x58b   :  { %v2646_v47 = vmax.f32 %v2600_v45, 0.0  ;;  %v4066_v48 = vpop.f32.mrb[62].mxu0 }
 0x58c   :  { %v2615_v28 = vadd.f32 %v4066_v48, %v5671_v0  ;;  %v2609_v36 = vpop.f32.mrb[63].mxu0 }
 0x58d   :  { %v2610_v12 = vadd.f32 %v5671_v0, %v2609_v36  ;;  %4125 = vmatprep.mubr.msk.f32.mxu1 %vm1284_vm1, %v2646_v47  ;;  %v6499_v36 = vld [vmem:[#allocation12_spill] sm:$0xff] }
 0x58e   :  { %4126 = vmatmul.mubr.msk.f32.gmra.mrb[60].mxu1 %vm1284_vm1, %v2647_v56  ;;  %v2649_v17 = vmax.f32 %v2615_v28, 0.0 }
 0x58f   :  { %v2648_v42 = vmax.f32 %v2610_v12, 0.0 }
 0x591   :  { %4128 = vmatprep.mubr.msk.f32.mxu1 %vm1284_vm1, %v2648_v42 }
 0x592   :  { %4129 = vmatmul.mubr.msk.f32.gmra.mrb[62].mxu1 %vm1284_vm1, %v2649_v17  ;;  %v6501_v17 = vld [vmem:[#allocation11_spill] sm:$0xff] }
 0x623   :  { %v4085_v49 = vpop.f32.mrb[32].mxu1 }
 0x624   :  { %v2835_v0 = vadd.f32 %v4085_v49, %v5740_v18  ;;  %v2829_v35 = vpop.f32.mrb[33].mxu1 }
 0x625   :  { %v2830_v38 = vadd.f32 %v5740_v18, %v2829_v35 }
 0x626   :  { %v5750_v25 = vadd.f32 %v2835_v0, %v5103_v34 }
 0x627   :  { %v5753_v23 = vadd.f32 %v2830_v38, %v5106_v10 }
 0x628   :  { %v3028_v2 = vmul.f32 %v5747_v13, %v5750_v25 }
 0x629   :  { %v4088_v29 = vpop.f32.mrb[34].mxu1  ;;  %v3027_v46 = vmul.f32 %v5747_v13, %v5753_v23 }
 0x62a   :  { %v2845_v20 = vadd.f32 %v4088_v29, %v5740_v18  ;;  %v2839_v41 = vpop.f32.mrb[35].mxu1  ;;  %v3062_v61 = vsel %vm264_vm0, %v3028_v2, 0.0 }
 0x62b   :  { %v2840_v59 = vadd.f32 %v5740_v18, %v2839_v41  ;;  %3063 = vadd.xlane.f32.xlu0 %v3062_v61  ;;  %v3059_v44 = vsel %vm264_vm0, %v3027_v46, 0.0 }
 0x62c   :  { %v5763_v34 = vadd.f32 %v2845_v20, %v5115_v21  ;;  %v6503_v20 = vld [vmem:[#allocation14_spill] sm:$0xff] }
 0x62d   :  { %v5766_v10 = vadd.f32 %v2840_v59, %v5118_v19  ;;  %v4091_v26 = vpop.f32.mrb[36].mxu1  ;;  %v6504_v59 = vld [vmem:[#allocation13_spill] sm:$0xff] }
 0x62e   :  { %6492 = vst [vmem:[#allocation34_spill] sm:$0xff] %v5763_v34  ;;  %v2855_v60 = vadd.f32 %v4091_v26, %v5740_v18  ;;  %v2849_v14 = vpop.f32.mrb[37].mxu1  ;;  %v3030_v16 = vmul.f32 %v5747_v13, %v5763_v34 }
 0x62f   :  { %v2850_v55 = vadd.f32 %v5740_v18, %v2849_v14  ;;  %3060 = vadd.xlane.f32.xlu0 %v3059_v44  ;;  %v3029_v6 = vmul.f32 %v5747_v13, %v5766_v10 }
 0x630   :  { %v5776_v21 = vadd.f32 %v2855_v60, %v5127_v63  ;;  %v3068_v19 = vsel %vm264_vm0, %v3030_v16, 0.0 }
 0x631   :  { %v5780_v43 = vadd.f32 %v2850_v55, %v6493_v58  ;;  %3069 = vadd.xlane.f32.xlu1 %v3068_v19  ;;  %v3065_v15 = vsel %vm264_vm0, %v3029_v6, 0.0  ;;  %v6505_v19 = vld [vmem:[#allocation16_spill] sm:$0xff] }
 0x632   :  { %v4094_v11 = vpop.f32.mrb[38].mxu1  ;;  %v3032_v1 = vmul.f32 %v5747_v13, %v5776_v21 }
 0x633   :  { %v2865_v33 = vadd.f32 %v4094_v11, %v5740_v18  ;;  %v2859_v27 = vpop.f32.mrb[39].mxu1  ;;  %3066 = vadd.xlane.f32.xlu0 %v3065_v15  ;;  %v3031_v5 = vmul.f32 %v5747_v13, %v5780_v43 }
 0x634   :  { %v2860_v24 = vadd.f32 %v5740_v18, %v2859_v27  ;;  %v3074_v63 = vsel %vm264_vm0, %v3032_v1, 0.0  ;;  %v6507_v1 = vld [vmem:[#allocation15_spill] sm:$0xff] }
 0x635   :  { %v5791_v50 = vadd.f32 %v2865_v33, %v6494_v54  ;;  %3075 = vadd.xlane.f32.xlu1 %v3074_v63  ;;  %v3071_v62 = vsel %vm264_vm0, %v3031_v5, 0.0 }
 0x636   :  { %v5794_v37 = vadd.f32 %v2860_v24, %v6496_v53  ;;  %v4097_v39 = vpop.f32.mrb[40].mxu1  ;;  %v6509_v53 = vld [vmem:[#allocation18_spill] sm:$0xff] }
 0x637   :  { %6495 = vst [vmem:[#allocation33_spill] sm:$0xff] %v5791_v50  ;;  %v3034_v40 = vmul.f32 %v5747_v13, %v5791_v50  ;;  %v2875_v9 = vadd.f32 %v4097_v39, %v5740_v18  ;;  %v2869_v22 = vpop.f32.mrb[41].mxu1 }
 0x638   :  { %v3033_v31 = vmul.f32 %v5747_v13, %v5794_v37  ;;  %v2870_v30 = vadd.f32 %v5740_v18, %v2869_v22 }
 0x639   :  { %3072 = vadd.xlane.f32.xlu1 %v3071_v62  ;;  %v3080_v3 = vsel %vm264_vm0, %v3034_v40, 0.0  ;;  %v5805_v57 = vadd.f32 %v2875_v9, %v6497_v52 }
 0x63a   :  { %3081 = vadd.xlane.f32.xlu0 %v3080_v3  ;;  %v5808_v8 = vadd.f32 %v2870_v30, %v6498_v51  ;;  %v3077_v4 = vsel %vm264_vm0, %v3033_v31, 0.0  ;;  %v6510_v30 = vld [vmem:[#allocation17_spill] sm:$0xff] }
 0x63b   :  { %v3036_v45 = vmul.f32 %v5747_v13, %v5805_v57 }
 0x63c   :  { %v4100_v7 = vpop.f32.mrb[42].mxu1  ;;  %v3035_v56 = vmul.f32 %v5747_v13, %v5808_v8 }
 0x63d   :  { %v2885_v47 = vadd.f32 %v4100_v7, %v5740_v18  ;;  %v2879_v48 = vpop.f32.mrb[43].mxu1  ;;  %3078 = vadd.xlane.f32.xlu1 %v3077_v4  ;;  %v3086_v0 = vsel %vm264_vm0, %v3036_v45, 0.0 }
 0x63e   :  { %v2880_v28 = vadd.f32 %v5740_v18, %v2879_v48  ;;  %v3083_v42 = vsel %vm264_vm0, %v3035_v56, 0.0 }
 0x63f   :  { %v5818_v12 = vadd.f32 %v2885_v47, %v6499_v36  ;;  %3084 = vadd.xlane.f32.xlu0 %v3083_v42  ;;  %v6511_v47 = vld [vmem:[#allocation20_spill] sm:$0xff] }
 0x640   :  { %v5822_v32 = vadd.f32 %v2880_v28, %v6501_v17 }
 0x641   :  { %6500 = vst [vmem:[#allocation6_spill] sm:$0xff] %v5818_v12  ;;  %v4103_v49 = vpop.f32.mrb[44].mxu1  ;;  %3087 = vadd.xlane.f32.xlu1 %v3086_v0  ;;  %v3038_v2 = vmul.f32 %v5747_v13, %v5818_v12 }
 0x642   :  { %6502 = vst [vmem:[#allocation8_spill] sm:$0xff] %v5822_v32  ;;  %v2895_v35 = vadd.f32 %v4103_v49, %v5740_v18  ;;  %v2889_v38 = vpop.f32.mrb[45].mxu1  ;;  %v3037_v46 = vmul.f32 %v5747_v13, %v5822_v32  ;;  %v6513_v49 = vld [vmem:[#allocation19_spill] sm:$0xff] }
 0x643   :  { %v2890_v29 = vadd.f32 %v5740_v18, %v2889_v38  ;;  %v3092_v61 = vsel %vm264_vm0, %v3038_v2, 0.0 }
 0x644   :  { %v5830_v41 = vadd.f32 %v2895_v35, %v6503_v20  ;;  %3093 = vadd.xlane.f32.xlu0 %v3092_v61  ;;  %v3089_v15 = vsel %vm264_vm0, %v3037_v46, 0.0  ;;  %v6515_v61 = vld [vmem:[#allocation22_spill] sm:$0xff] }
 0x645   :  { %v5836_v26 = vadd.f32 %v2890_v29, %v6504_v59  ;;  %v4106_v60 = vpop.f32.mrb[46].mxu1 }
 0x646   :  { %v2905_v14 = vadd.f32 %v4106_v60, %v5740_v18  ;;  %v2899_v44 = vpop.f32.mrb[47].mxu1  ;;  %v3040_v16 = vmul.f32 %v5747_v13, %v5830_v41 }
 0x647   :  { %v2900_v55 = vadd.f32 %v5740_v18, %v2899_v44  ;;  %v3039_v6 = vmul.f32 %v5747_v13, %v5836_v26 }
 0x648   :  { %v5845_v58 = vadd.f32 %v2905_v14, %v6505_v19  ;;  %v3098_v11 = vsel %vm264_vm0, %v3040_v16, 0.0  ;;  %3090 = vadd.xlane.f32.xlu0 %v3089_v15  ;;  %v3725_v15 = vld [vmem:[#allocation2] ss:$0 sm:$0xff] }
 0x649   :  { %v5850_v33 = vadd.f32 %v2900_v55, %v6507_v1  ;;  %3099 = vadd.xlane.f32.xlu1 %v3098_v11  ;;  %v4109_v27 = vpop.f32.mrb[48].mxu1  ;;  %v3095_v54 = vsel %vm264_vm0, %v3039_v6, 0.0  ;;  %v6516_v55 = vld [vmem:[#allocation21_spill] sm:$0xff] }
 0x64a   :  { %6506 = vst [vmem:[#allocation7_spill] sm:$0xff] %v5845_v58  ;;  %v2915_v24 = vadd.f32 %v4109_v27, %v5740_v18  ;;  %v2909_v63 = vpop.f32.mrb[49].mxu1  ;;  %v3042_v5 = vmul.f32 %v5747_v13, %v5845_v58 }
 0x64b   :  { %6508 = vst [vmem:[#allocation10_spill] sm:$0xff] %v5850_v33  ;;  %v2910_v40 = vadd.f32 %v5740_v18, %v2909_v63  ;;  %v3041_v22 = vmul.f32 %v5747_v13, %v5850_v33  ;;  %v6517_v63 = vld [vmem:[#allocation24_spill] sm:$0xff] }
 0x64c   :  { %v5857_v39 = vadd.f32 %v2915_v24, %v6509_v53  ;;  %v3104_v9 = vsel %vm264_vm0, %v3042_v5, 0.0  ;;  %3096 = vadd.xlane.f32.xlu0 %v3095_v54 }
 0x64d   :  { %3105 = vadd.xlane.f32.xlu1 %v3104_v9  ;;  %v4112_v62 = vpop.f32.mrb[50].mxu1  ;;  %v5864_v3 = vadd.f32 %v2910_v40, %v6510_v30  ;;  %v3101_v51 = vsel %vm264_vm0, %v3041_v22, 0.0 }
 0x64e   :  { %v2919_v31 = vpop.f32.mrb[51].mxu1  ;;  %v2925_v52 = vadd.f32 %v4112_v62, %v5740_v18  ;;  %v3044_v7 = vmul.f32 %v5747_v13, %v5857_v39  ;;  %v6519_v62 = vld [vmem:[#allocation23_spill] sm:$0xff] }
 0x64f   :  { %v2920_v56 = vadd.f32 %v5740_v18, %v2919_v31  ;;  %v3043_v36 = vmul.f32 %v5747_v13, %v5864_v3 }
 0x650   :  { %v5871_v48 = vadd.f32 %v2925_v52, %v6511_v47  ;;  %v3110_v28 = vsel %vm264_vm0, %v3044_v7, 0.0  ;;  %v6521_v7 = vld [vmem:[#allocation26_spill] sm:$0xff] }
 0x651   :  { %3102 = vadd.xlane.f32.xlu1 %v3101_v51  ;;  %v4115_v4 = vpop.f32.mrb[52].mxu1  ;;  %v5878_v0 = vadd.f32 %v2920_v56, %v6513_v49  ;;  %v3107_v38 = vsel %vm264_vm0, %v3043_v36, 0.0 }
 0x652   :  { %v2929_v45 = vpop.f32.mrb[53].mxu1  ;;  %6512 = vst [vmem:[#allocation9_spill] sm:$0xff] %v5871_v48  ;;  %v2935_v35 = vadd.f32 %v4115_v4, %v5740_v18  ;;  %v3046_v2 = vmul.f32 %v5747_v13, %v5871_v48 }
 0x653   :  { %6514 = vst [vmem:[#allocation12_spill] sm:$0xff] %v5878_v0  ;;  %v2930_v59 = vadd.f32 %v5740_v18, %v2929_v45  ;;  %v3045_v14 = vmul.f32 %v5747_v13, %v5878_v0 }
 0x654   :  { %v5885_v46 = vadd.f32 %v2935_v35, %v6515_v61  ;;  %v3116_v60 = vsel %vm264_vm0, %v3046_v2, 0.0 }
 0x655   :  { %3111 = vadd.xlane.f32.xlu1 %v3110_v28  ;;  %v4118_v42 = vpop.f32.mrb[54].mxu1  ;;  %v5892_v6 = vadd.f32 %v2930_v59, %v6516_v55  ;;  %v3113_v11 = vsel %vm264_vm0, %v3045_v14, 0.0  ;;  %v6522_v28 = vld [vmem:[#allocation25_spill] sm:$0xff]  ;;  %v6526_v59 = vld [vmem:[#allocation28_spill] sm:$0xff]  ;;  %v6528_v55 = vld [vmem:[#allocation30_spill] sm:$0xff] }
 0x656   :  { %v2939_v17 = vpop.f32.mrb[55].mxu1  ;;  %v2945_v19 = vadd.f32 %v4118_v42, %v5740_v18  ;;  %v3048_v1 = vmul.f32 %v5747_v13, %v5885_v46 }
 0x657   :  { %v2940_v54 = vadd.f32 %v5740_v18, %v2939_v17  ;;  %v3047_v40 = vmul.f32 %v5747_v13, %v5892_v6 }
 0x658   :  { %v5899_v5 = vadd.f32 %v2945_v19, %v6517_v63  ;;  %v3122_v53 = vsel %vm264_vm0, %v3048_v1, 0.0 }
 0x659   :  { %3108 = vadd.xlane.f32.xlu1 %v3107_v38  ;;  %v4121_v29 = vpop.f32.mrb[56].mxu1  ;;  %v5906_v31 = vadd.f32 %v2940_v54, %v6519_v62  ;;  %v3119_v52 = vsel %vm264_vm0, %v3047_v40, 0.0  ;;  %v6524_v38 = vld [vmem:[#allocation27_spill] sm:$0xff] }
 0x65a   :  { %v2949_v20 = vpop.f32.mrb[57].mxu1  ;;  %6518 = vst [vmem:[#allocation11_spill] sm:$0xff] %v5899_v5  ;;  %v2955_v30 = vadd.f32 %v4121_v29, %v5740_v18  ;;  %v3050_v51 = vmul.f32 %v5747_v13, %v5899_v5 }
 0x65b   :  { %6520 = vst [vmem:[#allocation14_spill] sm:$0xff] %v5906_v31  ;;  %v2950_v45 = vadd.f32 %v5740_v18, %v2949_v20  ;;  %v3049_v56 = vmul.f32 %v5747_v13, %v5906_v31 }
 0x65c   :  { %v5913_v4 = vadd.f32 %v2955_v30, %v6521_v7  ;;  %v3128_v47 = vsel %vm264_vm0, %v3050_v51, 0.0 }
 0x65d   :  { %3117 = vadd.xlane.f32.xlu1 %v3116_v60  ;;  %v4124_v44 = vpop.f32.mrb[58].mxu1  ;;  %v5920_v36 = vadd.f32 %v2950_v45, %v6522_v28  ;;  %v3125_v17 = vsel %vm264_vm0, %v3049_v56, 0.0 }
 0x65e   :  { %v2959_v16 = vpop.f32.mrb[59].mxu1  ;;  %v3052_v49 = vmul.f32 %v5747_v13, %v5913_v4  ;;  %v2965_v35 = vadd.f32 %v4124_v44, %v5740_v18 }
 0x65f   :  { %6523 = vst [vmem:[#allocation13_spill] sm:$0xff] %v5920_v36  ;;  %v2960_v42 = vadd.f32 %v5740_v18, %v2959_v16  ;;  %v3051_v20 = vmul.f32 %v5747_v13, %v5920_v36 }
 0x660   :  { %v3134_v29 = vsel %vm264_vm0, %v3052_v49, 0.0  ;;  %v5935_v60 = vadd.f32 %v2965_v35, %v6526_v59  ;;  %v3446_v49 = vld [vmem:[%s6331_s10 + $0x8] sm:$0xff]  ;;  %v3448_v59 = vld [vmem:[%s6331_s10 + $0x18] sm:$0xff] }
 0x661   :  { %3114 = vadd.xlane.f32.xlu1 %v3113_v11  ;;  %v4127_v27 = vpop.f32.mrb[60].mxu1  ;;  %v5928_v2 = vadd.f32 %v2960_v42, %v6524_v38  ;;  %v3131_v16 = vsel %vm264_vm0, %v3051_v20, 0.0  ;;  %v6530_v11 = vld [vmem:[#allocation29_spill] sm:$0xff] }
 0x662   :  { %v2969_v24 = vpop.f32.mrb[61].mxu1  ;;  %3162 = vperm.xlu0 %4206, %v3725_v15   ;;  %v2975_v61 = vadd.f32 %v4127_v27, %v5740_v18  ;;  %6527 = vst [vmem:[#allocation15_spill] sm:$0xff] %v5935_v60  ;;  %v3054_v63 = vmul.f32 %v5747_v13, %v5935_v60 }
 0x663   :  { %6525 = vst [vmem:[#allocation16_spill] sm:$0xff] %v5928_v2  ;;  %v2970_v14 = vadd.f32 %v5740_v18, %v2969_v24  ;;  %v3053_v44 = vmul.f32 %v5747_v13, %v5928_v2 }
 0x664   :  { %v5942_v19 = vadd.f32 %v2975_v61, %v6528_v55  ;;  %v3140_v62 = vsel %vm264_vm0, %v3054_v63, 0.0  ;;  %v3447_v61 = vld [vmem:[%s6331_s10 + $0x10] sm:$0xff] }
 0x665   :  { %3123 = vadd.xlane.f32.xlu1 %v3122_v53  ;;  %v4130_v9 = vpop.f32.mrb[62].mxu1  ;;  %v5945_v15 = vadd.f32 %v2970_v14, %v6530_v11  ;;  %v3137_v27 = vsel %vm264_vm0, %v3053_v44, 0.0  ;;  %v6532_v53 = vld [vmem:[#allocation31_spill] sm:$0xff] }
 0x666   :  { %v2979_v22 = vpop.f32.mrb[63].mxu1  ;;  %6529 = vst [vmem:[#allocation18_spill] sm:$0xff] %v5942_v19  ;;  %v3056_v24 = vmul.f32 %v5747_v13, %v5942_v19  ;;  %v2985_v54 = vadd.f32 %v4130_v9, %v5740_v18 }
 0x667   :  { %6531 = vst [vmem:[#allocation17_spill] sm:$0xff] %v5945_v15  ;;  %v2980_v1 = vadd.f32 %v5740_v18, %v2979_v22  ;;  %v3055_v30 = vmul.f32 %v5747_v13, %v5945_v15 }
 0x668   :  { %v3146_v22 = vsel %vm264_vm0, %v3056_v24, 0.0 }
 0x669   :  { %3120 = vadd.xlane.f32.xlu1 %v3119_v52  ;;  %v5955_v40 = vadd.f32 %v2980_v1, %v6532_v53  ;;  %v6534_v52 = vld [vmem:[#allocation32_spill] sm:$0xff]  ;;  %v3143_v7 = vsel %vm264_vm0, %v3055_v30, 0.0 }
 0x66a   :  { %v5962_v51 = vadd.f32 %v2985_v54, %v6534_v52 }
 0x66b   :  { %6533 = vst [vmem:[#allocation20_spill] sm:$0xff] %v5955_v40  ;;  %v3057_v18 = vmul.f32 %v5747_v13, %v5955_v40 }
 0x66c   :  { %6535 = vst [vmem:[#allocation19_spill] sm:$0xff] %v5962_v51  ;;  %v3058_v45 = vmul.f32 %v5747_v13, %v5962_v51 }
 0x66d   :  { %3129 = vadd.xlane.f32.xlu1 %v3128_v47  ;;  %v3149_v9 = vsel %vm264_vm0, %v3057_v18, 0.0 }
 0x66e   :  { %v3152_v47 = vsel %vm264_vm0, %v3058_v45, 0.0 }
 0x671   :  { %3126 = vadd.xlane.f32.xlu1 %v3125_v17  ;;  %v3445_v17 = vld [vmem:[%s6331_s10] sm:$0xff] }
 0x672   :  { %v4193_v35 = vpack.c.bf16 %v3446_v49, %v3445_v17 }
 0x674   :  { %4194 = vmatprep.subr.bf16.mxu0 %v4193_v35 }
 0x675   :  { %3135 = vadd.xlane.f32.xlu1 %v3134_v29  ;;  %4196 = vmatpush3.bf16.msra.mxu0 %v4193_v35 }
 0x679   :  { %3132 = vadd.xlane.f32.xlu1 %v3131_v16  ;;  %v4197_v16 = vpack.c.bf16 %v3448_v59, %v3447_v61 }
 0x67b   :  { %4198 = vmatprep.subr.bf16.mxu0 %v4197_v16 }
 0x67c   :  { %4200 = vmatpush3.bf16.msra.mxu0 %v4197_v16 }
 0x67d   :  { %3138 = vadd.xlane.f32.xlu1 %v3137_v27 }
 0x681   :  { %3141 = vadd.xlane.f32.xlu1 %v3140_v62  ;;  %3147 = vadd.xlane.f32.xlu0 %v3146_v22 }
 0x685   :  { %3144 = vadd.xlane.f32.xlu1 %v3143_v7 }
 0x689   :  { %3150 = vadd.xlane.f32.xlu1 %v3149_v9 }
 0x68d   :  { %3153 = vadd.xlane.f32.xlu1 %v3152_v47 }
 0x6b8   :  { %v3064_v56 = vpop.xlane.xlu0 %3063 }
 0x6bc   :  { %v3061_v28 = vpop.xlane.xlu0 %3060 }
 0x6be   :  { %v3070_v42 = vpop.xlane.xlu1 %3069 }
 0x6c0   :  { %v3067_v38 = vpop.xlane.xlu0 %3066 }
 0x6c2   :  { %v3076_v29 = vpop.xlane.xlu1 %3075 }
 0x6c6   :  { %v3073_v13 = vpop.xlane.xlu1 %3072 }
 0x6c7   :  { %v3082_v20 = vpop.xlane.xlu0 %3081 }
 0x6ca   :  { %v3079_v14 = vpop.xlane.xlu1 %3078 }
 0x6cc   :  { %v3085_v44 = vpop.xlane.xlu0 %3084 }
 0x6ce   :  { %v3088_v55 = vpop.xlane.xlu1 %3087 }
 0x6d1   :  { %v3094_v11 = vpop.xlane.xlu0 %3093 }
 0x6d5   :  { %v3091_v27 = vpop.xlane.xlu0 %3090 }
 0x6d6   :  { %v3100_v1 = vpop.xlane.xlu1 %3099 }
 0x6d9   :  { %v3097_v24 = vpop.xlane.xlu0 %3096 }
 0x6da   :  { %v3106_v63 = vpop.xlane.xlu1 %3105 }
 0x6de   :  { %v3103_v54 = vpop.xlane.xlu1 %3102 }
 0x6e1   :  { %v5983_v62 = vpop.permute.xlu0 %3162 }
 0x6e2   :  { %v3112_v53 = vpop.xlane.xlu1 %3111  ;;  %v5986_v30 = vadd.f32 %v5983_v62, %v3070_v42  ;;  %v5989_v22 = vadd.f32 %v5983_v62, %v3082_v20  ;;  %v5992_v7 = vadd.f32 %v5983_v62, %v3094_v11  ;;  %v5997_v9 = vadd.f32 %v5983_v62, %v3106_v63 }
 0x6e3   :  { %v3166_v61 = vadd.f32 %v5983_v62, %v3064_v56  ;;  %v3170_v59 = vadd.f32 %v5983_v62, %v3076_v29  ;;  %v6009_v11 = vadd.f32 %v5983_v62, %v3061_v28  ;;  %v6012_v63 = vadd.f32 %v5983_v62, %v3073_v13 }
 0x6e4   :  { %v3200_v18 = vmax.f32 %v5986_v30, %v5989_v22  ;;  %v3174_v51 = vadd.f32 %v5983_v62, %v3088_v55  ;;  %v6018_v48 = vadd.f32 %v5983_v62, %v3085_v44  ;;  %v3178_v56 = vadd.f32 %v5983_v62, %v3100_v1 }
 0x6e5   :  { %v3197_v60 = vmax.f32 %v6009_v11, %v6012_v63  ;;  %v6023_v58 = vadd.f32 %v5983_v62, %v3067_v38  ;;  %v6026_v13 = vadd.f32 %v5983_v62, %v3079_v14  ;;  %v6029_v40 = vadd.f32 %v5983_v62, %v3097_v24 }
 0x6e6   :  { %v3109_v52 = vpop.xlane.xlu1 %3108  ;;  %v6000_v45 = vmax.f32 %v3200_v18, %v5992_v7  ;;  %v3198_v18 = vmax.f32 %v3166_v61, %v3170_v59  ;;  %v6053_v31 = vadd.f32 %v5983_v62, %v3103_v54 }
 0x6e7   :  { %v3201_v28 = vmax.f32 %v3197_v60, %v6018_v48  ;;  %v3199_v60 = vmax.f32 %v6023_v58, %v6026_v13  ;;  %v6038_v14 = vadd.f32 %v5983_v62, %v3109_v52 }
 0x6e8   :  { %v3202_v5 = vmax.f32 %v3198_v18, %v3174_v51  ;;  %v3182_v18 = vadd.f32 %v5983_v62, %v3112_v53 }
 0x6e9   :  { %v3205_v1 = vmax.f32 %v3201_v28, %v6029_v40 }
 0x6ea   :  { %v3118_v47 = vpop.xlane.xlu1 %3117  ;;  %v3206_v55 = vmax.f32 %v3202_v5, %v3178_v56  ;;  %v6041_v5 = vadd.f32 %v5983_v62, %v3091_v27 }
 0x6eb   :  { %v3209_v50 = vmax.f32 %v3205_v1, %v6038_v14 }
 0x6ec   :  { %v3210_v2 = vmax.f32 %v3206_v55, %v3182_v18  ;;  %v3203_v28 = vmax.f32 %v3199_v60, %v6041_v5 }
 0x6ee   :  { %v3115_v17 = vpop.xlane.xlu1 %3114  ;;  %v3207_v1 = vmax.f32 %v3203_v28, %v6053_v31 }
 0x6ef   :  { %v6056_v27 = vadd.f32 %v5983_v62, %v3115_v17 }
 0x6f1   :  { %v3211_v17 = vmax.f32 %v3207_v1, %v6056_v27 }
 0x6f2   :  { %v3124_v49 = vpop.xlane.xlu1 %3123 }
 0x6f3   :  { %v3186_v44 = vadd.f32 %v5983_v62, %v3124_v49 }
 0x6f5   :  { %v3214_v53 = vmax.f32 %v3210_v2, %v3186_v44 }
 0x6f6   :  { %v3121_v35 = vpop.xlane.xlu1 %3120 }
 0x6f7   :  { %v6044_v24 = vadd.f32 %v5983_v62, %v3121_v35 }
 0x6f9   :  { %v3213_v2 = vmax.f32 %v3209_v50, %v6044_v24 }
 0x6fa   :  { %v6004_v20 = vpop.xlane.xlu1 %3129 }
 0x6fe   :  { %v3127_v16 = vpop.xlane.xlu1 %3126 }
 0x6ff   :  { %v6061_v60 = vadd.f32 %v5983_v62, %v3127_v16  ;;  %v6070_v16 = vadd.f32 %v5983_v62, %v3118_v47  ;;  %v6083_v47 = vadd.f32 %v5983_v62, %v6004_v20 }
 0x702   :  { %v3136_v42 = vpop.xlane.xlu1 %3135 }
 0x703   :  { %v3190_v38 = vadd.f32 %v5983_v62, %v3136_v42 }
 0x705   :  { %v3218_v42 = vmax.f32 %v3214_v53, %v3190_v38 }
 0x706   :  { %v3133_v29 = vpop.xlane.xlu1 %3132 }
 0x707   :  { %v6049_v34 = vadd.f32 %v5983_v62, %v3133_v29 }
 0x709   :  { %v3217_v29 = vmax.f32 %v3213_v2, %v6049_v34 }
 0x70a   :  { %v3139_v12 = vpop.xlane.xlu1 %3138 }
 0x70b   :  { %v6073_v2 = vadd.f32 %v5983_v62, %v3139_v12 }
 0x70e   :  { %v3142_v49 = vpop.xlane.xlu1 %3141  ;;  %v3148_v55 = vpop.xlane.xlu0 %3147 }
 0x70f   :  { %v3194_v52 = vadd.f32 %v5983_v62, %v3148_v55 }
 0x711   :  { %v3222_v35 = vmax.f32 %v3218_v42, %v3194_v52 }
 0x712   :  { %v3145_v0 = vpop.xlane.xlu1 %3144 }
 0x713   :  { %v6065_v53 = vadd.f32 %v5983_v62, %v3145_v0  ;;  %v3226_v55 = vsub.f32 %v3166_v61, %v3222_v35  ;;  %v3238_v54 = vsub.f32 %v3170_v59, %v3222_v35  ;;  %v3250_v33 = vsub.f32 %v3174_v51, %v3222_v35 }
 0x714   :  { %v3262_v15 = vsub.f32 %v3178_v56, %v3222_v35  ;;  %v3274_v19 = vsub.f32 %v3182_v18, %v3222_v35  ;;  %v3286_v32 = vsub.f32 %v3186_v44, %v3222_v35  ;;  %v3298_v61 = vsub.f32 %v3190_v38, %v3222_v35 }
 0x715   :  { %v3231_v50 = vmul.f32 1.442695, %v3226_v55  ;;  %v3243_v42 = vmul.f32 1.442695, %v3238_v54  ;;  %v3221_v28 = vmax.f32 %v3217_v29, %v6065_v53  ;;  %v3255_v0 = vmul.f32 1.442695, %v3250_v33 }
 0x716   :  { %v3151_v36 = vpop.xlane.xlu1 %3150  ;;  %v3215_v51 = vmax.f32 %v3211_v17, %v6061_v60  ;;  %v3267_v59 = vmul.f32 1.442695, %v3262_v15  ;;  %v3279_v18 = vmul.f32 1.442695, %v3274_v19  ;;  %v3291_v12 = vmul.f32 1.442695, %v3286_v32 }
 0x717   :  { %4273 = vpow2.f32 %v3231_v50  ;;  %v3225_v56 = vsub.f32 %v6009_v11, %v3221_v28  ;;  %v3237_v44 = vsub.f32 %v6012_v63, %v3221_v28  ;;  %v6079_v1 = vadd.f32 %v5983_v62, %v3151_v36 }
 0x718   :  { %4275 = vpow2.f32 %v3243_v42  ;;  %v3310_v33 = vsub.f32 %v3194_v52, %v3222_v35  ;;  %v3219_v38 = vmax.f32 %v3215_v51, %v6073_v2  ;;  %v3303_v29 = vmul.f32 1.442695, %v3298_v61 }
 0x719   :  { %4277 = vpow2.f32 %v3255_v0  ;;  %v3249_v15 = vsub.f32 %v6018_v48, %v3221_v28  ;;  %v6536_v19 = vmax.f32 %v6000_v45, %v5997_v9  ;;  %v3229_v36 = vmul.f32 1.442695, %v3225_v56 }
 0x71a   :  { %4279 = vpow2.f32 %v3267_v59  ;;  %v3261_v63 = vsub.f32 %v6029_v40, %v3221_v28  ;;  %v3241_v20 = vmul.f32 1.442695, %v3237_v44  ;;  %v3273_v32 = vsub.f32 %v6038_v14, %v3221_v28  ;;  %v3154_v35 = vpop.xlane.xlu1 %3153 }
 0x71b   :  { %v3212_v11 = vmax.f32 %v6536_v19, %v6070_v16  ;;  %4281 = vpow2.f32 %v3279_v18  ;;  %v6094_v52 = vmax.f32 %v3219_v38, %v6079_v1  ;;  %v6097_v55 = vadd.f32 %v5983_v62, %v3142_v49 }
 0x71c   :  { %4283 = vpow2.f32 %v3291_v12  ;;  %v3315_v48 = vmul.f32 1.442695, %v3310_v33  ;;  %v3285_v45 = vsub.f32 %v6044_v24, %v3221_v28  ;;  %v3253_v17 = vmul.f32 1.442695, %v3249_v15 }
 0x71d   :  { %v3216_v54 = vmax.f32 %v3212_v11, %v6083_v47  ;;  %4285 = vpow2.f32 %v3303_v29  ;;  %v3297_v40 = vsub.f32 %v6049_v34, %v3221_v28  ;;  %v3265_v50 = vmul.f32 1.442695, %v3261_v63 }
 0x71e   :  { %4287 = vpow2.f32 %v3229_v36  ;;  %v3227_v14 = vsub.f32 %v6023_v58, %v6094_v52  ;;  %v6105_v42 = vadd.f32 %v5983_v62, %v3154_v35  ;;  %v3277_v49 = vmul.f32 1.442695, %v3273_v32 }
 0x71f   :  { %4289 = vpow2.f32 %v3241_v20  ;;  %v3309_v0 = vsub.f32 %v6065_v53, %v3221_v28  ;;  %v3239_v24 = vsub.f32 %v6026_v13, %v6094_v52  ;;  %v3220_v51 = vmax.f32 %v3216_v54, %v6097_v55 }
 0x720   :  { %4291 = vpow2.f32 %v3315_v48  ;;  %v3289_v34 = vmul.f32 1.442695, %v3285_v45  ;;  %v3301_v58 = vmul.f32 1.442695, %v3297_v40  ;;  %v3251_v62 = vsub.f32 %v6041_v5, %v6094_v52 }
 0x721   :  { %v6110_v61 = vpop.eup %4273  ;;  %4293 = vpow2.f32 %v3253_v17  ;;  %v3263_v56 = vsub.f32 %v6053_v31, %v6094_v52  ;;  %v3233_v13 = vmul.f32 1.442695, %v3227_v14  ;;  %v6122_v28 = vmax.f32 %v3220_v51, %v6105_v42 }
 0x722   :  { %v6113_v59 = vpop.eup %4275  ;;  %4295 = vpow2.f32 %v3265_v50  ;;  %v3313_v44 = vmul.f32 1.442695, %v3309_v0  ;;  %v3245_v12 = vmul.f32 1.442695, %v3239_v24  ;;  %v3275_v33 = vsub.f32 %v6056_v27, %v6094_v52 }
 0x723   :  { %v3322_v53 = vadd.f32 %v6113_v59, %v6110_v61  ;;  %v6124_v18 = vpop.eup %4277  ;;  %4297 = vpow2.f32 %v3277_v49  ;;  %v3287_v38 = vsub.f32 %v6061_v60, %v6094_v52  ;;  %v3228_v29 = vsub.f32 %v5986_v30, %v6122_v28 }
 0x724   :  { %v6128_v5 = vpop.eup %4279  ;;  %4299 = vpow2.f32 %v3289_v34  ;;  %v3257_v19 = vmul.f32 1.442695, %v3251_v62  ;;  %v3299_v11 = vsub.f32 %v6073_v2, %v6094_v52  ;;  %v3264_v27 = vsub.f32 %v5997_v9, %v6122_v28 }
 0x725   :  { %v3326_v31 = vadd.f32 %v6124_v18, %v3322_v53  ;;  %v6135_v15 = vpop.eup %4281  ;;  %4301 = vpow2.f32 %v3301_v58  ;;  %v3269_v20 = vmul.f32 1.442695, %v3263_v56  ;;  %v3281_v30 = vmul.f32 1.442695, %v3275_v33 }
 0x726   :  { %v6141_v36 = vpop.eup %4283  ;;  %4303 = vpow2.f32 %v3233_v13  ;;  %v3240_v32 = vsub.f32 %v5989_v22, %v6122_v28  ;;  %v3293_v48 = vmul.f32 1.442695, %v3287_v38  ;;  %v3305_v45 = vmul.f32 1.442695, %v3299_v11 }
 0x727   :  { %v3330_v63 = vadd.f32 %v6128_v5, %v3326_v31  ;;  %v6144_v60 = vpop.eup %4285  ;;  %4305 = vpow2.f32 %v3245_v12  ;;  %v3311_v54 = vsub.f32 %v6079_v1, %v6094_v52  ;;  %v3252_v17 = vsub.f32 %v5992_v7, %v6122_v28 }
 0x728   :  { %v6148_v35 = vpop.eup %4287  ;;  %4307 = vpow2.f32 %v3313_v44  ;;  %v3235_v14 = vmul.f32 1.442695, %v3228_v29  ;;  %v3247_v0 = vmul.f32 1.442695, %v3240_v32  ;;  %v3276_v34 = vsub.f32 %v6070_v16, %v6122_v28 }
 0x729   :  { %v3334_v2 = vadd.f32 %v6135_v15, %v3330_v63  ;;  %v6151_v9 = vpop.eup %4289  ;;  %4309 = vpow2.f32 %v3257_v19  ;;  %v3259_v51 = vmul.f32 1.442695, %v3252_v17  ;;  %v3317_v53 = vmul.f32 1.442695, %v3311_v54 }
 0x72a   :  { %v6157_v40 = vpop.eup %4291  ;;  %v3321_v50 = vadd.f32 %v6151_v9, %v6148_v35  ;;  %4311 = vpow2.f32 %v3269_v20  ;;  %v3271_v44 = vmul.f32 1.442695, %v3264_v27  ;;  %v3288_v12 = vsub.f32 %v6083_v47, %v6122_v28 }
 0x72b   :  { %v3338_v22 = vadd.f32 %v6141_v36, %v3334_v2  ;;  %v6162_v49 = vpop.eup %4293  ;;  %4313 = vpow2.f32 %v3281_v30  ;;  %v3283_v38 = vmul.f32 1.442695, %v3276_v34  ;;  %v3300_v29 = vsub.f32 %v6097_v55, %v6122_v28 }
 0x72c   :  { %v6164_v24 = vpop.eup %4295  ;;  %v3325_v52 = vadd.f32 %v6162_v49, %v3321_v50  ;;  %4315 = vpow2.f32 %v3293_v48  ;;  %v3295_v63 = vmul.f32 1.442695, %v3288_v12  ;;  %v3312_v20 = vsub.f32 %v6105_v42, %v6122_v28 }
 0x72d   :  { %v3342_v1 = vadd.f32 %v6144_v60, %v3338_v22  ;;  %v6168_v7 = vpop.eup %4297  ;;  %4317 = vpow2.f32 %v3305_v45  ;;  %v3307_v48 = vmul.f32 1.442695, %v3300_v29 }
 0x72e   :  { %v6172_v58 = vpop.eup %4299  ;;  %v3329_v56 = vadd.f32 %v6164_v24, %v3325_v52  ;;  %4319 = vpow2.f32 %v3235_v14  ;;  %v3319_v42 = vmul.f32 1.442695, %v3312_v20 }
 0x72f   :  { %v3346_v62 = vadd.f32 %v6157_v40, %v3342_v1  ;;  %v6176_v13 = vpop.eup %4301  ;;  %4321 = vpow2.f32 %v3247_v0 }
 0x730   :  { %v6180_v33 = vpop.eup %4303  ;;  %v3333_v16 = vadd.f32 %v6168_v7, %v3329_v56 }
 0x731   :  { %4323 = vrcp.f32 %v3346_v62  ;;  %v6183_v31 = vpop.eup %4305 }
 0x732   :  { %4325 = vpow2.f32 %v3259_v51  ;;  %v6187_v19 = vpop.eup %4307  ;;  %v3337_v11 = vadd.f32 %v6172_v58, %v3333_v16  ;;  %v3323_v47 = vadd.f32 %v6183_v31, %v6180_v33 }
 0x733   :  { %4327 = vpow2.f32 %v3317_v53  ;;  %v6192_v27 = vpop.eup %4309 }
 0x734   :  { %4329 = vpow2.f32 %v3271_v44  ;;  %v6196_v30 = vpop.eup %4311  ;;  %v3341_v32 = vadd.f32 %v6176_v13, %v3337_v11  ;;  %v3327_v55 = vadd.f32 %v6192_v27, %v3323_v47 }
 0x735   :  { %v6200_v2 = vpop.eup %4313  ;;  %4331 = vpow2.f32 %v3283_v38 }
 0x736   :  { %v6202_v45 = vpop.eup %4315  ;;  %v3345_v54 = vadd.f32 %v6187_v19, %v3341_v32  ;;  %v3331_v17 = vadd.f32 %v6196_v30, %v3327_v55  ;;  %4333 = vpow2.f32 %v3295_v63 }
 0x737   :  { %v6206_v22 = vpop.eup %4317 }
 0x738   :  { %v6208_v28 = vpop.eup %4319  ;;  %4335 = vrcp.f32 %v3345_v54  ;;  %v3335_v50 = vadd.f32 %v6200_v2, %v3331_v17 }
 0x739   :  { %v6211_v14 = vpop.eup %4321  ;;  %4337 = vpow2.f32 %v3307_v48 }
 0x73a   :  { %v3339_v1 = vadd.f32 %v6202_v45, %v3335_v50  ;;  %v3324_v52 = vadd.f32 %v6211_v14, %v6208_v28  ;;  %4339 = vpow2.f32 %v3319_v42 }
 0x73b   :  { %v4324_v0 = vpop.eup %4323 }
 0x73c   :  { %v6216_v51 = vpop.eup %4325  ;;  %v3354_v34 = vmul.f32 %v4324_v0, %v6110_v61  ;;  %v3362_v62 = vmul.f32 %v4324_v0, %v6113_v59  ;;  %v3343_v53 = vadd.f32 %v6206_v22, %v3339_v1  ;;  %v3374_v29 = vmul.f32 %v4324_v0, %v6124_v18 }
 0x73d   :  { %v6220_v56 = vpop.eup %4327  ;;  %v3328_v44 = vadd.f32 %v6216_v51, %v3324_v52  ;;  %v3386_v20 = vmul.f32 %v4324_v0, %v6128_v5  ;;  %v3398_v18 = vmul.f32 %v4324_v0, %v6135_v15 }
 0x73e   :  { %v6224_v12 = vpop.eup %4329  ;;  %v3358_v16 = vmul.f32 %v3354_v34, %v5750_v25  ;;  %v3366_v38 = vmul.f32 %v3362_v62, %v5776_v21  ;;  %v3347_v11 = vadd.f32 %v6220_v56, %v3343_v53  ;;  %v3378_v25 = vmul.f32 %v3374_v29, %v5805_v57 }
 0x73f   :  { %v3332_v61 = vadd.f32 %v6224_v12, %v3328_v44  ;;  %v6231_v47 = vpop.eup %4331  ;;  %v3390_v1 = vmul.f32 %v3386_v20, %v5830_v41  ;;  %v3410_v62 = vmul.f32 %v4324_v0, %v6141_v36 }
 0x740   :  { %v3370_v59 = vadd.f32 %v3366_v38, %v3358_v16  ;;  %4341 = vrcp.f32 %v3347_v11  ;;  %v6235_v32 = vpop.eup %4333  ;;  %v3402_v16 = vmul.f32 %v3398_v18, %v5857_v39  ;;  %v6538_v18 = vld [vmem:[#allocation8_spill] sm:$0xff] }
 0x741   :  { %v3336_v63 = vadd.f32 %v6231_v47, %v3332_v61  ;;  %v3414_v36 = vmul.f32 %v3410_v62, %v5885_v46 }
 0x742   :  { %v4336_v55 = vpop.eup %4335  ;;  %v3382_v50 = vadd.f32 %v3378_v25, %v3370_v59 }
 0x743   :  { %v3340_v21 = vadd.f32 %v6235_v32, %v3336_v63  ;;  %v6240_v48 = vpop.eup %4337  ;;  %v3353_v54 = vmul.f32 %v4336_v55, %v6148_v35  ;;  %v3361_v17 = vmul.f32 %v4336_v55, %v6151_v9  ;;  %v3373_v42 = vmul.f32 %v4336_v55, %v6162_v49 }
 0x744   :  { %v6247_v52 = vpop.eup %4339  ;;  %v3385_v15 = vmul.f32 %v4336_v55, %v6164_v24  ;;  %v3397_v9 = vmul.f32 %v4336_v55, %v6168_v7  ;;  %v3422_v49 = vmul.f32 %v4324_v0, %v6144_v60  ;;  %v3394_v41 = vadd.f32 %v3390_v1, %v3382_v50 }
 0x745   :  { %v3344_v5 = vadd.f32 %v6240_v48, %v3340_v21  ;;  %v3357_v57 = vmul.f32 %v3353_v54, %v5753_v23  ;;  %v3365_v34 = vmul.f32 %v3361_v17, %v5780_v43  ;;  %v3377_v44 = vmul.f32 %v3373_v42, %v5808_v8  ;;  %v6540_v54 = vld [vmem:[#allocation17_spill] sm:$0xff] }
 0x746   :  { %v3409_v23 = vmul.f32 %v4336_v55, %v6172_v58  ;;  %v3389_v24 = vmul.f32 %v3385_v15, %v5836_v26  ;;  %v3406_v38 = vadd.f32 %v3402_v16, %v3394_v41  ;;  %v3434_v7 = vmul.f32 %v4324_v0, %v6157_v40 }
 0x747   :  { %v3348_v35 = vadd.f32 %v6247_v52, %v3344_v5  ;;  %v3369_v53 = vadd.f32 %v3365_v34, %v3357_v57  ;;  %v3401_v60 = vmul.f32 %v3397_v9, %v5864_v3  ;;  %v3421_v11 = vmul.f32 %v4336_v55, %v6176_v13  ;;  %v6543_v57 = vld [vmem:[#allocation14_spill] sm:$0xff] }
 0x748   :  { %v3426_v8 = vmul.f32 %v3422_v49, %v5913_v4  ;;  %v3418_v39 = vadd.f32 %v3414_v36, %v3406_v38  ;;  %v3413_v26 = vmul.f32 %v3409_v23, %v5892_v6  ;;  %v3433_v63 = vmul.f32 %v4336_v55, %v6187_v19  ;;  %v6539_v55 = vld [vmem:[#allocation18_spill] sm:$0xff] }
 0x749   :  { %4343 = vrcp.f32 %v3348_v35  ;;  %v3381_v43 = vadd.f32 %v3377_v44, %v3369_v53 }
 0x74a   :  { %v4342_v29 = vpop.eup %4341  ;;  %v3430_v20 = vadd.f32 %v3426_v8, %v3418_v39  ;;  %v6549_v8 = vld [vmem:[#allocation7_spill] sm:$0xff] }
 0x74b   :  { %v3393_v61 = vadd.f32 %v3389_v24, %v3381_v43  ;;  %v3355_v59 = vmul.f32 %v4342_v29, %v6180_v33  ;;  %v3363_v58 = vmul.f32 %v4342_v29, %v6183_v31  ;;  %v3375_v46 = vmul.f32 %v4342_v29, %v6192_v27  ;;  %v6537_v31 = vld [vmem:[#allocation13_spill] sm:$0xff] }
 0x74c   :  { %v3387_v40 = vmul.f32 %v4342_v29, %v6196_v30  ;;  %v3399_v4 = vmul.f32 %v4342_v29, %v6200_v2  ;;  %v3411_v33 = vmul.f32 %v4342_v29, %v6202_v45  ;;  %v3425_v21 = vmul.f32 %v3421_v11, %v6537_v31 }
 0x74d   :  { %v3405_v0 = vadd.f32 %v3401_v60, %v3393_v61  ;;  %v3359_v3 = vmul.f32 %v3355_v59, %v5766_v10  ;;  %v3367_v13 = vmul.f32 %v3363_v58, %v5794_v37  ;;  %v3379_v19 = vmul.f32 %v3375_v46, %v6538_v18  ;;  %v6541_v10 = vld [vmem:[#allocation10_spill] sm:$0xff]  ;;  %v6542_v37 = vld [vmem:[#allocation12_spill] sm:$0xff]  ;;  %v6550_v58 = vld [vmem:[#allocation9_spill] sm:$0xff] }
 0x74e   :  { %v3438_v27 = vmul.f32 %v3434_v7, %v6539_v55  ;;  %v3437_v30 = vmul.f32 %v3433_v63, %v6540_v54  ;;  %v3391_v50 = vmul.f32 %v3387_v40, %v6541_v10  ;;  %v3403_v5 = vmul.f32 %v3399_v4, %v6542_v37  ;;  %v6548_v7 = vld [vmem:[#allocation20_spill] sm:$0xff]  ;;  %v6551_v63 = vld [vmem:[#allocation11_spill] sm:$0xff] }
 0x74f   :  { %v3417_v25 = vadd.f32 %v3413_v26, %v3405_v0  ;;  %v3371_v6 = vadd.f32 %v3367_v13, %v3359_v3  ;;  %v3415_v45 = vmul.f32 %v3411_v33, %v6543_v57  ;;  %v3423_v34 = vmul.f32 %v4342_v29, %v6206_v22  ;;  %v6544_v22 = vld [vmem:[#allocation34_spill] sm:$0xff]  ;;  %v6552_v0 = vld [vmem:[#allocation15_spill] sm:$0xff]  ;;  %v3726_v33 = vld [vmem:[%s6332_s11] ss:$0 sm:$0xff] }
 0x750   :  { %v3442_v1 = vadd.f32 %v3438_v27, %v3430_v20  ;;  %v3435_v15 = vmul.f32 %v4342_v29, %v6220_v56  ;;  %v6545_v56 = vld [vmem:[#allocation33_spill] sm:$0xff] }
 0x751   :  { %v3429_v17 = vadd.f32 %v3425_v21, %v3417_v25  ;;  %v3383_v42 = vadd.f32 %v3379_v19, %v3371_v6 }
 0x752   :  { %v3439_v60 = vmul.f32 %v3435_v15, %v6548_v7 }
 0x753   :  { %v4344_v2 = vpop.eup %4343  ;;  %v3441_v62 = vadd.f32 %v3437_v30, %v3429_v17  ;;  %v3395_v35 = vadd.f32 %v3391_v50, %v3383_v42 }
 0x754   :  { %v3356_v9 = vmul.f32 %v4344_v2, %v6208_v28  ;;  %v3364_v49 = vmul.f32 %v4344_v2, %v6211_v14  ;;  %v3376_v53 = vmul.f32 %v4344_v2, %v6216_v51  ;;  %v3388_v44 = vmul.f32 %v4344_v2, %v6224_v12  ;;  %v6546_v28 = vld [vmem:[#allocation16_spill] sm:$0xff]  ;;  %v6547_v12 = vld [vmem:[#allocation6_spill] sm:$0xff] }
 0x755   :  { %v3400_v41 = vmul.f32 %v4344_v2, %v6231_v47  ;;  %v3412_v16 = vmul.f32 %v4344_v2, %v6235_v32  ;;  %4139 = vmatprep.mubr.msk.f32.mxu0 %vm264_vm0, %v3441_v62  ;;  %v3407_v23 = vadd.f32 %v3403_v5, %v3395_v35  ;;  %v3424_v38 = vmul.f32 %v4344_v2, %v6240_v48 }
 0x756   :  { %v3360_v43 = vmul.f32 %v3356_v9, %v6544_v22  ;;  %v3368_v24 = vmul.f32 %v3364_v49, %v6545_v56  ;;  %4140 = vmatmul.mubr.msk.f32.vlgmr.msra.gmra.mrb[64].mxu0 %vm264_vm0, %v3442_v1  ;;  %v3427_v14 = vmul.f32 %v3423_v34, %v6546_v28  ;;  %v3380_v29 = vmul.f32 %v3376_v53, %v6547_v12 }
 0x757   :  { %v3419_v51 = vadd.f32 %v3415_v45, %v3407_v23  ;;  %v3436_v47 = vmul.f32 %v4344_v2, %v6247_v52  ;;  %v3392_v61 = vmul.f32 %v3388_v44, %v6549_v8  ;;  %v3404_v48 = vmul.f32 %v3400_v41, %v6550_v58  ;;  %v6553_v52 = vld [vmem:[#allocation19_spill] sm:$0xff] }
 0x758   :  { %v3372_v36 = vadd.f32 %v3368_v24, %v3360_v43  ;;  %v3416_v46 = vmul.f32 %v3412_v16, %v6551_v63  ;;  %v3428_v3 = vmul.f32 %v3424_v38, %v6552_v0 }
 0x759   :  { %v3431_v32 = vadd.f32 %v3427_v14, %v3419_v51  ;;  %v3440_v4 = vmul.f32 %v3436_v47, %v6553_v52 }
 0x75a   :  { %v3384_v11 = vadd.f32 %v3380_v29, %v3372_v36 }
 0x75b   :  { %v3443_v39 = vadd.f32 %v3439_v60, %v3431_v32 }
 0x75c   :  { %v3396_v59 = vadd.f32 %v3392_v61, %v3384_v11 }
 0x75d   :  { %4142 = vmatprep.mubr.msk.f32.mxu0 %vm264_vm0, %v3443_v39 }
 0x75e   :  { %v3408_v26 = vadd.f32 %v3404_v48, %v3396_v59 }
 0x760   :  { %v3420_v40 = vadd.f32 %v3416_v46, %v3408_v26 }
 0x762   :  { %v3432_v13 = vadd.f32 %v3428_v3, %v3420_v40 }
 0x764   :  { %v3444_v20 = vadd.f32 %v3440_v4, %v3432_v13 }
 0x766   :  { %4143 = vmatmul.mubr.msk.f32.gmra.mrb[66].mxu0 %vm264_vm0, %v3444_v20 }
 0x829   :  { %v4141_v25 = vpop.f32.mrb[64].mxu0 }
 0x82a   :  { %v3540_v31 = vadd.f32 %v4141_v25, %v3726_v33  ;;  %v3534_v21 = vpop.f32.mrb[65].mxu0 }
 0x82b   :  { %v3535_v6 = vadd.f32 %v3726_v33, %v3534_v21 }
 0x82c   :  { %3555 = vst.msk [vmem:[#allocation3 + $0x8] sm:$0xff] %vm3553_vm2, %v3540_v31 }
 0x82d   :  { %3554 = vst.msk [vmem:[#allocation3] sm:$0xff] %vm3553_vm2, %v3535_v6 }
 0x839   :  { %v4144_v18 = vpop.f32.mrb[66].mxu0 }
 0x83a   :  { %v3550_v19 = vadd.f32 %v4144_v18, %v3726_v33  ;;  %v3544_v55 = vpop.f32.mrb[67].mxu0 }
 0x83b   :  { %v3545_v27 = vadd.f32 %v3726_v33, %v3544_v55 }
 0x83c   :  { %3557 = vst.msk [vmem:[#allocation3 + $0x18] sm:$0xff] %vm3553_vm2, %v3550_v19 }
 0x83d   :  { %3556 = vst.msk [vmem:[#allocation3 + $0x10] sm:$0xff] %vm3553_vm2, %v3545_v27 }
 0x83e   :  { %4356 = shalt.err (!%p4353_p4)
}
 0x83f   :  { %s4357_s25 = scalar_lea.hbm %s6333_s12, 512 }
 0x840   :  { %p4358_p5 = scmp.ne.s32.totalorder %s6333_s12, %s4357_s25  ;;  %p4361_p6 = scmp.lt.u32.totalorder %s4357_s25, %s6333_s12 }
 0x842   :  { %p4363_p7 = pnand %p4361_p6, %p4358_p5 }
 0x844   :  { %4366 = shalt.err (!%p4363_p7)
}
 0x845   :  { %s4372_s28 = smov 128   ;;  %s4373_s0 = smov 8  }
 0x846   :  { %3569 = dma.vmem_to_hbm [thread:$0]  %s3564_s23, 512, %s6333_s12, [#allocation4], %s4372_s28, %s4372_s28, %s4373_s0  }
 0x847   :  { %4367 = dma.done.wait [#allocation4], 512  }
 0x848   :  { %4368 = vsyncadd [#allocation4], 4294966784 }
 0x849   :  { %3573 = vsyncpa [#allocation4], 1 }

</bundles_post_ra>
